<compile_context>
chip_gen: v7x
topology: tpu7x:2x2x1
jax: 0.10.0
libtpu: 0.0.40
codegen_flags: <defaults>
</compile_context>

<pallas_src>
import functools
import math

import jax
import jax.numpy as jnp
from jax.experimental import pallas as pl
from jax.experimental.pallas import tpu as pltpu


def _pick_tile(dim, target, align):
    """Largest tile <= target that is a multiple of `align` and divides `dim`.
    Falls back to the full dim (always a legal block size)."""
    if dim <= target:
        return dim
    t = (target // align) * align
    while t >= align:
        if dim % t == 0:
            return t
        t -= align
    return dim


def _vmem_limit_bytes():
    """Scoped VMEM limit derived from the local chip's physical capacity
    (re-derives automatically for v5e/v6e 128 MiB vs v7x 64 MiB)."""
    cap = 64 * 1024 * 1024          # conservative fallback (v7x per-TC VMEM)
    try:
        cap = pltpu.get_tpu_info().vmem_capacity_bytes
    except Exception:
        pass
    return int(min(100 * 1024 * 1024, (cap * 3) // 4))


# ----------------------------------------------------------------------------
# Tiled linear: y = x @ W + b   (c_attn and c_proj projections)
# ----------------------------------------------------------------------------
def _linear_kernel_kresident(x_ref, w_ref, b_ref, o_ref, *, mxu_dtype):
    x = x_ref[...]
    w = w_ref[...]
    if mxu_dtype is not None:               # feed bf16/fp8 to the MXU, acc in f32
        x = x.astype(mxu_dtype)
        w = w.astype(mxu_dtype)
    y = jnp.dot(x, w, preferred_element_type=jnp.float32)
    o_ref[...] = (y + b_ref[...].astype(jnp.float32)).astype(o_ref.dtype)


def _linear_kernel_ktiled(x_ref, w_ref, b_ref, o_ref, acc_ref, *, mxu_dtype):
    k = pl.program_id(2)

    @pl.when(k == 0)
    def _init():
        acc_ref[...] = jnp.zeros_like(acc_ref)

    x = x_ref[...]
    w = w_ref[...]
    if mxu_dtype is not None:
        x = x.astype(mxu_dtype)
        w = w.astype(mxu_dtype)
    acc_ref[...] += jnp.dot(x, w, preferred_element_type=jnp.float32)

    @pl.when(k == pl.num_programs(2) - 1)
    def _finalize():
        o_ref[...] = (acc_ref[...] + b_ref[...].astype(jnp.float32)
                      ).astype(o_ref.dtype)


def pallas_linear(x2d, w, b, *, tm=512, tn=512, tk=None, mxu_dtype=None):
    """x2d: (M, K), w: (K, N), b: (N,) -> (M, N)."""
    M, K = x2d.shape
    N = w.shape[1]
    itemsize = jnp.dtype(x2d.dtype).itemsize
    vmem_limit = _vmem_limit_bytes()

    tm = _pick_tile(M, tm, 8)
    tn = _pick_tile(N, tn, 128)

    # K-resident path: the whole (K, tn) weight slab stays in VMEM across the
    # inner M sweep (no accumulator scratch, no K re-streaming of x tiles).
    # Only fall back to K tiling when the double-buffered working set is big.
    kres_bytes = 2 * (tm * K + K * tn + tn) * itemsize + 2 * tm * tn * itemsize
    if tk is None and kres_bytes <= (vmem_limit * 3) // 5:
        grid = (N // tn, M // tm)   # weight block index constant over inner sweep
        return pl.pallas_call(
            functools.partial(_linear_kernel_kresident, mxu_dtype=mxu_dtype),
            out_shape=jax.ShapeDtypeStruct((M, N), x2d.dtype),
            grid=grid,
            in_specs=[
                pl.BlockSpec((tm, K), lambda j, i: (i, 0)),
                pl.BlockSpec((K, tn), lambda j, i: (0, j)),
                pl.BlockSpec((1, tn), lambda j, i: (0, j)),
            ],
            out_specs=pl.BlockSpec((tm, tn), lambda j, i: (i, j)),
            compiler_params=pltpu.CompilerParams(
                dimension_semantics=("parallel", "parallel"),
                vmem_limit_bytes=vmem_limit,
            ),
        )(x2d, w, b.reshape(1, N))

    # Fallback for very large K: classic K-tiled accumulator matmul.
    tk = _pick_tile(K, 512 if tk is None else tk, 128)
    grid = (M // tm, N // tn, K // tk)
    return pl.pallas_call(
        functools.partial(_linear_kernel_ktiled, mxu_dtype=mxu_dtype),
        out_shape=jax.ShapeDtypeStruct((M, N), x2d.dtype),
        grid=grid,
        in_specs=[
            pl.BlockSpec((tm, tk), lambda i, j, k: (i, k)),
            pl.BlockSpec((tk, tn), lambda i, j, k: (k, j)),
            pl.BlockSpec((1, tn), lambda i, j, k: (0, j)),
        ],
        out_specs=pl.BlockSpec((tm, tn), lambda i, j, k: (i, j)),
        scratch_shapes=[pltpu.VMEM((tm, tn), jnp.float32)],
        compiler_params=pltpu.CompilerParams(
            dimension_semantics=("parallel", "parallel", "arbitrary"),
            vmem_limit_bytes=vmem_limit,
        ),
    )(x2d, w, b.reshape(1, N))


# ----------------------------------------------------------------------------
# Flash-style causal attention.  Grid = (B, n_head, lower_triangular_steps).
# The (q_tile, kv_tile) pairs are enumerated only below/on the diagonal via
# scalar-prefetched index maps, so no grid step is ever fully masked.
# ----------------------------------------------------------------------------
def _flash_attn_kernel(qmap_ref, kmap_ref, q_ref, k_ref, v_ref, o_ref,
                       m_ref, l_ref, acc_ref, *, scale, tq, tkv, mxu_dtype):
    t = pl.program_id(2)
    qi = qmap_ref[t]
    ki = kmap_ref[t]

    @pl.when(ki == 0)
    def _init():
        m_ref[...] = jnp.full_like(m_ref, -jnp.inf)
        l_ref[...] = jnp.zeros_like(l_ref)
        acc_ref[...] = jnp.zeros_like(acc_ref)

    def _step(masked):
        q = q_ref[...]
        k = k_ref[...]
        v = v_ref[...]
        if mxu_dtype is not None:           # bf16 MXU operands, f32 statistics
            q = q.astype(mxu_dtype)
            k = k.astype(mxu_dtype)
            v = v.astype(mxu_dtype)
        # Pre-scale q (tq*hd muls) instead of scaling the (tq, tkv) scores.
        q = q * jnp.asarray(scale, q.dtype)
        s = jax.lax.dot_general(q, k, (((1,), (1,)), ((), ())),
                                preferred_element_type=jnp.float32)  # (tq, tkv)
        if masked:
            row = jax.lax.broadcasted_iota(jnp.int32, (tq, tkv), 0)
            col = jax.lax.broadcasted_iota(jnp.int32, (tq, tkv), 1)
            s = jnp.where(col <= row, s, -jnp.inf)
        m_prev = m_ref[...]                                   # (tq, 1)
        m_new = jnp.maximum(m_prev, jnp.max(s, axis=-1, keepdims=True))
        alpha = jnp.exp(m_prev - m_new)
        p = jnp.exp(s - m_new)
        l_ref[...] = alpha * l_ref[...] + jnp.sum(p, axis=-1, keepdims=True)
        acc_ref[...] = alpha * acc_ref[...] + jnp.dot(
            p.astype(v.dtype), v, preferred_element_type=jnp.float32)
        m_ref[...] = m_new

    @pl.when(ki < qi)       # strictly below the diagonal: no mask needed
    def _off_diag():
        _step(masked=False)

    @pl.when(ki == qi)      # diagonal block: mask, then finalize this q tile
    def _diag():
        _step(masked=True)
        # TODO(synk): attn_dropout / resid_dropout are identity (p=0.0, eval).
        o_ref[...] = (acc_ref[...] / l_ref[...]).astype(o_ref.dtype)


def pallas_causal_attention(q, k, v, *, tq=128, mxu_dtype=None):
    """q, k, v: (B, n_head, T, head_dim) -> (B, n_head, T, head_dim).
    tq=128 is right for v5e; 256 is preferred on v6e/v7x for long sequences."""
    B, H, T, hd = q.shape
    tq = _pick_tile(T, tq, 8)
    tkv = tq                  # square tiles so the diagonal mask is tile-local
    nq = T // tq

    # Enumerate only lower-triangular (q_tile, kv_tile) pairs: fully-masked
    # upper-triangle grid steps (and their fixed per-step overhead) never run.
    pairs = [(i, j) for i in range(nq) for j in range(i + 1)]
    qmap = jnp.asarray([p[0] for p in pairs], dtype=jnp.int32)
    kmap = jnp.asarray([p[1] for p in pairs], dtype=jnp.int32)
    n_steps = len(pairs)

    kernel = functools.partial(
        _flash_attn_kernel, scale=1.0 / math.sqrt(hd), tq=tq, tkv=tkv,
        mxu_dtype=mxu_dtype)

    q_spec = pl.BlockSpec((None, None, tq, hd),
                          lambda b, h, t, qm, km: (b, h, qm[t], 0))
    kv_spec = pl.BlockSpec((None, None, tkv, hd),
                           lambda b, h, t, qm, km: (b, h, km[t], 0))
    out_spec = pl.BlockSpec((None, None, tq, hd),
                            lambda b, h, t, qm, km: (b, h, qm[t], 0))

    return pl.pallas_call(
        kernel,
        out_shape=jax.ShapeDtypeStruct((B, H, T, hd), q.dtype),
        grid_spec=pltpu.PrefetchScalarGridSpec(
            num_scalar_prefetch=2,
            grid=(B, H, n_steps),
            in_specs=[q_spec, kv_spec, kv_spec],
            out_specs=out_spec,
            scratch_shapes=[
                # NOTE: (tq, 1) pads to 128 lanes; acceptable (~64 KiB each).
                pltpu.VMEM((tq, 1), jnp.float32),    # running max  m
                pltpu.VMEM((tq, 1), jnp.float32),    # running sum  l
                pltpu.VMEM((tq, hd), jnp.float32),   # output accumulator
            ],
        ),
        compiler_params=pltpu.CompilerParams(
            dimension_semantics=("parallel", "parallel", "arbitrary"),
            vmem_limit_bytes=_vmem_limit_bytes(),
        ),
    )(qmap, kmap, q, k, v)


# ----------------------------------------------------------------------------
# Full CausalSelfAttention forward.
# ----------------------------------------------------------------------------
def causal_self_attention_forward(x, params, n_head, *, mxu_dtype=None):
    B, T, C = x.shape
    hd = C // n_head

    # c_attn: (B*T, C) @ (C, 3C) + b  ->  packed qkv.
    qkv = pallas_linear(x.reshape(B * T, C), params["w_attn"], params["b_attn"],
                        mxu_dtype=mxu_dtype)

    # Layout plumbing (XLA, mirrors the PyTorch view+transpose): split heads so
    # every attention operand is a contiguous (T, head_dim) slab per
    # (batch, head) -- no 3C-wide over-fetch, no non-128-aligned lane slicing.
    qkv = qkv.reshape(B, T, 3, n_head, hd)
    q = jnp.transpose(qkv[:, :, 0], (0, 2, 1, 3))    # (B, nh, T, hd)
    k = jnp.transpose(qkv[:, :, 1], (0, 2, 1, 3))
    v = jnp.transpose(qkv[:, :, 2], (0, 2, 1, 3))

    y = pallas_causal_attention(q, k, v, mxu_dtype=mxu_dtype)   # (B, nh, T, hd)

    # Merge heads back and apply c_proj.
    y = jnp.transpose(y, (0, 2, 1, 3)).reshape(B * T, C)
    y = pallas_linear(y, params["w_proj"], params["b_proj"], mxu_dtype=mxu_dtype)
    return y.reshape(B, T, C)


# ----------------------------------------------------------------------------
# Pure-JAX reference (mirrors the PyTorch non-flash forward exactly).
# ----------------------------------------------------------------------------
def reference_forward(x, params, n_head):
    B, T, C = x.shape
    hd = C // n_head
    hp = jax.lax.Precision.HIGHEST
    qkv = jnp.dot(x.reshape(B * T, C), params["w_attn"],
                  precision=hp) + params["b_attn"]
    qkv = qkv.reshape(B, T, 3 * C)
    q, k, v = jnp.split(qkv, 3, axis=2)
    q = q.reshape(B, T, n_head, hd).transpose(0, 2, 1, 3)
    k = k.reshape(B, T, n_head, hd).transpose(0, 2, 1, 3)
    v = v.reshape(B, T, n_head, hd).transpose(0, 2, 1, 3)
    att = jnp.einsum("bhqd,bhkd->bhqk", q, k,
                     precision=hp) * (1.0 / math.sqrt(hd))
    mask = jnp.tril(jnp.ones((T, T), dtype=bool))
    att = jnp.where(mask[None, None, :, :], att, -jnp.inf)
    att = jax.nn.softmax(att, axis=-1)
    y = jnp.einsum("bhqk,bhkd->bhqd", att, v, precision=hp)
    y = y.transpose(0, 2, 1, 3).reshape(B * T, C)
    y = jnp.dot(y, params["w_proj"], precision=hp) + params["b_proj"]
    return y.reshape(B, T, C)


if __name__ == "__main__":
    # Module config: n_head=4, n_embd=32, scaling_factor=3, bias=True,
    # dropout=0.0, block_size=256.  T=256 exercises off-diagonal and diagonal
    # causal tiles (tq=128) and multiple attention grid steps per (batch, head).
    B, T, C = 2, 256, 32
    n_head = 4
    scaling_factor = 3

    key = jax.random.PRNGKey(0)
    kx, kw1, kb1, kw2, kb2 = jax.random.split(key, 5)

    x = jax.random.normal(kx, (B, T, C), dtype=jnp.float32)

    bound = 1.0 / math.sqrt(C)
    params = {
        "w_attn": jax.random.uniform(kw1, (C, scaling_factor * C),
                                     minval=-bound, maxval=bound,
                                     dtype=jnp.float32),
        "b_attn": jax.random.uniform(kb1, (scaling_factor * C,),
                                     minval=-bound, maxval=bound,
                                     dtype=jnp.float32),
        "w_proj": jax.random.uniform(kw2, (C, C),
                                     minval=-bound, maxval=bound,
                                     dtype=jnp.float32),
        "b_proj": jax.random.uniform(kb2, (C,),
                                     minval=-bound, maxval=bound,
                                     dtype=jnp.float32),
    }

    fwd = jax.jit(functools.partial(causal_self_attention_forward,
                                    n_head=n_head))
    y = jax.block_until_ready(fwd(x, params))

    y_ref = reference_forward(x, params, n_head)
    assert y.shape == (B, T, C)
    max_err = float(jnp.max(jnp.abs(y - y_ref)))
    assert jnp.allclose(y, y_ref, atol=5e-3, rtol=5e-3), (
        f"mismatch vs reference (max abs err {max_err})")

    print("KERNEL_OK")
</pallas_src>

<mosaic_0001>
module attributes {stable_mosaic.version = 11 : i64} {
  func.func @_linear_kernel_kresident(%arg0: i32, %arg1: i32, %arg2: memref<512x32xf32, #tpu.memory_space<vmem>>, %arg3: memref<32x96xf32, #tpu.memory_space<vmem>>, %arg4: memref<1x96xf32, #tpu.memory_space<vmem>>, %arg5: memref<512x96xf32, #tpu.memory_space<vmem>>) attributes {dimension_semantics = [#tpu.dimension_semantics<parallel>, #tpu.dimension_semantics<parallel>], iteration_bounds = array<i64: 1, 1>, scalar_prefetch = 0 : i64, scratch_operands = 0 : i64, tpu.core_type = #tpu.core_type<tc>, window_params = [{transform_indices = @transform_0, window_bounds = array<i64: 512, 32>}, {transform_indices = @transform_1, window_bounds = array<i64: 32, 96>}, {transform_indices = @transform_2, window_bounds = array<i64: 1, 96>}, {transform_indices = @transform_3, window_bounds = array<i64: 512, 96>}]} {
    %c0 = arith.constant 0 : index
    %c0_0 = arith.constant 0 : index
    %0 = vector.load %arg2[%c0, %c0_0] : memref<512x32xf32, #tpu.memory_space<vmem>>, vector<512x32xf32>
    %c0_1 = arith.constant 0 : index
    %c0_2 = arith.constant 0 : index
    %1 = vector.load %arg3[%c0_1, %c0_2] : memref<32x96xf32, #tpu.memory_space<vmem>>, vector<32x96xf32>
    %cst = arith.constant dense<0.000000e+00> : vector<512x96xf32>
    %2 = tpu.matmul %0, %1, %cst {dimension_numbers = #tpu.dot_dimension_numbers<[1], [0], [0], [1], [0, 0, 1, 1], [], []>} : vector<512x32xf32>, vector<32x96xf32>, vector<512x96xf32> -> vector<512x96xf32>
    %c0_3 = arith.constant 0 : index
    %c0_4 = arith.constant 0 : index
    %3 = vector.load %arg4[%c0_3, %c0_4] : memref<1x96xf32, #tpu.memory_space<vmem>>, vector<1x96xf32>
    %4 = vector.broadcast %3 : vector<1x96xf32> to vector<512x96xf32>
    %5 = arith.addf %2, %4 : vector<512x96xf32>
    %c0_5 = arith.constant 0 : index
    %c0_6 = arith.constant 0 : index
    %6 = vector.load %arg5[%c0_5, %c0_6] : memref<512x96xf32, #tpu.memory_space<vmem>>, vector<512x96xf32>
    tpu.vector_store %arg5[%c0_5, %c0_6], %5 {strides = array<i32>} : memref<512x96xf32, #tpu.memory_space<vmem>>, vector<512x96xf32>,
    return
  }
  func.func @transform_0(%arg0: i32, %arg1: i32) -> (i32, i32) {
    %c0_i32 = arith.constant 0 : i32
    %c0_i32_0 = arith.constant 0 : i32
    return %arg1, %c0_i32 : i32, i32
  }
  func.func @transform_1(%arg0: i32, %arg1: i32) -> (i32, i32) {
    %c0_i32 = arith.constant 0 : i32
    %c0_i32_0 = arith.constant 0 : i32
    return %c0_i32, %arg0 : i32, i32
  }
  func.func @transform_2(%arg0: i32, %arg1: i32) -> (i32, i32) {
    %c0_i32 = arith.constant 0 : i32
    %c0_i32_0 = arith.constant 0 : i32
    return %c0_i32, %arg0 : i32, i32
  }
  func.func @transform_3(%arg0: i32, %arg1: i32) -> (i32, i32) {
    %c0_i32 = arith.constant 0 : i32
    return %arg1, %arg0 : i32, i32
  }
}

module attributes {stable_mosaic.version = 11 : i64} {
  func.func @_flash_attn_kernel(%arg0: i32, %arg1: i32, %arg2: i32, %arg3: memref<3xi32, #tpu.memory_space<smem>>, %arg4: memref<3xi32, #tpu.memory_space<smem>>, %arg5: memref<1x1x128x8xf32, #tpu.memory_space<vmem>>, %arg6: memref<1x1x128x8xf32, #tpu.memory_space<vmem>>, %arg7: memref<1x1x128x8xf32, #tpu.memory_space<vmem>>, %arg8: memref<1x1x128x8xf32, #tpu.memory_space<vmem>>, %arg9: memref<128x1xf32, #tpu.memory_space<vmem>>, %arg10: memref<128x1xf32, #tpu.memory_space<vmem>>, %arg11: memref<128x8xf32, #tpu.memory_space<vmem>>) attributes {dimension_semantics = [#tpu.dimension_semantics<parallel>, #tpu.dimension_semantics<parallel>, #tpu.dimension_semantics<arbitrary>], iteration_bounds = array<i64: 2, 4, 3>, scalar_prefetch = 2 : i64, scratch_operands = 3 : i64, tpu.core_type = #tpu.core_type<tc>, window_params = [{transform_indices = @transform_0, window_bounds = array<i64: 1, 1, 128, 8>}, {transform_indices = @transform_1, window_bounds = array<i64: 1, 1, 128, 8>}, {transform_indices = @transform_2, window_bounds = array<i64: 1, 1, 128, 8>}, {transform_indices = @transform_3, window_bounds = array<i64: 1, 1, 128, 8>}]} {
    %0 = arith.index_cast %arg2 : i32 to index
    %1 = memref.load %arg3[%0] : memref<3xi32, #tpu.memory_space<smem>>
    %2 = arith.index_cast %arg2 : i32 to index
    %3 = memref.load %arg4[%2] : memref<3xi32, #tpu.memory_space<smem>>
    %c0_i32 = arith.constant 0 : i32
    %4 = arith.cmpi eq, %3, %c0_i32 : i32
    %5 = arith.extui %4 : i1 to i32
    %c0_i32_0 = arith.constant 0 : i32
    %6 = arith.cmpi ne, %5, %c0_i32_0 : i32
    scf.if %6 {
      %cst = arith.constant 0xFF800000 : f32
      %13 = vector.broadcast %cst : f32 to vector<128x1xf32>
      %c0 = arith.constant 0 : index
      %c0_3 = arith.constant 0 : index
      %14 = vector.load %arg9[%c0, %c0_3] : memref<128x1xf32, #tpu.memory_space<vmem>>, vector<128x1xf32>
      tpu.vector_store %arg9[%c0, %c0_3], %13 {strides = array<i32>} : memref<128x1xf32, #tpu.memory_space<vmem>>, vector<128x1xf32>,
      %cst_4 = arith.constant 0.000000e+00 : f32
      %15 = vector.broadcast %cst_4 : f32 to vector<128x1xf32>
      %c0_5 = arith.constant 0 : index
      %c0_6 = arith.constant 0 : index
      %16 = vector.load %arg10[%c0_5, %c0_6] : memref<128x1xf32, #tpu.memory_space<vmem>>, vector<128x1xf32>
      tpu.vector_store %arg10[%c0_5, %c0_6], %15 {strides = array<i32>} : memref<128x1xf32, #tpu.memory_space<vmem>>, vector<128x1xf32>,
      %cst_7 = arith.constant 0.000000e+00 : f32
      %17 = vector.broadcast %cst_7 : f32 to vector<128x8xf32>
      %c0_8 = arith.constant 0 : index
      %c0_9 = arith.constant 0 : index
      %18 = vector.load %arg11[%c0_8, %c0_9] : memref<128x8xf32, #tpu.memory_space<vmem>>, vector<128x8xf32>
      tpu.vector_store %arg11[%c0_8, %c0_9], %17 {strides = array<i32>} : memref<128x8xf32, #tpu.memory_space<vmem>>, vector<128x8xf32>,
    } else {
    }
    %7 = arith.cmpi slt, %3, %1 : i32
    %8 = arith.extui %7 : i1 to i32
    %c0_i32_1 = arith.constant 0 : i32
    %9 = arith.cmpi ne, %8, %c0_i32_1 : i32
    scf.if %9 {
      %c0 = arith.constant 0 : index
      %c0_3 = arith.constant 0 : index
      %c0_4 = arith.constant 0 : index
      %c0_5 = arith.constant 0 : index
      %13 = vector.load %arg5[%c0, %c0_3, %c0_4, %c0_5] : memref<1x1x128x8xf32, #tpu.memory_space<vmem>>, vector<1x1x128x8xf32>
      %14 = vector.shape_cast %13 : vector<1x1x128x8xf32> to vector<128x8xf32>
      %c0_6 = arith.constant 0 : index
      %c0_7 = arith.constant 0 : index
      %c0_8 = arith.constant 0 : index
      %c0_9 = arith.constant 0 : index
      %15 = vector.load %arg6[%c0_6, %c0_7, %c0_8, %c0_9] : memref<1x1x128x8xf32, #tpu.memory_space<vmem>>, vector<1x1x128x8xf32>
      %16 = vector.shape_cast %15 : vector<1x1x128x8xf32> to vector<128x8xf32>
      %c0_10 = arith.constant 0 : index
      %c0_11 = arith.constant 0 : index
      %c0_12 = arith.constant 0 : index
      %c0_13 = arith.constant 0 : index
      %17 = vector.load %arg7[%c0_10, %c0_11, %c0_12, %c0_13] : memref<1x1x128x8xf32, #tpu.memory_space<vmem>>, vector<1x1x128x8xf32>
      %18 = vector.shape_cast %17 : vector<1x1x128x8xf32> to vector<128x8xf32>
      %cst = arith.constant 0.353553385 : f32
      %19 = vector.broadcast %cst : f32 to vector<128x8xf32>
      %20 = arith.mulf %14, %19 : vector<128x8xf32>
      %cst_14 = arith.constant dense<0.000000e+00> : vector<128x128xf32>
      %21 = tpu.matmul %20, %16, %cst_14 {dimension_numbers = #tpu.dot_dimension_numbers<[1], [1], [0], [0], [0, 0, 1, 0], [], []>} : vector<128x8xf32>, vector<128x8xf32>, vector<128x128xf32> -> vector<128x128xf32>
      %c0_15 = arith.constant 0 : index
      %c0_16 = arith.constant 0 : index
      %22 = vector.load %arg9[%c0_15, %c0_16] : memref<128x1xf32, #tpu.memory_space<vmem>>, vector<128x1xf32>
      %cst_17 = arith.constant dense<0xFF800000> : vector<128xf32>
      %23 = vector.multi_reduction <maximumf>, %21, %cst_17 [1] : vector<128x128xf32> to vector<128xf32>
      %24 = vector.shape_cast %23 : vector<128xf32> to vector<128x1xf32>
      %25 = arith.maximumf %22, %24 : vector<128x1xf32>
      %26 = arith.subf %22, %25 : vector<128x1xf32>
      %27 = math.exp %26 : vector<128x1xf32>
      %28 = vector.broadcast %25 : vector<128x1xf32> to vector<128x128xf32>
      %29 = arith.subf %21, %28 : vector<128x128xf32>
      %30 = math.exp %29 : vector<128x128xf32>
      %c0_18 = arith.constant 0 : index
      %c0_19 = arith.constant 0 : index
      %31 = vector.load %arg10[%c0_18, %c0_19] : memref<128x1xf32, #tpu.memory_space<vmem>>, vector<128x1xf32>
      %32 = arith.mulf %27, %31 : vector<128x1xf32>
      %cst_20 = arith.constant dense<0.000000e+00> : vector<128xf32>
      %33 = vector.multi_reduction <add>, %30, %cst_20 [1] : vector<128x128xf32> to vector<128xf32>
      %34 = vector.shape_cast %33 : vector<128xf32> to vector<128x1xf32>
      %35 = arith.addf %32, %34 : vector<128x1xf32>
      %c0_21 = arith.constant 0 : index
      %c0_22 = arith.constant 0 : index
      %36 = vector.load %arg10[%c0_21, %c0_22] : memref<128x1xf32, #tpu.memory_space<vmem>>, vector<128x1xf32>
      tpu.vector_store %arg10[%c0_21, %c0_22], %35 {strides = array<i32>} : memref<128x1xf32, #tpu.memory_space<vmem>>, vector<128x1xf32>,
      %c0_23 = arith.constant 0 : index
      %c0_24 = arith.constant 0 : index
      %37 = vector.load %arg11[%c0_23, %c0_24] : memref<128x8xf32, #tpu.memory_space<vmem>>, vector<128x8xf32>
      %38 = vector.broadcast %27 : vector<128x1xf32> to vector<128x8xf32>
      %39 = arith.mulf %38, %37 : vector<128x8xf32>
      %cst_25 = arith.constant dense<0.000000e+00> : vector<128x8xf32>
      %40 = tpu.matmul %30, %18, %cst_25 {dimension_numbers = #tpu.dot_dimension_numbers<[1], [0], [0], [1], [0, 0, 1, 1], [], []>} : vector<128x128xf32>, vector<128x8xf32>, vector<128x8xf32> -> vector<128x8xf32>
      %41 = arith.addf %39, %40 : vector<128x8xf32>
      %c0_26 = arith.constant 0 : index
      %c0_27 = arith.constant 0 : index
      %42 = vector.load %arg11[%c0_26, %c0_27] : memref<128x8xf32, #tpu.memory_space<vmem>>, vector<128x8xf32>
      tpu.vector_store %arg11[%c0_26, %c0_27], %41 {strides = array<i32>} : memref<128x8xf32, #tpu.memory_space<vmem>>, vector<128x8xf32>,
      %c0_28 = arith.constant 0 : index
      %c0_29 = arith.constant 0 : index
      %43 = vector.load %arg9[%c0_28, %c0_29] : memref<128x1xf32, #tpu.memory_space<vmem>>, vector<128x1xf32>
      tpu.vector_store %arg9[%c0_28, %c0_29], %25 {strides = array<i32>} : memref<128x1xf32, #tpu.memory_space<vmem>>, vector<128x1xf32>,
    } else {
    }
    %10 = arith.cmpi eq, %3, %1 : i32
    %11 = arith.extui %10 : i1 to i32
    %c0_i32_2 = arith.constant 0 : i32
    %12 = arith.cmpi ne, %11, %c0_i32_2 : i32
    scf.if %12 {
      %c0 = arith.constant 0 : index
      %c0_3 = arith.constant 0 : index
      %c0_4 = arith.constant 0 : index
      %c0_5 = arith.constant 0 : index
      %13 = vector.load %arg5[%c0, %c0_3, %c0_4, %c0_5] : memref<1x1x128x8xf32, #tpu.memory_space<vmem>>, vector<1x1x128x8xf32>
      %14 = vector.shape_cast %13 : vector<1x1x128x8xf32> to vector<128x8xf32>
      %c0_6 = arith.constant 0 : index
      %c0_7 = arith.constant 0 : index
      %c0_8 = arith.constant 0 : index
      %c0_9 = arith.constant 0 : index
      %15 = vector.load %arg6[%c0_6, %c0_7, %c0_8, %c0_9] : memref<1x1x128x8xf32, #tpu.memory_space<vmem>>, vector<1x1x128x8xf32>
      %16 = vector.shape_cast %15 : vector<1x1x128x8xf32> to vector<128x8xf32>
      %c0_10 = arith.constant 0 : index
      %c0_11 = arith.constant 0 : index
      %c0_12 = arith.constant 0 : index
      %c0_13 = arith.constant 0 : index
      %17 = vector.load %arg7[%c0_10, %c0_11, %c0_12, %c0_13] : memref<1x1x128x8xf32, #tpu.memory_space<vmem>>, vector<1x1x128x8xf32>
      %18 = vector.shape_cast %17 : vector<1x1x128x8xf32> to vector<128x8xf32>
      %cst = arith.constant 0.353553385 : f32
      %19 = vector.broadcast %cst : f32 to vector<128x8xf32>
      %20 = arith.mulf %14, %19 : vector<128x8xf32>
      %cst_14 = arith.constant dense<0.000000e+00> : vector<128x128xf32>
      %21 = tpu.matmul %20, %16, %cst_14 {dimension_numbers = #tpu.dot_dimension_numbers<[1], [1], [0], [0], [0, 0, 1, 0], [], []>} : vector<128x8xf32>, vector<128x8xf32>, vector<128x128xf32> -> vector<128x128xf32>
      %22 = tpu.iota {dimensions = array<i32: 0>} : vector<128x128xi32>
      %23 = tpu.iota {dimensions = array<i32: 1>} : vector<128x128xi32>
      %24 = arith.cmpi sle, %23, %22 : vector<128x128xi32>
      %cst_15 = arith.constant 0xFF800000 : f32
      %25 = vector.broadcast %cst_15 : f32 to vector<128x128xf32>
      %26 = arith.select %24, %21, %25 : vector<128x128xi1>, vector<128x128xf32>
      %c0_16 = arith.constant 0 : index
      %c0_17 = arith.constant 0 : index
      %27 = vector.load %arg9[%c0_16, %c0_17] : memref<128x1xf32, #tpu.memory_space<vmem>>, vector<128x1xf32>
      %cst_18 = arith.constant dense<0xFF800000> : vector<128xf32>
      %28 = vector.multi_reduction <maximumf>, %26, %cst_18 [1] : vector<128x128xf32> to vector<128xf32>
      %29 = vector.shape_cast %28 : vector<128xf32> to vector<128x1xf32>
      %30 = arith.maximumf %27, %29 : vector<128x1xf32>
      %31 = arith.subf %27, %30 : vector<128x1xf32>
      %32 = math.exp %31 : vector<128x1xf32>
      %33 = vector.broadcast %30 : vector<128x1xf32> to vector<128x128xf32>
      %34 = arith.subf %26, %33 : vector<128x128xf32>
      %35 = math.exp %34 : vector<128x128xf32>
      %c0_19 = arith.constant 0 : index
      %c0_20 = arith.constant 0 : index
      %36 = vector.load %arg10[%c0_19, %c0_20] : memref<128x1xf32, #tpu.memory_space<vmem>>, vector<128x1xf32>
      %37 = arith.mulf %32, %36 : vector<128x1xf32>
      %cst_21 = arith.constant dense<0.000000e+00> : vector<128xf32>
      %38 = vector.multi_reduction <add>, %35, %cst_21 [1] : vector<128x128xf32> to vector<128xf32>
      %39 = vector.shape_cast %38 : vector<128xf32> to vector<128x1xf32>
      %40 = arith.addf %37, %39 : vector<128x1xf32>
      %c0_22 = arith.constant 0 : index
      %c0_23 = arith.constant 0 : index
      %41 = vector.load %arg10[%c0_22, %c0_23] : memref<128x1xf32, #tpu.memory_space<vmem>>, vector<128x1xf32>
      tpu.vector_store %arg10[%c0_22, %c0_23], %40 {strides = array<i32>} : memref<128x1xf32, #tpu.memory_space<vmem>>, vector<128x1xf32>,
      %c0_24 = arith.constant 0 : index
      %c0_25 = arith.constant 0 : index
      %42 = vector.load %arg11[%c0_24, %c0_25] : memref<128x8xf32, #tpu.memory_space<vmem>>, vector<128x8xf32>
      %43 = vector.broadcast %32 : vector<128x1xf32> to vector<128x8xf32>
      %44 = arith.mulf %43, %42 : vector<128x8xf32>
      %cst_26 = arith.constant dense<0.000000e+00> : vector<128x8xf32>
      %45 = tpu.matmul %35, %18, %cst_26 {dimension_numbers = #tpu.dot_dimension_numbers<[1], [0], [0], [1], [0, 0, 1, 1], [], []>} : vector<128x128xf32>, vector<128x8xf32>, vector<128x8xf32> -> vector<128x8xf32>
      %46 = arith.addf %44, %45 : vector<128x8xf32>
      %c0_27 = arith.constant 0 : index
      %c0_28 = arith.constant 0 : index
      %47 = vector.load %arg11[%c0_27, %c0_28] : memref<128x8xf32, #tpu.memory_space<vmem>>, vector<128x8xf32>
      tpu.vector_store %arg11[%c0_27, %c0_28], %46 {strides = array<i32>} : memref<128x8xf32, #tpu.memory_space<vmem>>, vector<128x8xf32>,
      %c0_29 = arith.constant 0 : index
      %c0_30 = arith.constant 0 : index
      %48 = vector.load %arg9[%c0_29, %c0_30] : memref<128x1xf32, #tpu.memory_space<vmem>>, vector<128x1xf32>
      tpu.vector_store %arg9[%c0_29, %c0_30], %30 {strides = array<i32>} : memref<128x1xf32, #tpu.memory_space<vmem>>, vector<128x1xf32>,
      %c0_31 = arith.constant 0 : index
      %c0_32 = arith.constant 0 : index
      %49 = vector.load %arg11[%c0_31, %c0_32] : memref<128x8xf32, #tpu.memory_space<vmem>>, vector<128x8xf32>
      %c0_33 = arith.constant 0 : index
      %c0_34 = arith.constant 0 : index
      %50 = vector.load %arg10[%c0_33, %c0_34] : memref<128x1xf32, #tpu.memory_space<vmem>>, vector<128x1xf32>
      %51 = vector.broadcast %50 : vector<128x1xf32> to vector<128x8xf32>
      %52 = arith.divf %49, %51 : vector<128x8xf32>
      %c0_35 = arith.constant 0 : index
      %c0_36 = arith.constant 0 : index
      %c0_37 = arith.constant 0 : index
      %c0_38 = arith.constant 0 : index
      %53 = vector.load %arg8[%c0_35, %c0_36, %c0_37, %c0_38] : memref<1x1x128x8xf32, #tpu.memory_space<vmem>>, vector<1x1x128x8xf32>
      %54 = vector.shape_cast %53 : vector<1x1x128x8xf32> to vector<128x8xf32>
      %55 = vector.shape_cast %52 : vector<128x8xf32> to vector<1x1x128x8xf32>
      tpu.vector_store %arg8[%c0_35, %c0_36, %c0_37, %c0_38], %55 {strides = array<i32>} : memref<1x1x128x8xf32, #tpu.memory_space<vmem>>, vector<1x1x128x8xf32>,
    } else {
    }
    return
  }
  func.func @transform_0(%arg0: i32, %arg1: i32, %arg2: i32, %arg3: memref<3xi32, #tpu.memory_space<smem>>, %arg4: memref<3xi32, #tpu.memory_space<smem>>) -> (i32, i32, i32, i32) {
    %0 = arith.index_cast %arg2 : i32 to index
    %1 = memref.load %arg3[%0] : memref<3xi32, #tpu.memory_space<smem>>
    %c0_i32 = arith.constant 0 : i32
    %c0_i32_0 = arith.constant 0 : i32
    return %arg0, %arg1, %1, %c0_i32 : i32, i32, i32, i32
  }
  func.func @transform_1(%arg0: i32, %arg1: i32, %arg2: i32, %arg3: memref<3xi32, #tpu.memory_space<smem>>, %arg4: memref<3xi32, #tpu.memory_space<smem>>) -> (i32, i32, i32, i32) {
    %0 = arith.index_cast %arg2 : i32 to index
    %1 = memref.load %arg4[%0] : memref<3xi32, #tpu.memory_space<smem>>
    %c0_i32 = arith.constant 0 : i32
    %c0_i32_0 = arith.constant 0 : i32
    return %arg0, %arg1, %1, %c0_i32 : i32, i32, i32, i32
  }
  func.func @transform_2(%arg0: i32, %arg1: i32, %arg2: i32, %arg3: memref<3xi32, #tpu.memory_space<smem>>, %arg4: memref<3xi32, #tpu.memory_space<smem>>) -> (i32, i32, i32, i32) {
    %0 = arith.index_cast %arg2 : i32 to index
    %1 = memref.load %arg4[%0] : memref<3xi32, #tpu.memory_space<smem>>
    %c0_i32 = arith.constant 0 : i32
    %c0_i32_0 = arith.constant 0 : i32
    return %arg0, %arg1, %1, %c0_i32 : i32, i32, i32, i32
  }
  func.func @transform_3(%arg0: i32, %arg1: i32, %arg2: i32, %arg3: memref<3xi32, #tpu.memory_space<smem>>, %arg4: memref<3xi32, #tpu.memory_space<smem>>) -> (i32, i32, i32, i32) {
    %0 = arith.index_cast %arg2 : i32 to index
    %1 = memref.load %arg3[%0] : memref<3xi32, #tpu.memory_space<smem>>
    %c0_i32 = arith.constant 0 : i32
    %c0_i32_0 = arith.constant 0 : i32
    return %arg0, %arg1, %1, %c0_i32 : i32, i32, i32, i32
  }
}

module attributes {stable_mosaic.version = 11 : i64} {
  func.func @_linear_kernel_kresident(%arg0: i32, %arg1: i32, %arg2: memref<512x32xf32, #tpu.memory_space<vmem>>, %arg3: memref<32x32xf32, #tpu.memory_space<vmem>>, %arg4: memref<1x32xf32, #tpu.memory_space<vmem>>, %arg5: memref<512x32xf32, #tpu.memory_space<vmem>>) attributes {dimension_semantics = [#tpu.dimension_semantics<parallel>, #tpu.dimension_semantics<parallel>], iteration_bounds = array<i64: 1, 1>, scalar_prefetch = 0 : i64, scratch_operands = 0 : i64, tpu.core_type = #tpu.core_type<tc>, window_params = [{transform_indices = @transform_0, window_bounds = array<i64: 512, 32>}, {transform_indices = @transform_1, window_bounds = array<i64: 32, 32>}, {transform_indices = @transform_2, window_bounds = array<i64: 1, 32>}, {transform_indices = @transform_3, window_bounds = array<i64: 512, 32>}]} {
    %c0 = arith.constant 0 : index
    %c0_0 = arith.constant 0 : index
    %0 = vector.load %arg2[%c0, %c0_0] : memref<512x32xf32, #tpu.memory_space<vmem>>, vector<512x32xf32>
    %c0_1 = arith.constant 0 : index
    %c0_2 = arith.constant 0 : index
    %1 = vector.load %arg3[%c0_1, %c0_2] : memref<32x32xf32, #tpu.memory_space<vmem>>, vector<32x32xf32>
    %cst = arith.constant dense<0.000000e+00> : vector<512x32xf32>
    %2 = tpu.matmul %0, %1, %cst {dimension_numbers = #tpu.dot_dimension_numbers<[1], [0], [0], [1], [0, 0, 1, 1], [], []>} : vector<512x32xf32>, vector<32x32xf32>, vector<512x32xf32> -> vector<512x32xf32>
    %c0_3 = arith.constant 0 : index
    %c0_4 = arith.constant 0 : index
    %3 = vector.load %arg4[%c0_3, %c0_4] : memref<1x32xf32, #tpu.memory_space<vmem>>, vector<1x32xf32>
    %4 = vector.broadcast %3 : vector<1x32xf32> to vector<512x32xf32>
    %5 = arith.addf %2, %4 : vector<512x32xf32>
    %c0_5 = arith.constant 0 : index
    %c0_6 = arith.constant 0 : index
    %6 = vector.load %arg5[%c0_5, %c0_6] : memref<512x32xf32, #tpu.memory_space<vmem>>, vector<512x32xf32>
    tpu.vector_store %arg5[%c0_5, %c0_6], %5 {strides = array<i32>} : memref<512x32xf32, #tpu.memory_space<vmem>>, vector<512x32xf32>,
    return
  }
  func.func @transform_0(%arg0: i32, %arg1: i32) -> (i32, i32) {
    %c0_i32 = arith.constant 0 : i32
    %c0_i32_0 = arith.constant 0 : i32
    return %arg1, %c0_i32 : i32, i32
  }
  func.func @transform_1(%arg0: i32, %arg1: i32) -> (i32, i32) {
    %c0_i32 = arith.constant 0 : i32
    %c0_i32_0 = arith.constant 0 : i32
    return %c0_i32, %arg0 : i32, i32
  }
  func.func @transform_2(%arg0: i32, %arg1: i32) -> (i32, i32) {
    %c0_i32 = arith.constant 0 : i32
    %c0_i32_0 = arith.constant 0 : i32
    return %c0_i32, %arg0 : i32, i32
  }
  func.func @transform_3(%arg0: i32, %arg1: i32) -> (i32, i32) {
    %c0_i32 = arith.constant 0 : i32
    return %arg1, %arg0 : i32, i32
  }
}

</mosaic_0001>

<bundles_post_ra>
// kernel: causal_self_attention_forward.3
= control target key start
LH: loop header
LB: loop body
LE: loop exit
PB: predicated region body
PF: predicated region fallthrough
CT: control target
= control target key end

     0   :  { %vm89_vm0 = vcmask 261120   ;;  %vm667_vm1 = vcmask 785408   ;;  %s1598_s1 = inlined_call_operand.vmem [shape: f32[32,96], index: 1, kind: input, shape index: {}]   ;;  %s1599_s0 = inlined_call_operand.vmem [shape: f32[512,32], index: 0, kind: input, shape index: {}]   ;;  %s1600_s2 = inlined_call_operand.vmem [shape: f32[1,96], index: 2, kind: input, shape index: {}]   ;;  %s1601_s3 = inlined_call_operand.vmem [shape: f32[512,96], index: 3, kind: output, shape index: {}]  }
   0x1   :  { %v78_v0 = vld [vmem:[%s1598_s1] sm:$0xff]  ;;  %v79_v1 = vld [vmem:[%s1598_s1 + $0x8] sm:$0xff]  ;;  %v80_v2 = vld [vmem:[%s1598_s1 + $0x10] sm:$0xff] }
   0x2   :  { %v973_v3 = vpack.c.bf16 %v79_v1, %v78_v0  ;;  %v81_v4 = vld [vmem:[%s1598_s1 + $0x18] sm:$0xff]  ;;  %v14_v5 = vld [vmem:[%s1599_s0] sm:$0xff]  ;;  %v15_v8 = vld [vmem:[%s1599_s0 + $0x8] sm:$0xff] }
   0x3   :  { %v46_v6 = vld [vmem:[%s1599_s0 + $0x100] sm:$0xff]  ;;  %v977_v7 = vpack.c.bf16 %v81_v4, %v80_v2  ;;  %877 = vmatprep.mubr.msk.f32.mxu0 %vm89_vm0, %v14_v5  ;;  %v47_v9 = vld [vmem:[%s1599_s0 + $0x108] sm:$0xff]  ;;  %v16_v10 = vld [vmem:[%s1599_s0 + $0x10] sm:$0xff] }
   0x4   :  { %925 = vmatprep.mubr.msk.f32.mxu1 %vm89_vm0, %v46_v6  ;;  %974 = vmatprep.subr.bf16.mxu0 %v973_v3  ;;  %v48_v11 = vld [vmem:[%s1599_s0 + $0x110] sm:$0xff]  ;;  %v17_v12 = vld [vmem:[%s1599_s0 + $0x18] sm:$0xff]  ;;  %v18_v14 = vld [vmem:[%s1599_s0 + $0x20] sm:$0xff] }
   0x5   :  { %981 = vmatprep.subr.bf16.mxu1 %v973_v3  ;;  %976 = vmatpush3.bf16.msra.mxu0 %v973_v3  ;;  %v49_v13 = vld [vmem:[%s1599_s0 + $0x118] sm:$0xff]  ;;  %v50_v15 = vld [vmem:[%s1599_s0 + $0x120] sm:$0xff]  ;;  %v19_v16 = vld [vmem:[%s1599_s0 + $0x28] sm:$0xff] }
   0x6   :  { %983 = vmatpush3.bf16.msra.mxu1 %v973_v3  ;;  %978 = vmatprep.subr.bf16.mxu0 %v977_v7  ;;  %v51_v17 = vld [vmem:[%s1599_s0 + $0x128] sm:$0xff]  ;;  %v20_v18 = vld [vmem:[%s1599_s0 + $0x30] sm:$0xff]  ;;  %v21_v20 = vld [vmem:[%s1599_s0 + $0x38] sm:$0xff] }
   0x7   :  { %982 = vmatprep.subr.bf16.mxu1 %v977_v7  ;;  %v52_v19 = vld [vmem:[%s1599_s0 + $0x130] sm:$0xff]  ;;  %v53_v21 = vld [vmem:[%s1599_s0 + $0x138] sm:$0xff]  ;;  %v22_v22 = vld [vmem:[%s1599_s0 + $0x40] sm:$0xff] }
   0x8   :  { %v54_v23 = vld [vmem:[%s1599_s0 + $0x140] sm:$0xff]  ;;  %v23_v24 = vld [vmem:[%s1599_s0 + $0x48] sm:$0xff]  ;;  %v24_v26 = vld [vmem:[%s1599_s0 + $0x50] sm:$0xff] }
   0x9   :  { %980 = vmatpush3.bf16.msra.mxu0 %v977_v7  ;;  %v55_v25 = vld [vmem:[%s1599_s0 + $0x148] sm:$0xff]  ;;  %v56_v27 = vld [vmem:[%s1599_s0 + $0x150] sm:$0xff]  ;;  %v25_v28 = vld [vmem:[%s1599_s0 + $0x58] sm:$0xff] }
   0xa   :  { %984 = vmatpush3.bf16.msra.mxu1 %v977_v7  ;;  %v57_v29 = vld [vmem:[%s1599_s0 + $0x158] sm:$0xff]  ;;  %v26_v30 = vld [vmem:[%s1599_s0 + $0x60] sm:$0xff]  ;;  %v27_v32 = vld [vmem:[%s1599_s0 + $0x68] sm:$0xff] }
   0xb   :  { %v58_v31 = vld [vmem:[%s1599_s0 + $0x160] sm:$0xff]  ;;  %v59_v33 = vld [vmem:[%s1599_s0 + $0x168] sm:$0xff]  ;;  %v28_v34 = vld [vmem:[%s1599_s0 + $0x70] sm:$0xff] }
   0xc   :  { %878 = vmatmul.mubr.msk.f32.vlgmr.msra.gmra.mrb[0].mxu0 %vm89_vm0, %v15_v8  ;;  %v60_v35 = vld [vmem:[%s1599_s0 + $0x170] sm:$0xff]  ;;  %v29_v36 = vld [vmem:[%s1599_s0 + $0x78] sm:$0xff]  ;;  %v30_v38 = vld [vmem:[%s1599_s0 + $0x80] sm:$0xff] }
   0xd   :  { %926 = vmatmul.mubr.msk.f32.vlgmr.msra.gmra.mrb[0].mxu1 %vm89_vm0, %v47_v9  ;;  %880 = vmatprep.mubr.msk.f32.mxu0 %vm89_vm0, %v16_v10  ;;  %v61_v37 = vld [vmem:[%s1599_s0 + $0x178] sm:$0xff]  ;;  %v62_v39 = vld [vmem:[%s1599_s0 + $0x180] sm:$0xff]  ;;  %v31_v40 = vld [vmem:[%s1599_s0 + $0x88] sm:$0xff] }
   0xe   :  { %928 = vmatprep.mubr.msk.f32.mxu1 %vm89_vm0, %v48_v11  ;;  %v63_v41 = vld [vmem:[%s1599_s0 + $0x188] sm:$0xff]  ;;  %v32_v42 = vld [vmem:[%s1599_s0 + $0x90] sm:$0xff]  ;;  %v33_v44 = vld [vmem:[%s1599_s0 + $0x98] sm:$0xff] }
   0xf   :  { %v64_v43 = vld [vmem:[%s1599_s0 + $0x190] sm:$0xff]  ;;  %v65_v45 = vld [vmem:[%s1599_s0 + $0x198] sm:$0xff]  ;;  %v34_v46 = vld [vmem:[%s1599_s0 + $0xa0] sm:$0xff] }
  0x10   :  { %881 = vmatmul.mubr.msk.f32.gmra.mrb[2].mxu0 %vm89_vm0, %v17_v12  ;;  %v66_v47 = vld [vmem:[%s1599_s0 + $0x1a0] sm:$0xff]  ;;  %v35_v48 = vld [vmem:[%s1599_s0 + $0xa8] sm:$0xff]  ;;  %v36_v50 = vld [vmem:[%s1599_s0 + $0xb0] sm:$0xff] }
  0x11   :  { %929 = vmatmul.mubr.msk.f32.gmra.mrb[2].mxu1 %vm89_vm0, %v49_v13  ;;  %883 = vmatprep.mubr.msk.f32.mxu0 %vm89_vm0, %v18_v14  ;;  %v67_v49 = vld [vmem:[%s1599_s0 + $0x1a8] sm:$0xff]  ;;  %v68_v51 = vld [vmem:[%s1599_s0 + $0x1b0] sm:$0xff]  ;;  %v37_v52 = vld [vmem:[%s1599_s0 + $0xb8] sm:$0xff] }
  0x12   :  { %931 = vmatprep.mubr.msk.f32.mxu1 %vm89_vm0, %v50_v15  ;;  %v69_v53 = vld [vmem:[%s1599_s0 + $0x1b8] sm:$0xff]  ;;  %v38_v54 = vld [vmem:[%s1599_s0 + $0xc0] sm:$0xff]  ;;  %v39_v56 = vld [vmem:[%s1599_s0 + $0xc8] sm:$0xff] }
  0x13   :  { %v70_v55 = vld [vmem:[%s1599_s0 + $0x1c0] sm:$0xff]  ;;  %v71_v57 = vld [vmem:[%s1599_s0 + $0x1c8] sm:$0xff]  ;;  %v40_v58 = vld [vmem:[%s1599_s0 + $0xd0] sm:$0xff] }
  0x14   :  { %884 = vmatmul.mubr.msk.f32.gmra.mrb[4].mxu0 %vm89_vm0, %v19_v16  ;;  %v72_v59 = vld [vmem:[%s1599_s0 + $0x1d0] sm:$0xff]  ;;  %v41_v60 = vld [vmem:[%s1599_s0 + $0xd8] sm:$0xff]  ;;  %v42_v62 = vld [vmem:[%s1599_s0 + $0xe0] sm:$0xff] }
  0x15   :  { %932 = vmatmul.mubr.msk.f32.gmra.mrb[4].mxu1 %vm89_vm0, %v51_v17  ;;  %886 = vmatprep.mubr.msk.f32.mxu0 %vm89_vm0, %v20_v18  ;;  %v73_v61 = vld [vmem:[%s1599_s0 + $0x1d8] sm:$0xff]  ;;  %v74_v63 = vld [vmem:[%s1599_s0 + $0x1e0] sm:$0xff]  ;;  %v43_v0 = vld [vmem:[%s1599_s0 + $0xe8] sm:$0xff] }
  0x16   :  { %934 = vmatprep.mubr.msk.f32.mxu1 %vm89_vm0, %v52_v19  ;;  %v75_v1 = vld [vmem:[%s1599_s0 + $0x1e8] sm:$0xff]  ;;  %v44_v2 = vld [vmem:[%s1599_s0 + $0xf0] sm:$0xff]  ;;  %v45_v4 = vld [vmem:[%s1599_s0 + $0xf8] sm:$0xff] }
  0x17   :  { %v76_v3 = vld [vmem:[%s1599_s0 + $0x1f0] sm:$0xff]  ;;  %v77_v5 = vld [vmem:[%s1599_s0 + $0x1f8] sm:$0xff]  ;;  %v1276_v6 = vld [vmem:[%s1600_s2] ss:$0 sm:$0xff] }
  0x18   :  { %887 = vmatmul.mubr.msk.f32.gmra.mrb[6].mxu0 %vm89_vm0, %v21_v20 }
  0x19   :  { %935 = vmatmul.mubr.msk.f32.gmra.mrb[6].mxu1 %vm89_vm0, %v53_v21  ;;  %889 = vmatprep.mubr.msk.f32.mxu0 %vm89_vm0, %v22_v22 }
  0x1a   :  { %937 = vmatprep.mubr.msk.f32.mxu1 %vm89_vm0, %v54_v23 }
  0x1c   :  { %890 = vmatmul.mubr.msk.f32.gmra.mrb[8].mxu0 %vm89_vm0, %v23_v24 }
  0x1d   :  { %938 = vmatmul.mubr.msk.f32.gmra.mrb[8].mxu1 %vm89_vm0, %v55_v25  ;;  %892 = vmatprep.mubr.msk.f32.mxu0 %vm89_vm0, %v24_v26 }
  0x1e   :  { %940 = vmatprep.mubr.msk.f32.mxu1 %vm89_vm0, %v56_v27 }
  0x20   :  { %893 = vmatmul.mubr.msk.f32.gmra.mrb[10].mxu0 %vm89_vm0, %v25_v28 }
  0x21   :  { %941 = vmatmul.mubr.msk.f32.gmra.mrb[10].mxu1 %vm89_vm0, %v57_v29  ;;  %895 = vmatprep.mubr.msk.f32.mxu0 %vm89_vm0, %v26_v30 }
  0x22   :  { %943 = vmatprep.mubr.msk.f32.mxu1 %vm89_vm0, %v58_v31 }
  0x24   :  { %896 = vmatmul.mubr.msk.f32.gmra.mrb[12].mxu0 %vm89_vm0, %v27_v32 }
  0x25   :  { %944 = vmatmul.mubr.msk.f32.gmra.mrb[12].mxu1 %vm89_vm0, %v59_v33  ;;  %898 = vmatprep.mubr.msk.f32.mxu0 %vm89_vm0, %v28_v34 }
  0x26   :  { %946 = vmatprep.mubr.msk.f32.mxu1 %vm89_vm0, %v60_v35 }
  0x28   :  { %899 = vmatmul.mubr.msk.f32.gmra.mrb[14].mxu0 %vm89_vm0, %v29_v36 }
  0x29   :  { %947 = vmatmul.mubr.msk.f32.gmra.mrb[14].mxu1 %vm89_vm0, %v61_v37  ;;  %901 = vmatprep.mubr.msk.f32.mxu0 %vm89_vm0, %v30_v38 }
  0x2a   :  { %949 = vmatprep.mubr.msk.f32.mxu1 %vm89_vm0, %v62_v39 }
  0x2c   :  { %902 = vmatmul.mubr.msk.f32.gmra.mrb[16].mxu0 %vm89_vm0, %v31_v40 }
  0x2d   :  { %950 = vmatmul.mubr.msk.f32.gmra.mrb[16].mxu1 %vm89_vm0, %v63_v41  ;;  %904 = vmatprep.mubr.msk.f32.mxu0 %vm89_vm0, %v32_v42 }
  0x2e   :  { %952 = vmatprep.mubr.msk.f32.mxu1 %vm89_vm0, %v64_v43 }
  0x30   :  { %905 = vmatmul.mubr.msk.f32.gmra.mrb[18].mxu0 %vm89_vm0, %v33_v44 }
  0x31   :  { %953 = vmatmul.mubr.msk.f32.gmra.mrb[18].mxu1 %vm89_vm0, %v65_v45  ;;  %907 = vmatprep.mubr.msk.f32.mxu0 %vm89_vm0, %v34_v46 }
  0x32   :  { %955 = vmatprep.mubr.msk.f32.mxu1 %vm89_vm0, %v66_v47 }
  0x34   :  { %908 = vmatmul.mubr.msk.f32.gmra.mrb[20].mxu0 %vm89_vm0, %v35_v48 }
  0x35   :  { %956 = vmatmul.mubr.msk.f32.gmra.mrb[20].mxu1 %vm89_vm0, %v67_v49  ;;  %910 = vmatprep.mubr.msk.f32.mxu0 %vm89_vm0, %v36_v50 }
  0x36   :  { %958 = vmatprep.mubr.msk.f32.mxu1 %vm89_vm0, %v68_v51 }
  0x38   :  { %911 = vmatmul.mubr.msk.f32.gmra.mrb[22].mxu0 %vm89_vm0, %v37_v52 }
  0x39   :  { %959 = vmatmul.mubr.msk.f32.gmra.mrb[22].mxu1 %vm89_vm0, %v69_v53  ;;  %913 = vmatprep.mubr.msk.f32.mxu0 %vm89_vm0, %v38_v54 }
  0x3a   :  { %961 = vmatprep.mubr.msk.f32.mxu1 %vm89_vm0, %v70_v55 }
  0x3c   :  { %914 = vmatmul.mubr.msk.f32.gmra.mrb[24].mxu0 %vm89_vm0, %v39_v56 }
  0x3d   :  { %962 = vmatmul.mubr.msk.f32.gmra.mrb[24].mxu1 %vm89_vm0, %v71_v57  ;;  %916 = vmatprep.mubr.msk.f32.mxu0 %vm89_vm0, %v40_v58 }
  0x3e   :  { %964 = vmatprep.mubr.msk.f32.mxu1 %vm89_vm0, %v72_v59 }
  0x40   :  { %917 = vmatmul.mubr.msk.f32.gmra.mrb[26].mxu0 %vm89_vm0, %v41_v60 }
  0x41   :  { %965 = vmatmul.mubr.msk.f32.gmra.mrb[26].mxu1 %vm89_vm0, %v73_v61  ;;  %919 = vmatprep.mubr.msk.f32.mxu0 %vm89_vm0, %v42_v62 }
  0x42   :  { %967 = vmatprep.mubr.msk.f32.mxu1 %vm89_vm0, %v74_v63 }
  0x44   :  { %920 = vmatmul.mubr.msk.f32.gmra.mrb[28].mxu0 %vm89_vm0, %v43_v0 }
  0x45   :  { %968 = vmatmul.mubr.msk.f32.gmra.mrb[28].mxu1 %vm89_vm0, %v75_v1  ;;  %922 = vmatprep.mubr.msk.f32.mxu0 %vm89_vm0, %v44_v2 }
  0x46   :  { %970 = vmatprep.mubr.msk.f32.mxu1 %vm89_vm0, %v76_v3 }
  0x48   :  { %923 = vmatmul.mubr.msk.f32.gmra.mrb[30].mxu0 %vm89_vm0, %v45_v4 }
  0x49   :  { %971 = vmatmul.mubr.msk.f32.gmra.mrb[30].mxu1 %vm89_vm0, %v77_v5 }
  0xdf   :  { %v879_v7 = vpop.f32.mrb[0].mxu0 }
  0xe0   :  { %v927_v8 = vpop.f32.mrb[0].mxu1  ;;  %v354_v9 = vadd.f32 %v879_v7, %v1276_v6  ;;  %v348_v11 = vpop.f32.mrb[1].mxu0 }
  0xe1   :  { %v514_v10 = vadd.f32 %v927_v8, %v1276_v6  ;;  %v508_v12 = vpop.f32.mrb[1].mxu1  ;;  %v349_v13 = vadd.f32 %v1276_v6, %v348_v11 }
  0xe2   :  { %v509_v14 = vadd.f32 %v1276_v6, %v508_v12  ;;  %669 = vst.msk [vmem:[%s1601_s3 + $0x8] sm:$0xff] %vm667_vm1, %v354_v9 }
  0xe3   :  { %701 = vst.msk [vmem:[%s1601_s3 + $0x108] sm:$0xff] %vm667_vm1, %v514_v10  ;;  %668 = vst.msk [vmem:[%s1601_s3] sm:$0xff] %vm667_vm1, %v349_v13  ;;  %v882_v15 = vpop.f32.mrb[2].mxu0 }
  0xe4   :  { %700 = vst.msk [vmem:[%s1601_s3 + $0x100] sm:$0xff] %vm667_vm1, %v509_v14  ;;  %v930_v16 = vpop.f32.mrb[2].mxu1  ;;  %v364_v17 = vadd.f32 %v882_v15, %v1276_v6  ;;  %v358_v19 = vpop.f32.mrb[3].mxu0 }
  0xe5   :  { %v524_v18 = vadd.f32 %v930_v16, %v1276_v6  ;;  %v518_v20 = vpop.f32.mrb[3].mxu1  ;;  %v359_v21 = vadd.f32 %v1276_v6, %v358_v19 }
  0xe6   :  { %v519_v22 = vadd.f32 %v1276_v6, %v518_v20  ;;  %671 = vst.msk [vmem:[%s1601_s3 + $0x18] sm:$0xff] %vm667_vm1, %v364_v17 }
  0xe7   :  { %703 = vst.msk [vmem:[%s1601_s3 + $0x118] sm:$0xff] %vm667_vm1, %v524_v18  ;;  %670 = vst.msk [vmem:[%s1601_s3 + $0x10] sm:$0xff] %vm667_vm1, %v359_v21  ;;  %v885_v23 = vpop.f32.mrb[4].mxu0 }
  0xe8   :  { %702 = vst.msk [vmem:[%s1601_s3 + $0x110] sm:$0xff] %vm667_vm1, %v519_v22  ;;  %v933_v24 = vpop.f32.mrb[4].mxu1  ;;  %v374_v25 = vadd.f32 %v885_v23, %v1276_v6  ;;  %v368_v27 = vpop.f32.mrb[5].mxu0 }
  0xe9   :  { %v534_v26 = vadd.f32 %v933_v24, %v1276_v6  ;;  %v528_v28 = vpop.f32.mrb[5].mxu1  ;;  %v369_v29 = vadd.f32 %v1276_v6, %v368_v27 }
  0xea   :  { %v529_v30 = vadd.f32 %v1276_v6, %v528_v28  ;;  %673 = vst.msk [vmem:[%s1601_s3 + $0x28] sm:$0xff] %vm667_vm1, %v374_v25 }
  0xeb   :  { %705 = vst.msk [vmem:[%s1601_s3 + $0x128] sm:$0xff] %vm667_vm1, %v534_v26  ;;  %672 = vst.msk [vmem:[%s1601_s3 + $0x20] sm:$0xff] %vm667_vm1, %v369_v29  ;;  %v888_v31 = vpop.f32.mrb[6].mxu0 }
  0xec   :  { %704 = vst.msk [vmem:[%s1601_s3 + $0x120] sm:$0xff] %vm667_vm1, %v529_v30  ;;  %v936_v32 = vpop.f32.mrb[6].mxu1  ;;  %v384_v33 = vadd.f32 %v888_v31, %v1276_v6  ;;  %v378_v35 = vpop.f32.mrb[7].mxu0 }
  0xed   :  { %v544_v34 = vadd.f32 %v936_v32, %v1276_v6  ;;  %v538_v36 = vpop.f32.mrb[7].mxu1  ;;  %v379_v37 = vadd.f32 %v1276_v6, %v378_v35 }
  0xee   :  { %v539_v38 = vadd.f32 %v1276_v6, %v538_v36  ;;  %675 = vst.msk [vmem:[%s1601_s3 + $0x38] sm:$0xff] %vm667_vm1, %v384_v33 }
  0xef   :  { %707 = vst.msk [vmem:[%s1601_s3 + $0x138] sm:$0xff] %vm667_vm1, %v544_v34  ;;  %674 = vst.msk [vmem:[%s1601_s3 + $0x30] sm:$0xff] %vm667_vm1, %v379_v37  ;;  %v891_v39 = vpop.f32.mrb[8].mxu0 }
  0xf0   :  { %706 = vst.msk [vmem:[%s1601_s3 + $0x130] sm:$0xff] %vm667_vm1, %v539_v38  ;;  %v939_v40 = vpop.f32.mrb[8].mxu1  ;;  %v394_v41 = vadd.f32 %v891_v39, %v1276_v6  ;;  %v388_v43 = vpop.f32.mrb[9].mxu0 }
  0xf1   :  { %v554_v42 = vadd.f32 %v939_v40, %v1276_v6  ;;  %v548_v44 = vpop.f32.mrb[9].mxu1  ;;  %v389_v45 = vadd.f32 %v1276_v6, %v388_v43 }
  0xf2   :  { %v549_v46 = vadd.f32 %v1276_v6, %v548_v44  ;;  %677 = vst.msk [vmem:[%s1601_s3 + $0x48] sm:$0xff] %vm667_vm1, %v394_v41 }
  0xf3   :  { %709 = vst.msk [vmem:[%s1601_s3 + $0x148] sm:$0xff] %vm667_vm1, %v554_v42  ;;  %676 = vst.msk [vmem:[%s1601_s3 + $0x40] sm:$0xff] %vm667_vm1, %v389_v45  ;;  %v894_v47 = vpop.f32.mrb[10].mxu0 }
  0xf4   :  { %708 = vst.msk [vmem:[%s1601_s3 + $0x140] sm:$0xff] %vm667_vm1, %v549_v46  ;;  %v942_v48 = vpop.f32.mrb[10].mxu1  ;;  %v404_v49 = vadd.f32 %v894_v47, %v1276_v6  ;;  %v398_v51 = vpop.f32.mrb[11].mxu0 }
  0xf5   :  { %v564_v50 = vadd.f32 %v942_v48, %v1276_v6  ;;  %v558_v52 = vpop.f32.mrb[11].mxu1  ;;  %v399_v53 = vadd.f32 %v1276_v6, %v398_v51 }
  0xf6   :  { %v559_v54 = vadd.f32 %v1276_v6, %v558_v52  ;;  %679 = vst.msk [vmem:[%s1601_s3 + $0x58] sm:$0xff] %vm667_vm1, %v404_v49 }
  0xf7   :  { %711 = vst.msk [vmem:[%s1601_s3 + $0x158] sm:$0xff] %vm667_vm1, %v564_v50  ;;  %678 = vst.msk [vmem:[%s1601_s3 + $0x50] sm:$0xff] %vm667_vm1, %v399_v53  ;;  %v897_v55 = vpop.f32.mrb[12].mxu0 }
  0xf8   :  { %710 = vst.msk [vmem:[%s1601_s3 + $0x150] sm:$0xff] %vm667_vm1, %v559_v54  ;;  %v945_v56 = vpop.f32.mrb[12].mxu1  ;;  %v414_v57 = vadd.f32 %v897_v55, %v1276_v6  ;;  %v408_v59 = vpop.f32.mrb[13].mxu0 }
  0xf9   :  { %v574_v58 = vadd.f32 %v945_v56, %v1276_v6  ;;  %v568_v60 = vpop.f32.mrb[13].mxu1  ;;  %v409_v61 = vadd.f32 %v1276_v6, %v408_v59 }
  0xfa   :  { %v569_v62 = vadd.f32 %v1276_v6, %v568_v60  ;;  %681 = vst.msk [vmem:[%s1601_s3 + $0x68] sm:$0xff] %vm667_vm1, %v414_v57 }
  0xfb   :  { %713 = vst.msk [vmem:[%s1601_s3 + $0x168] sm:$0xff] %vm667_vm1, %v574_v58  ;;  %680 = vst.msk [vmem:[%s1601_s3 + $0x60] sm:$0xff] %vm667_vm1, %v409_v61  ;;  %v900_v63 = vpop.f32.mrb[14].mxu0 }
  0xfc   :  { %712 = vst.msk [vmem:[%s1601_s3 + $0x160] sm:$0xff] %vm667_vm1, %v569_v62  ;;  %v948_v0 = vpop.f32.mrb[14].mxu1  ;;  %v424_v1 = vadd.f32 %v900_v63, %v1276_v6  ;;  %v418_v3 = vpop.f32.mrb[15].mxu0 }
  0xfd   :  { %v584_v2 = vadd.f32 %v948_v0, %v1276_v6  ;;  %v578_v4 = vpop.f32.mrb[15].mxu1  ;;  %v419_v5 = vadd.f32 %v1276_v6, %v418_v3 }
  0xfe   :  { %v579_v7 = vadd.f32 %v1276_v6, %v578_v4  ;;  %683 = vst.msk [vmem:[%s1601_s3 + $0x78] sm:$0xff] %vm667_vm1, %v424_v1 }
  0xff   :  { %715 = vst.msk [vmem:[%s1601_s3 + $0x178] sm:$0xff] %vm667_vm1, %v584_v2  ;;  %682 = vst.msk [vmem:[%s1601_s3 + $0x70] sm:$0xff] %vm667_vm1, %v419_v5  ;;  %v903_v8 = vpop.f32.mrb[16].mxu0 }
 0x100   :  { %714 = vst.msk [vmem:[%s1601_s3 + $0x170] sm:$0xff] %vm667_vm1, %v579_v7  ;;  %v951_v9 = vpop.f32.mrb[16].mxu1  ;;  %v434_v10 = vadd.f32 %v903_v8, %v1276_v6  ;;  %v428_v12 = vpop.f32.mrb[17].mxu0 }
 0x101   :  { %v594_v11 = vadd.f32 %v951_v9, %v1276_v6  ;;  %v588_v13 = vpop.f32.mrb[17].mxu1  ;;  %v429_v14 = vadd.f32 %v1276_v6, %v428_v12 }
 0x102   :  { %v589_v15 = vadd.f32 %v1276_v6, %v588_v13  ;;  %685 = vst.msk [vmem:[%s1601_s3 + $0x88] sm:$0xff] %vm667_vm1, %v434_v10 }
 0x103   :  { %717 = vst.msk [vmem:[%s1601_s3 + $0x188] sm:$0xff] %vm667_vm1, %v594_v11  ;;  %684 = vst.msk [vmem:[%s1601_s3 + $0x80] sm:$0xff] %vm667_vm1, %v429_v14  ;;  %v906_v16 = vpop.f32.mrb[18].mxu0 }
 0x104   :  { %716 = vst.msk [vmem:[%s1601_s3 + $0x180] sm:$0xff] %vm667_vm1, %v589_v15  ;;  %v954_v17 = vpop.f32.mrb[18].mxu1  ;;  %v444_v18 = vadd.f32 %v906_v16, %v1276_v6  ;;  %v438_v20 = vpop.f32.mrb[19].mxu0 }
 0x105   :  { %v604_v19 = vadd.f32 %v954_v17, %v1276_v6  ;;  %v598_v21 = vpop.f32.mrb[19].mxu1  ;;  %v439_v22 = vadd.f32 %v1276_v6, %v438_v20 }
 0x106   :  { %v599_v23 = vadd.f32 %v1276_v6, %v598_v21  ;;  %687 = vst.msk [vmem:[%s1601_s3 + $0x98] sm:$0xff] %vm667_vm1, %v444_v18 }
 0x107   :  { %719 = vst.msk [vmem:[%s1601_s3 + $0x198] sm:$0xff] %vm667_vm1, %v604_v19  ;;  %686 = vst.msk [vmem:[%s1601_s3 + $0x90] sm:$0xff] %vm667_vm1, %v439_v22  ;;  %v909_v24 = vpop.f32.mrb[20].mxu0 }
 0x108   :  { %718 = vst.msk [vmem:[%s1601_s3 + $0x190] sm:$0xff] %vm667_vm1, %v599_v23  ;;  %v957_v25 = vpop.f32.mrb[20].mxu1  ;;  %v454_v26 = vadd.f32 %v909_v24, %v1276_v6  ;;  %v448_v28 = vpop.f32.mrb[21].mxu0 }
 0x109   :  { %v614_v27 = vadd.f32 %v957_v25, %v1276_v6  ;;  %v608_v29 = vpop.f32.mrb[21].mxu1  ;;  %v449_v30 = vadd.f32 %v1276_v6, %v448_v28 }
 0x10a   :  { %v609_v31 = vadd.f32 %v1276_v6, %v608_v29  ;;  %689 = vst.msk [vmem:[%s1601_s3 + $0xa8] sm:$0xff] %vm667_vm1, %v454_v26 }
 0x10b   :  { %721 = vst.msk [vmem:[%s1601_s3 + $0x1a8] sm:$0xff] %vm667_vm1, %v614_v27  ;;  %688 = vst.msk [vmem:[%s1601_s3 + $0xa0] sm:$0xff] %vm667_vm1, %v449_v30  ;;  %v912_v32 = vpop.f32.mrb[22].mxu0 }
 0x10c   :  { %720 = vst.msk [vmem:[%s1601_s3 + $0x1a0] sm:$0xff] %vm667_vm1, %v609_v31  ;;  %v960_v33 = vpop.f32.mrb[22].mxu1  ;;  %v464_v34 = vadd.f32 %v912_v32, %v1276_v6  ;;  %v458_v36 = vpop.f32.mrb[23].mxu0 }
 0x10d   :  { %v624_v35 = vadd.f32 %v960_v33, %v1276_v6  ;;  %v618_v37 = vpop.f32.mrb[23].mxu1  ;;  %v459_v38 = vadd.f32 %v1276_v6, %v458_v36 }
 0x10e   :  { %v619_v39 = vadd.f32 %v1276_v6, %v618_v37  ;;  %691 = vst.msk [vmem:[%s1601_s3 + $0xb8] sm:$0xff] %vm667_vm1, %v464_v34 }
 0x10f   :  { %723 = vst.msk [vmem:[%s1601_s3 + $0x1b8] sm:$0xff] %vm667_vm1, %v624_v35  ;;  %690 = vst.msk [vmem:[%s1601_s3 + $0xb0] sm:$0xff] %vm667_vm1, %v459_v38  ;;  %v915_v40 = vpop.f32.mrb[24].mxu0 }
 0x110   :  { %722 = vst.msk [vmem:[%s1601_s3 + $0x1b0] sm:$0xff] %vm667_vm1, %v619_v39  ;;  %v963_v41 = vpop.f32.mrb[24].mxu1  ;;  %v474_v42 = vadd.f32 %v915_v40, %v1276_v6  ;;  %v468_v44 = vpop.f32.mrb[25].mxu0 }
 0x111   :  { %v634_v43 = vadd.f32 %v963_v41, %v1276_v6  ;;  %v628_v45 = vpop.f32.mrb[25].mxu1  ;;  %v469_v46 = vadd.f32 %v1276_v6, %v468_v44 }
 0x112   :  { %v629_v47 = vadd.f32 %v1276_v6, %v628_v45  ;;  %693 = vst.msk [vmem:[%s1601_s3 + $0xc8] sm:$0xff] %vm667_vm1, %v474_v42 }
 0x113   :  { %725 = vst.msk [vmem:[%s1601_s3 + $0x1c8] sm:$0xff] %vm667_vm1, %v634_v43  ;;  %692 = vst.msk [vmem:[%s1601_s3 + $0xc0] sm:$0xff] %vm667_vm1, %v469_v46  ;;  %v918_v48 = vpop.f32.mrb[26].mxu0 }
 0x114   :  { %724 = vst.msk [vmem:[%s1601_s3 + $0x1c0] sm:$0xff] %vm667_vm1, %v629_v47  ;;  %v966_v49 = vpop.f32.mrb[26].mxu1  ;;  %v484_v50 = vadd.f32 %v918_v48, %v1276_v6  ;;  %v478_v52 = vpop.f32.mrb[27].mxu0 }
 0x115   :  { %v644_v51 = vadd.f32 %v966_v49, %v1276_v6  ;;  %v638_v53 = vpop.f32.mrb[27].mxu1  ;;  %v479_v54 = vadd.f32 %v1276_v6, %v478_v52 }
 0x116   :  { %v639_v55 = vadd.f32 %v1276_v6, %v638_v53  ;;  %695 = vst.msk [vmem:[%s1601_s3 + $0xd8] sm:$0xff] %vm667_vm1, %v484_v50 }
 0x117   :  { %727 = vst.msk [vmem:[%s1601_s3 + $0x1d8] sm:$0xff] %vm667_vm1, %v644_v51  ;;  %694 = vst.msk [vmem:[%s1601_s3 + $0xd0] sm:$0xff] %vm667_vm1, %v479_v54  ;;  %v921_v56 = vpop.f32.mrb[28].mxu0 }
 0x118   :  { %726 = vst.msk [vmem:[%s1601_s3 + $0x1d0] sm:$0xff] %vm667_vm1, %v639_v55  ;;  %v969_v57 = vpop.f32.mrb[28].mxu1  ;;  %v494_v58 = vadd.f32 %v921_v56, %v1276_v6  ;;  %v488_v60 = vpop.f32.mrb[29].mxu0 }
 0x119   :  { %v654_v59 = vadd.f32 %v969_v57, %v1276_v6  ;;  %v648_v61 = vpop.f32.mrb[29].mxu1  ;;  %v489_v62 = vadd.f32 %v1276_v6, %v488_v60 }
 0x11a   :  { %v649_v63 = vadd.f32 %v1276_v6, %v648_v61  ;;  %697 = vst.msk [vmem:[%s1601_s3 + $0xe8] sm:$0xff] %vm667_vm1, %v494_v58 }
 0x11b   :  { %729 = vst.msk [vmem:[%s1601_s3 + $0x1e8] sm:$0xff] %vm667_vm1, %v654_v59  ;;  %696 = vst.msk [vmem:[%s1601_s3 + $0xe0] sm:$0xff] %vm667_vm1, %v489_v62  ;;  %v924_v0 = vpop.f32.mrb[30].mxu0 }
 0x11c   :  { %728 = vst.msk [vmem:[%s1601_s3 + $0x1e0] sm:$0xff] %vm667_vm1, %v649_v63  ;;  %v972_v1 = vpop.f32.mrb[30].mxu1  ;;  %v504_v2 = vadd.f32 %v924_v0, %v1276_v6  ;;  %v498_v4 = vpop.f32.mrb[31].mxu0 }
 0x11d   :  { %v664_v3 = vadd.f32 %v972_v1, %v1276_v6  ;;  %v658_v5 = vpop.f32.mrb[31].mxu1  ;;  %v499_v7 = vadd.f32 %v1276_v6, %v498_v4 }
 0x11e   :  { %v659_v8 = vadd.f32 %v1276_v6, %v658_v5  ;;  %699 = vst.msk [vmem:[%s1601_s3 + $0xf8] sm:$0xff] %vm667_vm1, %v504_v2 }
 0x11f   :  { %731 = vst.msk [vmem:[%s1601_s3 + $0x1f8] sm:$0xff] %vm667_vm1, %v664_v3  ;;  %698 = vst.msk [vmem:[%s1601_s3 + $0xf0] sm:$0xff] %vm667_vm1, %v499_v7 }
 0x120   :  { %730 = vst.msk [vmem:[%s1601_s3 + $0x1f0] sm:$0xff] %vm667_vm1, %v659_v8 }

// kernel: causal_self_attention_forward.5
= control target key start
LH: loop header
LB: loop body
LE: loop exit
PB: predicated region body
PF: predicated region fallthrough
CT: control target
= control target key end

     0   :  { %vm89_vm0 = vcmask 261120   ;;  %s1597_s1 = inlined_call_operand.vmem [shape: f32[32,32], index: 1, kind: input, shape index: {}]   ;;  %s1598_s0 = inlined_call_operand.vmem [shape: f32[512,32], index: 0, kind: input, shape index: {}]   ;;  %s1599_s2 = inlined_call_operand.vmem [shape: f32[1,32], index: 2, kind: input, shape index: {}]   ;;  %s1600_s3 = inlined_call_operand.vmem [shape: f32[512,32], index: 3, kind: output, shape index: {}]  }
   0x1   :  { %v78_v0 = vld [vmem:[%s1597_s1] sm:$0xff]  ;;  %v79_v1 = vld [vmem:[%s1597_s1 + $0x8] sm:$0xff]  ;;  %v80_v2 = vld [vmem:[%s1597_s1 + $0x10] sm:$0xff] }
   0x2   :  { %v972_v3 = vpack.c.bf16 %v79_v1, %v78_v0  ;;  %v81_v4 = vld [vmem:[%s1597_s1 + $0x18] sm:$0xff]  ;;  %v14_v5 = vld [vmem:[%s1598_s0] sm:$0xff]  ;;  %v15_v8 = vld [vmem:[%s1598_s0 + $0x8] sm:$0xff] }
   0x3   :  { %v46_v6 = vld [vmem:[%s1598_s0 + $0x100] sm:$0xff]  ;;  %v976_v7 = vpack.c.bf16 %v81_v4, %v80_v2  ;;  %876 = vmatprep.mubr.msk.f32.mxu0 %vm89_vm0, %v14_v5  ;;  %v47_v9 = vld [vmem:[%s1598_s0 + $0x108] sm:$0xff]  ;;  %v16_v10 = vld [vmem:[%s1598_s0 + $0x10] sm:$0xff] }
   0x4   :  { %924 = vmatprep.mubr.msk.f32.mxu1 %vm89_vm0, %v46_v6  ;;  %973 = vmatprep.subr.bf16.mxu0 %v972_v3  ;;  %v48_v11 = vld [vmem:[%s1598_s0 + $0x110] sm:$0xff]  ;;  %v17_v12 = vld [vmem:[%s1598_s0 + $0x18] sm:$0xff]  ;;  %v18_v14 = vld [vmem:[%s1598_s0 + $0x20] sm:$0xff] }
   0x5   :  { %980 = vmatprep.subr.bf16.mxu1 %v972_v3  ;;  %975 = vmatpush3.bf16.msra.mxu0 %v972_v3  ;;  %v49_v13 = vld [vmem:[%s1598_s0 + $0x118] sm:$0xff]  ;;  %v50_v15 = vld [vmem:[%s1598_s0 + $0x120] sm:$0xff]  ;;  %v19_v16 = vld [vmem:[%s1598_s0 + $0x28] sm:$0xff] }
   0x6   :  { %982 = vmatpush3.bf16.msra.mxu1 %v972_v3  ;;  %977 = vmatprep.subr.bf16.mxu0 %v976_v7  ;;  %v51_v17 = vld [vmem:[%s1598_s0 + $0x128] sm:$0xff]  ;;  %v20_v18 = vld [vmem:[%s1598_s0 + $0x30] sm:$0xff]  ;;  %v21_v20 = vld [vmem:[%s1598_s0 + $0x38] sm:$0xff] }
   0x7   :  { %981 = vmatprep.subr.bf16.mxu1 %v976_v7  ;;  %v52_v19 = vld [vmem:[%s1598_s0 + $0x130] sm:$0xff]  ;;  %v53_v21 = vld [vmem:[%s1598_s0 + $0x138] sm:$0xff]  ;;  %v22_v22 = vld [vmem:[%s1598_s0 + $0x40] sm:$0xff] }
   0x8   :  { %v54_v23 = vld [vmem:[%s1598_s0 + $0x140] sm:$0xff]  ;;  %v23_v24 = vld [vmem:[%s1598_s0 + $0x48] sm:$0xff]  ;;  %v24_v26 = vld [vmem:[%s1598_s0 + $0x50] sm:$0xff] }
   0x9   :  { %979 = vmatpush3.bf16.msra.mxu0 %v976_v7  ;;  %v55_v25 = vld [vmem:[%s1598_s0 + $0x148] sm:$0xff]  ;;  %v56_v27 = vld [vmem:[%s1598_s0 + $0x150] sm:$0xff]  ;;  %v25_v28 = vld [vmem:[%s1598_s0 + $0x58] sm:$0xff] }
   0xa   :  { %983 = vmatpush3.bf16.msra.mxu1 %v976_v7  ;;  %v57_v29 = vld [vmem:[%s1598_s0 + $0x158] sm:$0xff]  ;;  %v26_v30 = vld [vmem:[%s1598_s0 + $0x60] sm:$0xff]  ;;  %v27_v32 = vld [vmem:[%s1598_s0 + $0x68] sm:$0xff] }
   0xb   :  { %v58_v31 = vld [vmem:[%s1598_s0 + $0x160] sm:$0xff]  ;;  %v59_v33 = vld [vmem:[%s1598_s0 + $0x168] sm:$0xff]  ;;  %v28_v34 = vld [vmem:[%s1598_s0 + $0x70] sm:$0xff] }
   0xc   :  { %877 = vmatmul.mubr.msk.f32.vlgmr.msra.gmra.mrb[0].mxu0 %vm89_vm0, %v15_v8  ;;  %v60_v35 = vld [vmem:[%s1598_s0 + $0x170] sm:$0xff]  ;;  %v29_v36 = vld [vmem:[%s1598_s0 + $0x78] sm:$0xff]  ;;  %v30_v38 = vld [vmem:[%s1598_s0 + $0x80] sm:$0xff] }
   0xd   :  { %925 = vmatmul.mubr.msk.f32.vlgmr.msra.gmra.mrb[0].mxu1 %vm89_vm0, %v47_v9  ;;  %879 = vmatprep.mubr.msk.f32.mxu0 %vm89_vm0, %v16_v10  ;;  %v61_v37 = vld [vmem:[%s1598_s0 + $0x178] sm:$0xff]  ;;  %v62_v39 = vld [vmem:[%s1598_s0 + $0x180] sm:$0xff]  ;;  %v31_v40 = vld [vmem:[%s1598_s0 + $0x88] sm:$0xff] }
   0xe   :  { %927 = vmatprep.mubr.msk.f32.mxu1 %vm89_vm0, %v48_v11  ;;  %v63_v41 = vld [vmem:[%s1598_s0 + $0x188] sm:$0xff]  ;;  %v32_v42 = vld [vmem:[%s1598_s0 + $0x90] sm:$0xff]  ;;  %v33_v44 = vld [vmem:[%s1598_s0 + $0x98] sm:$0xff] }
   0xf   :  { %v64_v43 = vld [vmem:[%s1598_s0 + $0x190] sm:$0xff]  ;;  %v65_v45 = vld [vmem:[%s1598_s0 + $0x198] sm:$0xff]  ;;  %v34_v46 = vld [vmem:[%s1598_s0 + $0xa0] sm:$0xff] }
  0x10   :  { %880 = vmatmul.mubr.msk.f32.gmra.mrb[2].mxu0 %vm89_vm0, %v17_v12  ;;  %v66_v47 = vld [vmem:[%s1598_s0 + $0x1a0] sm:$0xff]  ;;  %v35_v48 = vld [vmem:[%s1598_s0 + $0xa8] sm:$0xff]  ;;  %v36_v50 = vld [vmem:[%s1598_s0 + $0xb0] sm:$0xff] }
  0x11   :  { %928 = vmatmul.mubr.msk.f32.gmra.mrb[2].mxu1 %vm89_vm0, %v49_v13  ;;  %882 = vmatprep.mubr.msk.f32.mxu0 %vm89_vm0, %v18_v14  ;;  %v67_v49 = vld [vmem:[%s1598_s0 + $0x1a8] sm:$0xff]  ;;  %v68_v51 = vld [vmem:[%s1598_s0 + $0x1b0] sm:$0xff]  ;;  %v37_v52 = vld [vmem:[%s1598_s0 + $0xb8] sm:$0xff] }
  0x12   :  { %930 = vmatprep.mubr.msk.f32.mxu1 %vm89_vm0, %v50_v15  ;;  %v69_v53 = vld [vmem:[%s1598_s0 + $0x1b8] sm:$0xff]  ;;  %v38_v54 = vld [vmem:[%s1598_s0 + $0xc0] sm:$0xff]  ;;  %v39_v56 = vld [vmem:[%s1598_s0 + $0xc8] sm:$0xff] }
  0x13   :  { %v70_v55 = vld [vmem:[%s1598_s0 + $0x1c0] sm:$0xff]  ;;  %v71_v57 = vld [vmem:[%s1598_s0 + $0x1c8] sm:$0xff]  ;;  %v40_v58 = vld [vmem:[%s1598_s0 + $0xd0] sm:$0xff] }
  0x14   :  { %883 = vmatmul.mubr.msk.f32.gmra.mrb[4].mxu0 %vm89_vm0, %v19_v16  ;;  %v72_v59 = vld [vmem:[%s1598_s0 + $0x1d0] sm:$0xff]  ;;  %v41_v60 = vld [vmem:[%s1598_s0 + $0xd8] sm:$0xff]  ;;  %v42_v62 = vld [vmem:[%s1598_s0 + $0xe0] sm:$0xff] }
  0x15   :  { %931 = vmatmul.mubr.msk.f32.gmra.mrb[4].mxu1 %vm89_vm0, %v51_v17  ;;  %885 = vmatprep.mubr.msk.f32.mxu0 %vm89_vm0, %v20_v18  ;;  %v73_v61 = vld [vmem:[%s1598_s0 + $0x1d8] sm:$0xff]  ;;  %v74_v63 = vld [vmem:[%s1598_s0 + $0x1e0] sm:$0xff]  ;;  %v43_v0 = vld [vmem:[%s1598_s0 + $0xe8] sm:$0xff] }
  0x16   :  { %933 = vmatprep.mubr.msk.f32.mxu1 %vm89_vm0, %v52_v19  ;;  %v75_v1 = vld [vmem:[%s1598_s0 + $0x1e8] sm:$0xff]  ;;  %v44_v2 = vld [vmem:[%s1598_s0 + $0xf0] sm:$0xff]  ;;  %v45_v4 = vld [vmem:[%s1598_s0 + $0xf8] sm:$0xff] }
  0x17   :  { %v76_v3 = vld [vmem:[%s1598_s0 + $0x1f0] sm:$0xff]  ;;  %v77_v5 = vld [vmem:[%s1598_s0 + $0x1f8] sm:$0xff]  ;;  %v1275_v6 = vld [vmem:[%s1599_s2] ss:$0 sm:$0xff] }
  0x18   :  { %886 = vmatmul.mubr.msk.f32.gmra.mrb[6].mxu0 %vm89_vm0, %v21_v20 }
  0x19   :  { %934 = vmatmul.mubr.msk.f32.gmra.mrb[6].mxu1 %vm89_vm0, %v53_v21  ;;  %888 = vmatprep.mubr.msk.f32.mxu0 %vm89_vm0, %v22_v22 }
  0x1a   :  { %936 = vmatprep.mubr.msk.f32.mxu1 %vm89_vm0, %v54_v23 }
  0x1c   :  { %889 = vmatmul.mubr.msk.f32.gmra.mrb[8].mxu0 %vm89_vm0, %v23_v24 }
  0x1d   :  { %937 = vmatmul.mubr.msk.f32.gmra.mrb[8].mxu1 %vm89_vm0, %v55_v25  ;;  %891 = vmatprep.mubr.msk.f32.mxu0 %vm89_vm0, %v24_v26 }
  0x1e   :  { %939 = vmatprep.mubr.msk.f32.mxu1 %vm89_vm0, %v56_v27 }
  0x20   :  { %892 = vmatmul.mubr.msk.f32.gmra.mrb[10].mxu0 %vm89_vm0, %v25_v28 }
  0x21   :  { %940 = vmatmul.mubr.msk.f32.gmra.mrb[10].mxu1 %vm89_vm0, %v57_v29  ;;  %894 = vmatprep.mubr.msk.f32.mxu0 %vm89_vm0, %v26_v30 }
  0x22   :  { %942 = vmatprep.mubr.msk.f32.mxu1 %vm89_vm0, %v58_v31 }
  0x24   :  { %895 = vmatmul.mubr.msk.f32.gmra.mrb[12].mxu0 %vm89_vm0, %v27_v32 }
  0x25   :  { %943 = vmatmul.mubr.msk.f32.gmra.mrb[12].mxu1 %vm89_vm0, %v59_v33  ;;  %897 = vmatprep.mubr.msk.f32.mxu0 %vm89_vm0, %v28_v34 }
  0x26   :  { %945 = vmatprep.mubr.msk.f32.mxu1 %vm89_vm0, %v60_v35 }
  0x28   :  { %898 = vmatmul.mubr.msk.f32.gmra.mrb[14].mxu0 %vm89_vm0, %v29_v36 }
  0x29   :  { %946 = vmatmul.mubr.msk.f32.gmra.mrb[14].mxu1 %vm89_vm0, %v61_v37  ;;  %900 = vmatprep.mubr.msk.f32.mxu0 %vm89_vm0, %v30_v38 }
  0x2a   :  { %948 = vmatprep.mubr.msk.f32.mxu1 %vm89_vm0, %v62_v39 }
  0x2c   :  { %901 = vmatmul.mubr.msk.f32.gmra.mrb[16].mxu0 %vm89_vm0, %v31_v40 }
  0x2d   :  { %949 = vmatmul.mubr.msk.f32.gmra.mrb[16].mxu1 %vm89_vm0, %v63_v41  ;;  %903 = vmatprep.mubr.msk.f32.mxu0 %vm89_vm0, %v32_v42 }
  0x2e   :  { %951 = vmatprep.mubr.msk.f32.mxu1 %vm89_vm0, %v64_v43 }
  0x30   :  { %904 = vmatmul.mubr.msk.f32.gmra.mrb[18].mxu0 %vm89_vm0, %v33_v44 }
  0x31   :  { %952 = vmatmul.mubr.msk.f32.gmra.mrb[18].mxu1 %vm89_vm0, %v65_v45  ;;  %906 = vmatprep.mubr.msk.f32.mxu0 %vm89_vm0, %v34_v46 }
  0x32   :  { %954 = vmatprep.mubr.msk.f32.mxu1 %vm89_vm0, %v66_v47 }
  0x34   :  { %907 = vmatmul.mubr.msk.f32.gmra.mrb[20].mxu0 %vm89_vm0, %v35_v48 }
  0x35   :  { %955 = vmatmul.mubr.msk.f32.gmra.mrb[20].mxu1 %vm89_vm0, %v67_v49  ;;  %909 = vmatprep.mubr.msk.f32.mxu0 %vm89_vm0, %v36_v50 }
  0x36   :  { %957 = vmatprep.mubr.msk.f32.mxu1 %vm89_vm0, %v68_v51 }
  0x38   :  { %910 = vmatmul.mubr.msk.f32.gmra.mrb[22].mxu0 %vm89_vm0, %v37_v52 }
  0x39   :  { %958 = vmatmul.mubr.msk.f32.gmra.mrb[22].mxu1 %vm89_vm0, %v69_v53  ;;  %912 = vmatprep.mubr.msk.f32.mxu0 %vm89_vm0, %v38_v54 }
  0x3a   :  { %960 = vmatprep.mubr.msk.f32.mxu1 %vm89_vm0, %v70_v55 }
  0x3c   :  { %913 = vmatmul.mubr.msk.f32.gmra.mrb[24].mxu0 %vm89_vm0, %v39_v56 }
  0x3d   :  { %961 = vmatmul.mubr.msk.f32.gmra.mrb[24].mxu1 %vm89_vm0, %v71_v57  ;;  %915 = vmatprep.mubr.msk.f32.mxu0 %vm89_vm0, %v40_v58 }
  0x3e   :  { %963 = vmatprep.mubr.msk.f32.mxu1 %vm89_vm0, %v72_v59 }
  0x40   :  { %916 = vmatmul.mubr.msk.f32.gmra.mrb[26].mxu0 %vm89_vm0, %v41_v60 }
  0x41   :  { %964 = vmatmul.mubr.msk.f32.gmra.mrb[26].mxu1 %vm89_vm0, %v73_v61  ;;  %918 = vmatprep.mubr.msk.f32.mxu0 %vm89_vm0, %v42_v62 }
  0x42   :  { %966 = vmatprep.mubr.msk.f32.mxu1 %vm89_vm0, %v74_v63 }
  0x44   :  { %919 = vmatmul.mubr.msk.f32.gmra.mrb[28].mxu0 %vm89_vm0, %v43_v0 }
  0x45   :  { %967 = vmatmul.mubr.msk.f32.gmra.mrb[28].mxu1 %vm89_vm0, %v75_v1  ;;  %921 = vmatprep.mubr.msk.f32.mxu0 %vm89_vm0, %v44_v2 }
  0x46   :  { %969 = vmatprep.mubr.msk.f32.mxu1 %vm89_vm0, %v76_v3 }
  0x48   :  { %922 = vmatmul.mubr.msk.f32.gmra.mrb[30].mxu0 %vm89_vm0, %v45_v4 }
  0x49   :  { %970 = vmatmul.mubr.msk.f32.gmra.mrb[30].mxu1 %vm89_vm0, %v77_v5 }
  0xdf   :  { %v878_v7 = vpop.f32.mrb[0].mxu0 }
  0xe0   :  { %v926_v8 = vpop.f32.mrb[0].mxu1  ;;  %v354_v9 = vadd.f32 %v878_v7, %v1275_v6  ;;  %v348_v11 = vpop.f32.mrb[1].mxu0 }
  0xe1   :  { %v514_v10 = vadd.f32 %v926_v8, %v1275_v6  ;;  %v508_v12 = vpop.f32.mrb[1].mxu1  ;;  %v349_v13 = vadd.f32 %v1275_v6, %v348_v11 }
  0xe2   :  { %v509_v14 = vadd.f32 %v1275_v6, %v508_v12  ;;  %668 = vst.msk [vmem:[%s1600_s3 + $0x8] sm:$0xff] %vm89_vm0, %v354_v9 }
  0xe3   :  { %700 = vst.msk [vmem:[%s1600_s3 + $0x108] sm:$0xff] %vm89_vm0, %v514_v10  ;;  %667 = vst.msk [vmem:[%s1600_s3] sm:$0xff] %vm89_vm0, %v349_v13  ;;  %v881_v15 = vpop.f32.mrb[2].mxu0 }
  0xe4   :  { %699 = vst.msk [vmem:[%s1600_s3 + $0x100] sm:$0xff] %vm89_vm0, %v509_v14  ;;  %v929_v16 = vpop.f32.mrb[2].mxu1  ;;  %v364_v17 = vadd.f32 %v881_v15, %v1275_v6  ;;  %v358_v19 = vpop.f32.mrb[3].mxu0 }
  0xe5   :  { %v524_v18 = vadd.f32 %v929_v16, %v1275_v6  ;;  %v518_v20 = vpop.f32.mrb[3].mxu1  ;;  %v359_v21 = vadd.f32 %v1275_v6, %v358_v19 }
  0xe6   :  { %v519_v22 = vadd.f32 %v1275_v6, %v518_v20  ;;  %670 = vst.msk [vmem:[%s1600_s3 + $0x18] sm:$0xff] %vm89_vm0, %v364_v17 }
  0xe7   :  { %702 = vst.msk [vmem:[%s1600_s3 + $0x118] sm:$0xff] %vm89_vm0, %v524_v18  ;;  %669 = vst.msk [vmem:[%s1600_s3 + $0x10] sm:$0xff] %vm89_vm0, %v359_v21  ;;  %v884_v23 = vpop.f32.mrb[4].mxu0 }
  0xe8   :  { %701 = vst.msk [vmem:[%s1600_s3 + $0x110] sm:$0xff] %vm89_vm0, %v519_v22  ;;  %v932_v24 = vpop.f32.mrb[4].mxu1  ;;  %v374_v25 = vadd.f32 %v884_v23, %v1275_v6  ;;  %v368_v27 = vpop.f32.mrb[5].mxu0 }
  0xe9   :  { %v534_v26 = vadd.f32 %v932_v24, %v1275_v6  ;;  %v528_v28 = vpop.f32.mrb[5].mxu1  ;;  %v369_v29 = vadd.f32 %v1275_v6, %v368_v27 }
  0xea   :  { %v529_v30 = vadd.f32 %v1275_v6, %v528_v28  ;;  %672 = vst.msk [vmem:[%s1600_s3 + $0x28] sm:$0xff] %vm89_vm0, %v374_v25 }
  0xeb   :  { %704 = vst.msk [vmem:[%s1600_s3 + $0x128] sm:$0xff] %vm89_vm0, %v534_v26  ;;  %671 = vst.msk [vmem:[%s1600_s3 + $0x20] sm:$0xff] %vm89_vm0, %v369_v29  ;;  %v887_v31 = vpop.f32.mrb[6].mxu0 }
  0xec   :  { %703 = vst.msk [vmem:[%s1600_s3 + $0x120] sm:$0xff] %vm89_vm0, %v529_v30  ;;  %v935_v32 = vpop.f32.mrb[6].mxu1  ;;  %v384_v33 = vadd.f32 %v887_v31, %v1275_v6  ;;  %v378_v35 = vpop.f32.mrb[7].mxu0 }
  0xed   :  { %v544_v34 = vadd.f32 %v935_v32, %v1275_v6  ;;  %v538_v36 = vpop.f32.mrb[7].mxu1  ;;  %v379_v37 = vadd.f32 %v1275_v6, %v378_v35 }
  0xee   :  { %v539_v38 = vadd.f32 %v1275_v6, %v538_v36  ;;  %674 = vst.msk [vmem:[%s1600_s3 + $0x38] sm:$0xff] %vm89_vm0, %v384_v33 }
  0xef   :  { %706 = vst.msk [vmem:[%s1600_s3 + $0x138] sm:$0xff] %vm89_vm0, %v544_v34  ;;  %673 = vst.msk [vmem:[%s1600_s3 + $0x30] sm:$0xff] %vm89_vm0, %v379_v37  ;;  %v890_v39 = vpop.f32.mrb[8].mxu0 }
  0xf0   :  { %705 = vst.msk [vmem:[%s1600_s3 + $0x130] sm:$0xff] %vm89_vm0, %v539_v38  ;;  %v938_v40 = vpop.f32.mrb[8].mxu1  ;;  %v394_v41 = vadd.f32 %v890_v39, %v1275_v6  ;;  %v388_v43 = vpop.f32.mrb[9].mxu0 }
  0xf1   :  { %v554_v42 = vadd.f32 %v938_v40, %v1275_v6  ;;  %v548_v44 = vpop.f32.mrb[9].mxu1  ;;  %v389_v45 = vadd.f32 %v1275_v6, %v388_v43 }
  0xf2   :  { %v549_v46 = vadd.f32 %v1275_v6, %v548_v44  ;;  %676 = vst.msk [vmem:[%s1600_s3 + $0x48] sm:$0xff] %vm89_vm0, %v394_v41 }
  0xf3   :  { %708 = vst.msk [vmem:[%s1600_s3 + $0x148] sm:$0xff] %vm89_vm0, %v554_v42  ;;  %675 = vst.msk [vmem:[%s1600_s3 + $0x40] sm:$0xff] %vm89_vm0, %v389_v45  ;;  %v893_v47 = vpop.f32.mrb[10].mxu0 }
  0xf4   :  { %707 = vst.msk [vmem:[%s1600_s3 + $0x140] sm:$0xff] %vm89_vm0, %v549_v46  ;;  %v941_v48 = vpop.f32.mrb[10].mxu1  ;;  %v404_v49 = vadd.f32 %v893_v47, %v1275_v6  ;;  %v398_v51 = vpop.f32.mrb[11].mxu0 }
  0xf5   :  { %v564_v50 = vadd.f32 %v941_v48, %v1275_v6  ;;  %v558_v52 = vpop.f32.mrb[11].mxu1  ;;  %v399_v53 = vadd.f32 %v1275_v6, %v398_v51 }
  0xf6   :  { %v559_v54 = vadd.f32 %v1275_v6, %v558_v52  ;;  %678 = vst.msk [vmem:[%s1600_s3 + $0x58] sm:$0xff] %vm89_vm0, %v404_v49 }
  0xf7   :  { %710 = vst.msk [vmem:[%s1600_s3 + $0x158] sm:$0xff] %vm89_vm0, %v564_v50  ;;  %677 = vst.msk [vmem:[%s1600_s3 + $0x50] sm:$0xff] %vm89_vm0, %v399_v53  ;;  %v896_v55 = vpop.f32.mrb[12].mxu0 }
  0xf8   :  { %709 = vst.msk [vmem:[%s1600_s3 + $0x150] sm:$0xff] %vm89_vm0, %v559_v54  ;;  %v944_v56 = vpop.f32.mrb[12].mxu1  ;;  %v414_v57 = vadd.f32 %v896_v55, %v1275_v6  ;;  %v408_v59 = vpop.f32.mrb[13].mxu0 }
  0xf9   :  { %v574_v58 = vadd.f32 %v944_v56, %v1275_v6  ;;  %v568_v60 = vpop.f32.mrb[13].mxu1  ;;  %v409_v61 = vadd.f32 %v1275_v6, %v408_v59 }
  0xfa   :  { %v569_v62 = vadd.f32 %v1275_v6, %v568_v60  ;;  %680 = vst.msk [vmem:[%s1600_s3 + $0x68] sm:$0xff] %vm89_vm0, %v414_v57 }
  0xfb   :  { %712 = vst.msk [vmem:[%s1600_s3 + $0x168] sm:$0xff] %vm89_vm0, %v574_v58  ;;  %679 = vst.msk [vmem:[%s1600_s3 + $0x60] sm:$0xff] %vm89_vm0, %v409_v61  ;;  %v899_v63 = vpop.f32.mrb[14].mxu0 }
  0xfc   :  { %711 = vst.msk [vmem:[%s1600_s3 + $0x160] sm:$0xff] %vm89_vm0, %v569_v62  ;;  %v947_v0 = vpop.f32.mrb[14].mxu1  ;;  %v424_v1 = vadd.f32 %v899_v63, %v1275_v6  ;;  %v418_v3 = vpop.f32.mrb[15].mxu0 }
  0xfd   :  { %v584_v2 = vadd.f32 %v947_v0, %v1275_v6  ;;  %v578_v4 = vpop.f32.mrb[15].mxu1  ;;  %v419_v5 = vadd.f32 %v1275_v6, %v418_v3 }
  0xfe   :  { %v579_v7 = vadd.f32 %v1275_v6, %v578_v4  ;;  %682 = vst.msk [vmem:[%s1600_s3 + $0x78] sm:$0xff] %vm89_vm0, %v424_v1 }
  0xff   :  { %714 = vst.msk [vmem:[%s1600_s3 + $0x178] sm:$0xff] %vm89_vm0, %v584_v2  ;;  %681 = vst.msk [vmem:[%s1600_s3 + $0x70] sm:$0xff] %vm89_vm0, %v419_v5  ;;  %v902_v8 = vpop.f32.mrb[16].mxu0 }
 0x100   :  { %713 = vst.msk [vmem:[%s1600_s3 + $0x170] sm:$0xff] %vm89_vm0, %v579_v7  ;;  %v950_v9 = vpop.f32.mrb[16].mxu1  ;;  %v434_v10 = vadd.f32 %v902_v8, %v1275_v6  ;;  %v428_v12 = vpop.f32.mrb[17].mxu0 }
 0x101   :  { %v594_v11 = vadd.f32 %v950_v9, %v1275_v6  ;;  %v588_v13 = vpop.f32.mrb[17].mxu1  ;;  %v429_v14 = vadd.f32 %v1275_v6, %v428_v12 }
 0x102   :  { %v589_v15 = vadd.f32 %v1275_v6, %v588_v13  ;;  %684 = vst.msk [vmem:[%s1600_s3 + $0x88] sm:$0xff] %vm89_vm0, %v434_v10 }
 0x103   :  { %716 = vst.msk [vmem:[%s1600_s3 + $0x188] sm:$0xff] %vm89_vm0, %v594_v11  ;;  %683 = vst.msk [vmem:[%s1600_s3 + $0x80] sm:$0xff] %vm89_vm0, %v429_v14  ;;  %v905_v16 = vpop.f32.mrb[18].mxu0 }
 0x104   :  { %715 = vst.msk [vmem:[%s1600_s3 + $0x180] sm:$0xff] %vm89_vm0, %v589_v15  ;;  %v953_v17 = vpop.f32.mrb[18].mxu1  ;;  %v444_v18 = vadd.f32 %v905_v16, %v1275_v6  ;;  %v438_v20 = vpop.f32.mrb[19].mxu0 }
 0x105   :  { %v604_v19 = vadd.f32 %v953_v17, %v1275_v6  ;;  %v598_v21 = vpop.f32.mrb[19].mxu1  ;;  %v439_v22 = vadd.f32 %v1275_v6, %v438_v20 }
 0x106   :  { %v599_v23 = vadd.f32 %v1275_v6, %v598_v21  ;;  %686 = vst.msk [vmem:[%s1600_s3 + $0x98] sm:$0xff] %vm89_vm0, %v444_v18 }
 0x107   :  { %718 = vst.msk [vmem:[%s1600_s3 + $0x198] sm:$0xff] %vm89_vm0, %v604_v19  ;;  %685 = vst.msk [vmem:[%s1600_s3 + $0x90] sm:$0xff] %vm89_vm0, %v439_v22  ;;  %v908_v24 = vpop.f32.mrb[20].mxu0 }
 0x108   :  { %717 = vst.msk [vmem:[%s1600_s3 + $0x190] sm:$0xff] %vm89_vm0, %v599_v23  ;;  %v956_v25 = vpop.f32.mrb[20].mxu1  ;;  %v454_v26 = vadd.f32 %v908_v24, %v1275_v6  ;;  %v448_v28 = vpop.f32.mrb[21].mxu0 }
 0x109   :  { %v614_v27 = vadd.f32 %v956_v25, %v1275_v6  ;;  %v608_v29 = vpop.f32.mrb[21].mxu1  ;;  %v449_v30 = vadd.f32 %v1275_v6, %v448_v28 }
 0x10a   :  { %v609_v31 = vadd.f32 %v1275_v6, %v608_v29  ;;  %688 = vst.msk [vmem:[%s1600_s3 + $0xa8] sm:$0xff] %vm89_vm0, %v454_v26 }
 0x10b   :  { %720 = vst.msk [vmem:[%s1600_s3 + $0x1a8] sm:$0xff] %vm89_vm0, %v614_v27  ;;  %687 = vst.msk [vmem:[%s1600_s3 + $0xa0] sm:$0xff] %vm89_vm0, %v449_v30  ;;  %v911_v32 = vpop.f32.mrb[22].mxu0 }
 0x10c   :  { %719 = vst.msk [vmem:[%s1600_s3 + $0x1a0] sm:$0xff] %vm89_vm0, %v609_v31  ;;  %v959_v33 = vpop.f32.mrb[22].mxu1  ;;  %v464_v34 = vadd.f32 %v911_v32, %v1275_v6  ;;  %v458_v36 = vpop.f32.mrb[23].mxu0 }
 0x10d   :  { %v624_v35 = vadd.f32 %v959_v33, %v1275_v6  ;;  %v618_v37 = vpop.f32.mrb[23].mxu1  ;;  %v459_v38 = vadd.f32 %v1275_v6, %v458_v36 }
 0x10e   :  { %v619_v39 = vadd.f32 %v1275_v6, %v618_v37  ;;  %690 = vst.msk [vmem:[%s1600_s3 + $0xb8] sm:$0xff] %vm89_vm0, %v464_v34 }
 0x10f   :  { %722 = vst.msk [vmem:[%s1600_s3 + $0x1b8] sm:$0xff] %vm89_vm0, %v624_v35  ;;  %689 = vst.msk [vmem:[%s1600_s3 + $0xb0] sm:$0xff] %vm89_vm0, %v459_v38  ;;  %v914_v40 = vpop.f32.mrb[24].mxu0 }
 0x110   :  { %721 = vst.msk [vmem:[%s1600_s3 + $0x1b0] sm:$0xff] %vm89_vm0, %v619_v39  ;;  %v962_v41 = vpop.f32.mrb[24].mxu1  ;;  %v474_v42 = vadd.f32 %v914_v40, %v1275_v6  ;;  %v468_v44 = vpop.f32.mrb[25].mxu0 }
 0x111   :  { %v634_v43 = vadd.f32 %v962_v41, %v1275_v6  ;;  %v628_v45 = vpop.f32.mrb[25].mxu1  ;;  %v469_v46 = vadd.f32 %v1275_v6, %v468_v44 }
 0x112   :  { %v629_v47 = vadd.f32 %v1275_v6, %v628_v45  ;;  %692 = vst.msk [vmem:[%s1600_s3 + $0xc8] sm:$0xff] %vm89_vm0, %v474_v42 }
 0x113   :  { %724 = vst.msk [vmem:[%s1600_s3 + $0x1c8] sm:$0xff] %vm89_vm0, %v634_v43  ;;  %691 = vst.msk [vmem:[%s1600_s3 + $0xc0] sm:$0xff] %vm89_vm0, %v469_v46  ;;  %v917_v48 = vpop.f32.mrb[26].mxu0 }
 0x114   :  { %723 = vst.msk [vmem:[%s1600_s3 + $0x1c0] sm:$0xff] %vm89_vm0, %v629_v47  ;;  %v965_v49 = vpop.f32.mrb[26].mxu1  ;;  %v484_v50 = vadd.f32 %v917_v48, %v1275_v6  ;;  %v478_v52 = vpop.f32.mrb[27].mxu0 }
 0x115   :  { %v644_v51 = vadd.f32 %v965_v49, %v1275_v6  ;;  %v638_v53 = vpop.f32.mrb[27].mxu1  ;;  %v479_v54 = vadd.f32 %v1275_v6, %v478_v52 }
 0x116   :  { %v639_v55 = vadd.f32 %v1275_v6, %v638_v53  ;;  %694 = vst.msk [vmem:[%s1600_s3 + $0xd8] sm:$0xff] %vm89_vm0, %v484_v50 }
 0x117   :  { %726 = vst.msk [vmem:[%s1600_s3 + $0x1d8] sm:$0xff] %vm89_vm0, %v644_v51  ;;  %693 = vst.msk [vmem:[%s1600_s3 + $0xd0] sm:$0xff] %vm89_vm0, %v479_v54  ;;  %v920_v56 = vpop.f32.mrb[28].mxu0 }
 0x118   :  { %725 = vst.msk [vmem:[%s1600_s3 + $0x1d0] sm:$0xff] %vm89_vm0, %v639_v55  ;;  %v968_v57 = vpop.f32.mrb[28].mxu1  ;;  %v494_v58 = vadd.f32 %v920_v56, %v1275_v6  ;;  %v488_v60 = vpop.f32.mrb[29].mxu0 }
 0x119   :  { %v654_v59 = vadd.f32 %v968_v57, %v1275_v6  ;;  %v648_v61 = vpop.f32.mrb[29].mxu1  ;;  %v489_v62 = vadd.f32 %v1275_v6, %v488_v60 }
 0x11a   :  { %v649_v63 = vadd.f32 %v1275_v6, %v648_v61  ;;  %696 = vst.msk [vmem:[%s1600_s3 + $0xe8] sm:$0xff] %vm89_vm0, %v494_v58 }
 0x11b   :  { %728 = vst.msk [vmem:[%s1600_s3 + $0x1e8] sm:$0xff] %vm89_vm0, %v654_v59  ;;  %695 = vst.msk [vmem:[%s1600_s3 + $0xe0] sm:$0xff] %vm89_vm0, %v489_v62  ;;  %v923_v0 = vpop.f32.mrb[30].mxu0 }
 0x11c   :  { %727 = vst.msk [vmem:[%s1600_s3 + $0x1e0] sm:$0xff] %vm89_vm0, %v649_v63  ;;  %v971_v1 = vpop.f32.mrb[30].mxu1  ;;  %v504_v2 = vadd.f32 %v923_v0, %v1275_v6  ;;  %v498_v4 = vpop.f32.mrb[31].mxu0 }
 0x11d   :  { %v664_v3 = vadd.f32 %v971_v1, %v1275_v6  ;;  %v658_v5 = vpop.f32.mrb[31].mxu1  ;;  %v499_v7 = vadd.f32 %v1275_v6, %v498_v4 }
 0x11e   :  { %v659_v8 = vadd.f32 %v1275_v6, %v658_v5  ;;  %698 = vst.msk [vmem:[%s1600_s3 + $0xf8] sm:$0xff] %vm89_vm0, %v504_v2 }
 0x11f   :  { %730 = vst.msk [vmem:[%s1600_s3 + $0x1f8] sm:$0xff] %vm89_vm0, %v664_v3  ;;  %697 = vst.msk [vmem:[%s1600_s3 + $0xf0] sm:$0xff] %vm89_vm0, %v499_v7 }
 0x120   :  { %729 = vst.msk [vmem:[%s1600_s3 + $0x1f0] sm:$0xff] %vm89_vm0, %v659_v8 }

// kernel: causal_self_attention_forward.4
= control target key start
LH: loop header
LB: loop body
LE: loop exit
PB: predicated region body
PF: predicated region fallthrough
CT: control target
= control target key end

     0   :  { %s4794_s0 = inlined_call_operand.vmem [shape: s32[3], index: 0, kind: input, shape index: {}]   ;;  %s4795_s2 = inlined_call_operand.vmem [shape: f32[2,4,256,8], index: 2, kind: input, shape index: {}]   ;;  %s4796_s3 = inlined_call_operand.vmem [shape: f32[2,4,256,8], index: 3, kind: input, shape index: {}]   ;;  %s4797_s4 = inlined_call_operand.vmem [shape: f32[2,4,256,8], index: 4, kind: input, shape index: {}]   ;;  %s4798_s5 = inlined_call_operand.vmem [shape: f32[2,4,256,8], index: 5, kind: output, shape index: {}]   ;;  %s4799_s1 = inlined_call_operand.vmem [shape: s32[3], index: 1, kind: input, shape index: {}]  }
   0x1   :  { %s10_s20 = sshll.u32 %s4794_s0, 4  ;;  %s14_s23 = sshll.u32 %s4799_s1, 4  ;;  %s11_s20 = int_to_ptr.vmem [resolvable:$true] %s10_s20  ;;  %s15_s23 = int_to_ptr.vmem [resolvable:$true] %s14_s23 }
   0x2   :  { %s3547_s24 = scalar_lea.vmem %s11_s20, 16  ;;  %p3552_p1 = scmp.lt.s32.totalorder %s11_s20, %s11_s20 }
   0x3   :  { %p3548_p0 = scmp.ne.s32.totalorder %s11_s20, %s3547_s24  ;;  %p3553_p2 = scmp.lt.s32.totalorder %s3547_s24, %s3547_s24 }
   0x5   :  { %p3554_p3 = por %p3553_p2, %p3552_p1 }
   0x7   :  { %p3555_p4 = pnand %p3554_p3, %p3548_p0 }
   0x9   :  { %3558 = shalt.err (!%p3555_p4)  }
   0xa   :  { %s3629_s25 = smov [#allocation6]   ;;  %s3559_s26 = scalar_lea.vmem %s15_s23, 16 }
   0xb   :  { %13 = dma.vmem_to_smem %s11_s20, 16, %s3629_s25, [#allocation5] }
   0xc   :  { %p3560_p5 = scmp.ne.s32.totalorder %s15_s23, %s3559_s26  ;;  %p3564_p6 = scmp.lt.s32.totalorder %s15_s23, %s15_s23 }
   0xd   :  { %p3565_p7 = scmp.lt.s32.totalorder %s3559_s26, %s3559_s26 }
   0xf   :  { %p3566_p8 = por %p3565_p7, %p3564_p6 }
  0x11   :  { %p3567_p9 = pnand %p3566_p8, %p3560_p5 }
  0x13   :  { %3570 = shalt.err (!%p3567_p9)  }
  0x14   :  { %s3630_s0 = smov [#allocation7]  }
  0x15   :  { %17 = dma.vmem_to_smem %s15_s23, 16, %s3630_s0, [#allocation5] }
  0x16   :  { %3599 = dma.done.wait [#allocation5], 32 }
  0x17   :  { %3600 = vsyncadd [#allocation5], 4294967264 }
  0x18   :  { %19 = sfence }
  0x19   :  { %s3671_s1 = smov 0   ;;  %s3673_s27 = smov 0  }
  0x1a   :  { %s3675_s28 = smov 0   ;;  %s3677_s29 = smov 0  }
  0x1b   :  { %s3679_s30 = smov 0   ;;  %s3681_s6 = smov 0  }
  0x1c   :  { %s3683_s7 = smov 0  }
  0x1d LB: > { %s37_s8 = sadd.s32 1, %s3615_s29  ;;  %s40_s9 = sadd.s32 1, %s3619_s30  ;;  %s3627_s7 = sphi %s3683_s7, %s25_s7   ;;  %s3623_s6 = sphi %s3681_s6, %s4817_s6   ;;  %s3619_s30 = sphi %s3679_s30, %s4816_s30   ;;  %s3615_s29 = sphi %s3677_s29, %s4815_s29   ;;  %s3611_s28 = sphi %s3675_s28, %s4814_s28   ;;  %s3607_s27 = sphi %s3673_s27, %s4813_s27   ;;  %s3603_s1 = sphi %s3671_s1, %s4812_s1  }
  0x1e   : > { %p38_p10 = scmp.ge.s32.totalorder %s37_s8, 3  ;;  %p2723_p11 = scmp.ge.s32.totalorder %s3627_s7, 1 }
  0x1f   : > { %p245_p12 = scmp.lt.s32.totalorder %s3627_s7, 25  ;;  %s44_s10 = sadd.s32 1, %s3623_s6 }
  0x20   : > { %s4819_s8 = smov (%p38_p10, %s37_s8), 0  ;;  %s4821_s9 = smov (!%p38_p10, %s40_s9), %s3619_s30 }
  0x21   : > { %p246_p13 = pnand %p2723_p11, %p245_p12  ;;  %p42_p0 = scmp.ge.s32.totalorder %s4821_s9, 4 }
  0x22   : > { %s315_s11 = sld [smem:[#allocation6 + %s3603_s1]] (!%p246_p13)  ;;  %p317_p2 = scmp.lt.s32.totalorder (!%p246_p13), %s3611_s28, 1 }
  0x23   : > { %s4823_s9 = smov (%p42_p0, %s4821_s9), 0  ;;  %s4825_s10 = smov (!%p42_p0, %s44_s10), %s3623_s6 }
  0x24   : > { %4800 = sst [smem:[#allocation9_spill]] %s4823_s9  ;;  %p46_p1 = scmp.ge.s32.totalorder %s4825_s10, 2 }
  0x25   : > { %249 = sbr.rel (%p246_p13) target bundleno = 1817 (0x719), region = 32  ;;  %p319_p3 = scmp.lt.s32.totalorder (!%p246_p13), %s3607_s27, 3 }
  0x26   : > { %s4827_s10 = smov (%p46_p1, %s4825_s10), 0  ;;  %s331_s12 = sld [smem:[#allocation7 + %s3603_s1]] (!%p246_p13) }
  0x27   : > { %4801 = sst [smem:[#allocation10_spill]] %s4827_s10 }
  0x28   : > { %s347_s14 = sld [smem:[#allocation7 + %s3603_s1]] (!%p246_p13)  ;;  %s2724_s17 = sshll.u32 (!%p246_p13), %s315_s11, 4 }
  0x29   : > { %s363_s16 = sld [smem:[#allocation6 + %s3603_s1]] (!%p246_p13)  ;;  %p321_p4 = scmp.lt.s32.totalorder (!%p246_p13), %s2724_s17, 31 }
  0x2a   : > { %s3724_s18 = sld [smem:[#allocation6 + %s3603_s1]] (!%p246_p13) }
  0x2b   : > { %s3727_s20 = sld [smem:[#allocation7 + %s3603_s1]] (!%p246_p13) }
  0x2c   : > { %s4829_s28 = smov (!%p317_p2, %s3611_s28), 1  ;;  %s4831_s27 = smov (!%p319_p3, %s3607_s27), 3 }
  0x2d   : > { %s3717_s13 = sshll.u32 %s4829_s28, 7  ;;  %s3720_s15 = sshll.u32 %s4831_s27, 5 }
  0x2e   : > { %s2728_s19 = sshll.u32 %s331_s12, 4  ;;  %s4833_s17 = smov (!%p321_p4, %s2724_s17), 31 }
  0x2f   : > { %p337_p5 = scmp.lt.s32.totalorder %s2728_s19, 31  ;;  %s324_s21 = sadd.s32 %s3720_s15, %s4833_s17 }
  0x30   : > { %s2732_s22 = sshll.u32 %s347_s14, 4  ;;  %s326_s23 = sadd.s32 %s3717_s13, %s324_s21 }
  0x31   : > { %s4835_s19 = smov (!%p337_p5, %s2728_s19), 31  ;;  %s2727_s25 = sshll.u32 %s326_s23, 3 }
  0x32   : > { %s340_s24 = sadd.s32 %s3720_s15, %s4835_s19  ;;  %s3736_s28 = scalar_lea.vmem %s4795_s2, %s2727_s25 }
  0x33   : > { %s342_s26 = sadd.s32 %s3717_s13, %s340_s24  ;;  %p353_p6 = scmp.lt.s32.totalorder %s2732_s22, 31 }
  0x34   : > { %s2731_s11 = sshll.u32 %s342_s26, 3  ;;  %s2736_s17 = sshll.u32 %s363_s16, 4 }
  0x35   : > { %s3741_s10 = scalar_lea.vmem %s4796_s3, %s2731_s11  ;;  %s4837_s22 = smov (!%p353_p6, %s2732_s22), 31 }
  0x36   : > { %s356_s14 = sadd.s32 %s3720_s15, %s4837_s22  ;;  %p369_p7 = scmp.lt.s32.totalorder %s2736_s17, 31 }
  0x37   : > { %s358_s19 = sadd.s32 %s3717_s13, %s356_s14  ;;  %p2740_p8 = scmp.ne.s32.totalorder %s3727_s20, 0 }
  0x38   : > { %s2735_s21 = sshll.u32 %s358_s19, 3  ;;  %s4839_s17 = smov (!%p369_p7, %s2736_s17), 31  ;;  %vm385_vm0 = vcmask (!%p2740_p8), 7168   ;;  %vm418_vm1 = vcmask (!%p2740_p8), 64512   ;;  %v3631_v0 = vmov (!%p2740_p8), -inf   ;;  %v3632_v1 = vmov (!%p2740_p8), 0.0  }
  0x39   : > { %s3748_s9 = scalar_lea.vmem %s4797_s4, %s2735_s21  ;;  %s372_s25 = sadd.s32 %s3720_s15, %s4839_s17  ;;  %386 = vst.msk [vmem:[#allocation2] sm:$0xff] (!%p2740_p8), %vm385_vm0, %v3631_v0  ;;  %387 = vst.msk [vmem:[#allocation2 + $0x8] sm:$0xff] (!%p2740_p8), %vm385_vm0, %v3631_v0 }
  0x3a   : > { %s374_s26 = sadd.s32 %s3717_s13, %s372_s25  ;;  %384 = sbr.rel (%p2740_p8) target bundleno = 81 (0x51), region = 36  ;;  %388 = vst.msk [vmem:[#allocation2 + $0x10] sm:$0xff] (!%p2740_p8), %vm385_vm0, %v3631_v0  ;;  %389 = vst.msk [vmem:[#allocation2 + $0x18] sm:$0xff] (!%p2740_p8), %vm385_vm0, %v3631_v0 }
  0x3b   : > { %s2739_s0 = sshll.u32 %s374_s26, 3  ;;  %390 = vst.msk [vmem:[#allocation2 + $0x20] sm:$0xff] (!%p2740_p8), %vm385_vm0, %v3631_v0  ;;  %391 = vst.msk [vmem:[#allocation2 + $0x28] sm:$0xff] (!%p2740_p8), %vm385_vm0, %v3631_v0 }
  0x3c   : > { %s3755_s11 = scalar_lea.vmem %s4798_s5, %s2739_s0  ;;  %392 = vst.msk [vmem:[#allocation2 + $0x30] sm:$0xff] (!%p2740_p8), %vm385_vm0, %v3631_v0  ;;  %393 = vst.msk [vmem:[#allocation2 + $0x38] sm:$0xff] (!%p2740_p8), %vm385_vm0, %v3631_v0 }
  0x3d   : > { %394 = vst.msk [vmem:[#allocation2 + $0x40] sm:$0xff] (!%p2740_p8), %vm385_vm0, %v3631_v0  ;;  %395 = vst.msk [vmem:[#allocation2 + $0x48] sm:$0xff] (!%p2740_p8), %vm385_vm0, %v3631_v0 }
  0x3e   : > { %396 = vst.msk [vmem:[#allocation2 + $0x50] sm:$0xff] (!%p2740_p8), %vm385_vm0, %v3631_v0  ;;  %397 = vst.msk [vmem:[#allocation2 + $0x58] sm:$0xff] (!%p2740_p8), %vm385_vm0, %v3631_v0 }
  0x3f   : > { %398 = vst.msk [vmem:[#allocation2 + $0x60] sm:$0xff] (!%p2740_p8), %vm385_vm0, %v3631_v0  ;;  %399 = vst.msk [vmem:[#allocation2 + $0x68] sm:$0xff] (!%p2740_p8), %vm385_vm0, %v3631_v0 }
  0x40   : > { %400 = vst.msk [vmem:[#allocation2 + $0x70] sm:$0xff] (!%p2740_p8), %vm385_vm0, %v3631_v0  ;;  %401 = vst.msk [vmem:[#allocation2 + $0x78] sm:$0xff] (!%p2740_p8), %vm385_vm0, %v3631_v0 }
  0x41   : > { %402 = vst.msk [vmem:[#allocation3] sm:$0xff] %vm385_vm0, %v3632_v1  ;;  %403 = vst.msk [vmem:[#allocation3 + $0x8] sm:$0xff] %vm385_vm0, %v3632_v1 }
  0x42   : > { %404 = vst.msk [vmem:[#allocation3 + $0x10] sm:$0xff] %vm385_vm0, %v3632_v1  ;;  %405 = vst.msk [vmem:[#allocation3 + $0x18] sm:$0xff] %vm385_vm0, %v3632_v1 }
  0x43   : > { %406 = vst.msk [vmem:[#allocation3 + $0x20] sm:$0xff] %vm385_vm0, %v3632_v1  ;;  %407 = vst.msk [vmem:[#allocation3 + $0x28] sm:$0xff] %vm385_vm0, %v3632_v1 }
  0x44   : > { %408 = vst.msk [vmem:[#allocation3 + $0x30] sm:$0xff] %vm385_vm0, %v3632_v1  ;;  %409 = vst.msk [vmem:[#allocation3 + $0x38] sm:$0xff] %vm385_vm0, %v3632_v1 }
  0x45   : > { %410 = vst.msk [vmem:[#allocation3 + $0x40] sm:$0xff] %vm385_vm0, %v3632_v1  ;;  %411 = vst.msk [vmem:[#allocation3 + $0x48] sm:$0xff] %vm385_vm0, %v3632_v1 }
  0x46   : > { %412 = vst.msk [vmem:[#allocation3 + $0x50] sm:$0xff] %vm385_vm0, %v3632_v1  ;;  %413 = vst.msk [vmem:[#allocation3 + $0x58] sm:$0xff] %vm385_vm0, %v3632_v1 }
  0x47   : > { %414 = vst.msk [vmem:[#allocation3 + $0x60] sm:$0xff] %vm385_vm0, %v3632_v1  ;;  %415 = vst.msk [vmem:[#allocation3 + $0x68] sm:$0xff] %vm385_vm0, %v3632_v1 }
  0x48   : > { %416 = vst.msk [vmem:[#allocation3 + $0x70] sm:$0xff] %vm385_vm0, %v3632_v1  ;;  %417 = vst.msk [vmem:[#allocation3 + $0x78] sm:$0xff] %vm385_vm0, %v3632_v1 }
  0x49   : > { %419 = vst.msk [vmem:[#allocation4] sm:$0xff] %vm418_vm1, %v3632_v1  ;;  %420 = vst.msk [vmem:[#allocation4 + $0x8] sm:$0xff] %vm418_vm1, %v3632_v1 }
  0x4a   : > { %421 = vst.msk [vmem:[#allocation4 + $0x10] sm:$0xff] %vm418_vm1, %v3632_v1  ;;  %422 = vst.msk [vmem:[#allocation4 + $0x18] sm:$0xff] %vm418_vm1, %v3632_v1 }
  0x4b   : > { %423 = vst.msk [vmem:[#allocation4 + $0x20] sm:$0xff] %vm418_vm1, %v3632_v1  ;;  %424 = vst.msk [vmem:[#allocation4 + $0x28] sm:$0xff] %vm418_vm1, %v3632_v1 }
  0x4c   : > { %425 = vst.msk [vmem:[#allocation4 + $0x30] sm:$0xff] %vm418_vm1, %v3632_v1  ;;  %426 = vst.msk [vmem:[#allocation4 + $0x38] sm:$0xff] %vm418_vm1, %v3632_v1 }
  0x4d   : > { %427 = vst.msk [vmem:[#allocation4 + $0x40] sm:$0xff] %vm418_vm1, %v3632_v1  ;;  %428 = vst.msk [vmem:[#allocation4 + $0x48] sm:$0xff] %vm418_vm1, %v3632_v1 }
  0x4e   : > { %429 = vst.msk [vmem:[#allocation4 + $0x50] sm:$0xff] %vm418_vm1, %v3632_v1  ;;  %430 = vst.msk [vmem:[#allocation4 + $0x58] sm:$0xff] %vm418_vm1, %v3632_v1 }
  0x4f   : > { %431 = vst.msk [vmem:[#allocation4 + $0x60] sm:$0xff] %vm418_vm1, %v3632_v1  ;;  %432 = vst.msk [vmem:[#allocation4 + $0x68] sm:$0xff] %vm418_vm1, %v3632_v1 }
  0x50   : > { %433 = vst.msk [vmem:[#allocation4 + $0x70] sm:$0xff] %vm418_vm1, %v3632_v1  ;;  %434 = vst.msk [vmem:[#allocation4 + $0x78] sm:$0xff] %vm418_vm1, %v3632_v1 }
  0x51 PF: > { %p2741_p9 = scmp.ge.s32.totalorder %s3727_s20, %s3724_s18 }
  0x52   : > { %v455_v2 = vld [vmem:[%s3741_s10] sm:$0xff] (!%p2741_p9)  ;;  %v456_v3 = vld [vmem:[%s3741_s10 + $0x8] sm:$0xff] (!%p2741_p9)  ;;  %vm503_vm2 = vcmask (!%p2741_p9), 64512   ;;  %v457_v4 = vld [vmem:[%s3741_s10 + $0x10] sm:$0xff] (!%p2741_p9)  ;;  %vm1065_vm4 = vcmask (!%p2741_p9), 7168  }
  0x53   : > { %438 = sbr.rel (%p2741_p9) target bundleno = 910 (0x38e), region = 40  ;;  %v3161_v5 = vpack.c.bf16 (!%p2741_p9), %v456_v3, %v455_v2  ;;  %vm3813_vm3 = vmpackc.low (!%p2741_p9), %vm503_vm2, %vm503_vm2  ;;  %v458_v7 = vld [vmem:[%s3741_s10 + $0x18] sm:$0xff] (!%p2741_p9)  ;;  %v439_v9 = vld [vmem:[%s3736_s28] sm:$0xff] (!%p2741_p9) }
  0x54   : > { %v3167_v8 = vpack.c.bf16 (!%p2741_p9), %v458_v7, %v457_v4  ;;  %v459_v10 = vld [vmem:[%s3741_s10 + $0x20] sm:$0xff] (!%p2741_p9)  ;;  %v460_v11 = vld [vmem:[%s3741_s10 + $0x28] sm:$0xff] (!%p2741_p9)  ;;  %v487_v12 = vmul.f32 (!%p2741_p9), 0.35355338, %v439_v9  ;;  %v461_v14 = vld [vmem:[%s3741_s10 + $0x30] sm:$0xff] (!%p2741_p9) }
  0x55   : > { %3163 = vmatprep.subr.msk.bf16.mxu0 (!%p2741_p9), %vm3813_vm3, %v3161_v5  ;;  %v3173_v13 = vpack.c.bf16 (!%p2741_p9), %v460_v11, %v459_v10  ;;  %v462_v15 = vld [vmem:[%s3741_s10 + $0x38] sm:$0xff] (!%p2741_p9)  ;;  %v463_v17 = vld [vmem:[%s3741_s10 + $0x40] sm:$0xff] (!%p2741_p9)  ;;  %v464_v18 = vld [vmem:[%s3741_s10 + $0x48] sm:$0xff] (!%p2741_p9) }
  0x56   : > { %3166 = vmatpush3.bf16.xpose.msk.msra.mxu0 (!%p2741_p9), %vm3813_vm3, %v3161_v5  ;;  %2969 = vmatprep.mubr.msk.f32.mxu0 (!%p2741_p9), %vm503_vm2, %v487_v12  ;;  %v3179_v16 = vpack.c.bf16 (!%p2741_p9), %v462_v15, %v461_v14  ;;  %v3185_v19 = vpack.c.bf16 (!%p2741_p9), %v464_v18, %v463_v17  ;;  %v465_v20 = vld [vmem:[%s3741_s10 + $0x50] sm:$0xff] (!%p2741_p9)  ;;  %v466_v21 = vld [vmem:[%s3741_s10 + $0x58] sm:$0xff] (!%p2741_p9)  ;;  %v467_v23 = vld [vmem:[%s3741_s10 + $0x60] sm:$0xff] (!%p2741_p9)  ;;  %v3633_v5 = vmov (!%p2741_p9), 0  }
  0x57   : > { %3169 = vmatprep.subr.msk.bf16.mxu0 (!%p2741_p9), %vm3813_vm3, %v3167_v8  ;;  %v3191_v22 = vpack.c.bf16 (!%p2741_p9), %v466_v21, %v465_v20  ;;  %v468_v24 = vld [vmem:[%s3741_s10 + $0x68] sm:$0xff] (!%p2741_p9)  ;;  %v469_v26 = vld [vmem:[%s3741_s10 + $0x70] sm:$0xff] (!%p2741_p9)  ;;  %v470_v27 = vld [vmem:[%s3741_s10 + $0x78] sm:$0xff] (!%p2741_p9)  ;;  %3383 = vset.pattern.permute.xlu0 (!%p2741_p9), %v3633_v5 }
  0x58   : > { %v3197_v25 = vpack.c.bf16 (!%p2741_p9), %v468_v24, %v467_v23  ;;  %v3203_v28 = vpack.c.bf16 (!%p2741_p9), %v470_v27, %v469_v26  ;;  %v440_v29 = vld [vmem:[%s3736_s28 + $0x8] sm:$0xff] (!%p2741_p9)  ;;  %v441_v30 = vld [vmem:[%s3736_s28 + $0x10] sm:$0xff] (!%p2741_p9)  ;;  %v442_v33 = vld [vmem:[%s3736_s28 + $0x18] sm:$0xff] (!%p2741_p9)  ;;  %3384 = vset.pattern.permute.xlu1 (!%p2741_p9), %v3633_v5 }
  0x59   : > { %v488_v31 = vmul.f32 (!%p2741_p9), 0.35355338, %v440_v29  ;;  %v489_v32 = vmul.f32 (!%p2741_p9), 0.35355338, %v441_v30  ;;  %v443_v34 = vld [vmem:[%s3736_s28 + $0x20] sm:$0xff] (!%p2741_p9)  ;;  %v444_v37 = vld [vmem:[%s3736_s28 + $0x28] sm:$0xff] (!%p2741_p9) }
  0x5a   : > { %v490_v35 = vmul.f32 0.35355338, %v442_v33  ;;  %v491_v36 = vmul.f32 0.35355338, %v443_v34  ;;  %v445_v38 = vld [vmem:[%s3736_s28 + $0x30] sm:$0xff]  ;;  %v446_v41 = vld [vmem:[%s3736_s28 + $0x38] sm:$0xff] }
  0x5b   : > { %v492_v39 = vmul.f32 0.35355338, %v444_v37  ;;  %v493_v40 = vmul.f32 0.35355338, %v445_v38  ;;  %v447_v42 = vld [vmem:[%s3736_s28 + $0x40] sm:$0xff]  ;;  %v448_v45 = vld [vmem:[%s3736_s28 + $0x48] sm:$0xff] }
  0x5c   : > { %v494_v43 = vmul.f32 0.35355338, %v446_v41  ;;  %v495_v44 = vmul.f32 0.35355338, %v447_v42  ;;  %v449_v46 = vld [vmem:[%s3736_s28 + $0x50] sm:$0xff]  ;;  %v450_v49 = vld [vmem:[%s3736_s28 + $0x58] sm:$0xff] }
  0x5d   : > { %v496_v47 = vmul.f32 0.35355338, %v448_v45  ;;  %v497_v48 = vmul.f32 0.35355338, %v449_v46  ;;  %v451_v50 = vld [vmem:[%s3736_s28 + $0x60] sm:$0xff]  ;;  %v452_v53 = vld [vmem:[%s3736_s28 + $0x68] sm:$0xff] }
  0x5e   : > { %3172 = vmatpush3.bf16.xpose.msk.msra.mxu0 %vm3813_vm3, %v3167_v8  ;;  %v498_v51 = vmul.f32 0.35355338, %v450_v49  ;;  %v499_v52 = vmul.f32 0.35355338, %v451_v50  ;;  %v453_v54 = vld [vmem:[%s3736_s28 + $0x70] sm:$0xff]  ;;  %v454_v57 = vld [vmem:[%s3736_s28 + $0x78] sm:$0xff] }
  0x5f   : > { %3175 = vmatprep.subr.msk.bf16.mxu0 %vm3813_vm3, %v3173_v13  ;;  %v500_v55 = vmul.f32 0.35355338, %v452_v53  ;;  %v501_v56 = vmul.f32 0.35355338, %v453_v54  ;;  %v502_v58 = vmul.f32 0.35355338, %v454_v57 }
  0x60   : > { %v471_v12 = vld [vmem:[%s3748_s9] sm:$0xff]  ;;  %v473_v14 = vld [vmem:[%s3748_s9 + $0x10] sm:$0xff]  ;;  %v3955_v27 = vld [vmem:[#allocation2 + $0x18] sm:$0xff] }
  0x61   : > { %v475_v18 = vld [vmem:[%s3748_s9 + $0x20] sm:$0xff]  ;;  %v477_v21 = vld [vmem:[%s3748_s9 + $0x30] sm:$0xff]  ;;  %v484_v49 = vld [vmem:[%s3748_s9 + $0x68] sm:$0xff] }
  0x62   : > { %v3950_v24 = vld [vmem:[#allocation2] sm:$0xff]  ;;  %v3991_v46 = vld [vmem:[#allocation2 + $0x30] sm:$0xff]  ;;  %v3999_v53 = vld [vmem:[#allocation2 + $0x38] sm:$0xff] }
  0x63   : > { %v479_v30 = vld [vmem:[%s3748_s9 + $0x40] sm:$0xff]  ;;  %v485_v57 = vld [vmem:[%s3748_s9 + $0x70] sm:$0xff] }
  0x64   : > { %v3974_v37 = vld [vmem:[#allocation2 + $0x20] sm:$0xff] }
  0x66   : > { %3178 = vmatpush3.bf16.xpose.msk.msra.mxu0 %vm3813_vm3, %v3173_v13  ;;  %v472_v13 = vld [vmem:[%s3748_s9 + $0x8] sm:$0xff] }
  0x67   : > { %3181 = vmatprep.subr.msk.bf16.mxu0 %vm3813_vm3, %v3179_v16  ;;  %v3209_v15 = vpack.c.bf16 %v472_v13, %v471_v12 }
  0x69   : > { %3210 = vmatprep.subr.bf16.mxu1 %v3209_v15 }
  0x6a   : > { %3212 = vmatpush3.bf16.msra.mxu1 %v3209_v15 }
  0x6e   : > { %3184 = vmatpush3.bf16.xpose.msk.msra.mxu0 %vm3813_vm3, %v3179_v16  ;;  %v474_v16 = vld [vmem:[%s3748_s9 + $0x18] sm:$0xff] }
  0x6f   : > { %3187 = vmatprep.subr.msk.bf16.mxu0 %vm3813_vm3, %v3185_v19  ;;  %v3213_v17 = vpack.c.bf16 %v474_v16, %v473_v14  ;;  %v754_v14 = vld [vmem:[#allocation2 + $0x48] sm:$0xff]  ;;  %v4017_v16 = vld [vmem:[#allocation2 + $0x50] sm:$0xff] }
  0x71   : > { %3214 = vmatprep.subr.bf16.mxu1 %v3213_v17 }
  0x72   : > { %3216 = vmatpush3.bf16.msra.mxu1 %v3213_v17 }
  0x76   : > { %3190 = vmatpush3.bf16.xpose.msk.msra.mxu0 %vm3813_vm3, %v3185_v19  ;;  %v476_v19 = vld [vmem:[%s3748_s9 + $0x28] sm:$0xff] }
  0x77   : > { %3193 = vmatprep.subr.msk.bf16.mxu0 %vm3813_vm3, %v3191_v22  ;;  %v3217_v20 = vpack.c.bf16 %v476_v19, %v475_v18 }
  0x79   : > { %3218 = vmatprep.subr.bf16.mxu1 %v3217_v20 }
  0x7a   : > { %3220 = vmatpush3.bf16.msra.mxu1 %v3217_v20 }
  0x7e   : > { %3196 = vmatpush3.bf16.xpose.msk.msra.mxu0 %vm3813_vm3, %v3191_v22  ;;  %v478_v22 = vld [vmem:[%s3748_s9 + $0x38] sm:$0xff] }
  0x7f   : > { %3199 = vmatprep.subr.msk.bf16.mxu0 %vm3813_vm3, %v3197_v25  ;;  %v3221_v23 = vpack.c.bf16 %v478_v22, %v477_v21  ;;  %v756_v21 = vld [vmem:[#allocation2 + $0x58] sm:$0xff] }
  0x81   : > { %3222 = vmatprep.subr.bf16.mxu1 %v3221_v23 }
  0x82   : > { %3224 = vmatpush3.bf16.msra.mxu1 %v3221_v23  ;;  %v4027_v23 = vld [vmem:[#allocation2 + $0x60] sm:$0xff] }
  0x86   : > { %3202 = vmatpush3.bf16.xpose.msk.msra.mxu0 %vm3813_vm3, %v3197_v25 }
  0x87   : > { %3205 = vmatprep.subr.msk.bf16.mxu0 %vm3813_vm3, %v3203_v28 }
  0x8e   : > { %3208 = vmatpush3.bf16.xpose.msk.msra.mxu0 %vm3813_vm3, %v3203_v28  ;;  %v3957_v28 = vld [vmem:[#allocation2 + $0x8] sm:$0xff] }
  0x95   : > { %2970 = vmatmul.mubr.msk.f32.vlgmr.msra.gmra.mrb[0].mxu0 %vm503_vm2, %v488_v31  ;;  %v480_v31 = vld [vmem:[%s3748_s9 + $0x48] sm:$0xff] }
  0x96   : > { %2972 = vmatprep.mubr.msk.f32.mxu0 %vm503_vm2, %v489_v32  ;;  %v3225_v34 = vpack.c.bf16 %v480_v31, %v479_v30  ;;  %v758_v31 = vld [vmem:[#allocation2 + $0x68] sm:$0xff] }
  0x98   : > { %3226 = vmatprep.subr.bf16.mxu1 %v3225_v34 }
  0x99   : > { %2973 = vmatmul.mubr.msk.f32.gmra.mrb[2].mxu0 %vm503_vm2, %v490_v35  ;;  %3228 = vmatpush3.bf16.msra.mxu1 %v3225_v34  ;;  %v4038_v34 = vld [vmem:[#allocation2 + $0x70] sm:$0xff] }
  0x9a   : > { %2975 = vmatprep.mubr.msk.f32.mxu0 %vm503_vm2, %v491_v36  ;;  %v3970_v36 = vld [vmem:[#allocation2 + $0x10] sm:$0xff] }
  0x9d   : > { %2976 = vmatmul.mubr.msk.f32.gmra.mrb[4].mxu0 %vm503_vm2, %v492_v39  ;;  %v481_v39 = vld [vmem:[%s3748_s9 + $0x50] sm:$0xff] }
  0x9e   : > { %2978 = vmatprep.mubr.msk.f32.mxu0 %vm503_vm2, %v493_v40  ;;  %v482_v40 = vld [vmem:[%s3748_s9 + $0x58] sm:$0xff] }
  0xa1   : > { %2979 = vmatmul.mubr.msk.f32.gmra.mrb[6].mxu0 %vm503_vm2, %v494_v43  ;;  %v3229_v43 = vpack.c.bf16 %v482_v40, %v481_v39 }
  0xa2   : > { %2981 = vmatprep.mubr.msk.f32.mxu0 %vm503_vm2, %v495_v44  ;;  %v3984_v44 = vld [vmem:[#allocation2 + $0x28] sm:$0xff] }
  0xa3   : > { %3230 = vmatprep.subr.bf16.mxu1 %v3229_v43 }
  0xa4   : > { %3232 = vmatpush3.bf16.msra.mxu1 %v3229_v43 }
  0xa5   : > { %2982 = vmatmul.mubr.msk.f32.gmra.mrb[8].mxu0 %vm503_vm2, %v496_v47 }
  0xa6   : > { %2984 = vmatprep.mubr.msk.f32.mxu0 %vm503_vm2, %v497_v48  ;;  %v483_v48 = vld [vmem:[%s3748_s9 + $0x60] sm:$0xff] }
  0xa9   : > { %2985 = vmatmul.mubr.msk.f32.gmra.mrb[10].mxu0 %vm503_vm2, %v498_v51 }
  0xaa   : > { %2987 = vmatprep.mubr.msk.f32.mxu0 %vm503_vm2, %v499_v52  ;;  %v3233_v52 = vpack.c.bf16 %v484_v49, %v483_v48 }
  0xac   : > { %3234 = vmatprep.subr.bf16.mxu1 %v3233_v52 }
  0xad   : > { %2988 = vmatmul.mubr.msk.f32.gmra.mrb[12].mxu0 %vm503_vm2, %v500_v55  ;;  %v4005_v55 = vld [vmem:[#allocation2 + $0x40] sm:$0xff]  ;;  %3236 = vmatpush3.bf16.msra.mxu1 %v3233_v52 }
  0xae   : > { %2990 = vmatprep.mubr.msk.f32.mxu0 %vm503_vm2, %v501_v56 }
  0xb1   : > { %2991 = vmatmul.mubr.msk.f32.gmra.mrb[14].mxu0 %vm503_vm2, %v502_v58  ;;  %v486_v58 = vld [vmem:[%s3748_s9 + $0x78] sm:$0xff] }
  0xb2   : > { %v3237_v13 = vpack.c.bf16 %v486_v58, %v485_v57 }
  0xb4   : > { %3238 = vmatprep.subr.bf16.mxu1 %v3237_v13 }
  0xb5   : > { %3240 = vmatpush3.bf16.msra.mxu1 %v3237_v13 }
 0x168   : > { %v3894_v59 = vpop.f32.mrb[0].mxu0 }
 0x169   : > { %v3896_v60 = vpop.f32.mrb[1].mxu0 }
 0x16a   : > { %761 = vmax.xlane.f32.xlu0 %v3896_v60 }
 0x16c   : > { %v3899_v61 = vpop.f32.mrb[2].mxu0 }
 0x16d   : > { %767 = vmax.xlane.f32.xlu1 %v3899_v61  ;;  %v3902_v62 = vpop.f32.mrb[3].mxu0 }
 0x16e   : > { %763 = vmax.xlane.f32.xlu0 %v3894_v59 }
 0x170   : > { %v3905_v63 = vpop.f32.mrb[4].mxu0 }
 0x171   : > { %765 = vmax.xlane.f32.xlu1 %v3902_v62  ;;  %v3908_v0 = vpop.f32.mrb[5].mxu0 }
 0x172   : > { %769 = vmax.xlane.f32.xlu0 %v3908_v0 }
 0x174   : > { %v3911_v1 = vpop.f32.mrb[6].mxu0 }
 0x175   : > { %771 = vmax.xlane.f32.xlu1 %v3905_v63  ;;  %v3914_v2 = vpop.f32.mrb[7].mxu0 }
 0x176   : > { %773 = vmax.xlane.f32.xlu0 %v3914_v2 }
 0x178   : > { %v3917_v3 = vpop.f32.mrb[8].mxu0 }
 0x179   : > { %775 = vmax.xlane.f32.xlu1 %v3911_v1  ;;  %v3920_v4 = vpop.f32.mrb[9].mxu0 }
 0x17a   : > { %777 = vmax.xlane.f32.xlu0 %v3920_v4 }
 0x17c   : > { %v3923_v6 = vpop.f32.mrb[10].mxu0 }
 0x17d   : > { %779 = vmax.xlane.f32.xlu1 %v3917_v3  ;;  %v3926_v7 = vpop.f32.mrb[11].mxu0 }
 0x17e   : > { %781 = vmax.xlane.f32.xlu0 %v3926_v7 }
 0x180   : > { %v3929_v8 = vpop.f32.mrb[12].mxu0 }
 0x181   : > { %783 = vmax.xlane.f32.xlu1 %v3923_v6  ;;  %v3932_v9 = vpop.f32.mrb[13].mxu0 }
 0x182   : > { %785 = vmax.xlane.f32.xlu0 %v3932_v9 }
 0x184   : > { %v3935_v10 = vpop.f32.mrb[14].mxu0 }
 0x185   : > { %787 = vmax.xlane.f32.xlu1 %v3929_v8  ;;  %v3938_v11 = vpop.f32.mrb[15].mxu0 }
 0x186   : > { %789 = vmax.xlane.f32.xlu0 %v3938_v11 }
 0x189   : > { %791 = vmax.xlane.f32.xlu1 %v3935_v10 }
 0x1f7   : > { %v762_v25 = vpop.xlane.xlu0 %761 }
 0x1f8   : > { %v3953_v26 = vmax.f32 %v3950_v24, %v762_v25 }
 0x1fa   : > { %1371 = vst.msk [vmem:[#allocation2] sm:$0xff] %vm1065_vm4, %v3953_v26  ;;  %v768_v29 = vpop.xlane.xlu1 %767  ;;  %859 = vperm.xlu0 %3383, %v3953_v26   ;;  %v809_v17 = vsub.f32 %v3950_v24, %v3953_v26 }
 0x1fb   : > { %v3965_v32 = vmax.f32 %v3955_v27, %v768_v29  ;;  %v764_v33 = vpop.xlane.xlu0 %763 }
 0x1fc   : > { %v3968_v35 = vmax.f32 %v3957_v28, %v764_v33  ;;  %v825_v25 = vmul.f32 1.442695, %v809_v17 }
 0x1fd   : > { %1374 = vst.msk [vmem:[#allocation2 + $0x18] sm:$0xff] %vm1065_vm4, %v3965_v32  ;;  %v812_v24 = vsub.f32 %v3955_v27, %v3965_v32 }
 0x1fe   : > { %1372 = vst.msk [vmem:[#allocation2 + $0x8] sm:$0xff] %vm1065_vm4, %v3968_v35  ;;  %v766_v38 = vpop.xlane.xlu1 %765  ;;  %864 = vperm.xlu1 %3384, %v3968_v35   ;;  %3385 = vpow2.f32 %v825_v25 }
 0x1ff   : > { %v3982_v41 = vmax.f32 %v3970_v36, %v766_v38  ;;  %v770_v42 = vpop.xlane.xlu0 %769  ;;  %v831_v38 = vmul.f32 1.442695, %v812_v24 }
 0x200   : > { %v3987_v45 = vmax.f32 %v3974_v37, %v770_v42  ;;  %v4043_v42 = vld [vmem:[#allocation2 + $0x78] sm:$0xff] }
 0x201   : > { %1373 = vst.msk [vmem:[#allocation2 + $0x10] sm:$0xff] %vm1065_vm4, %v3982_v41  ;;  %3387 = vpow2.f32 %v831_v38 }
 0x202   : > { %v772_v47 = vpop.xlane.xlu1 %771  ;;  %874 = vperm.xlu1 %3384, %v3965_v32   ;;  %1375 = vst.msk [vmem:[#allocation2 + $0x20] sm:$0xff] %vm1065_vm4, %v3987_v45  ;;  %v813_v13 = vsub.f32 %v3974_v37, %v3987_v45 }
 0x203   : > { %v798_v50 = vmax.f32 %v3984_v44, %v772_v47  ;;  %v774_v51 = vpop.xlane.xlu0 %773 }
 0x204   : > { %v4002_v54 = vmax.f32 %v3991_v46, %v774_v51  ;;  %v833_v17 = vmul.f32 1.442695, %v813_v13 }
 0x205   : > { %1376 = vst.msk [vmem:[#allocation2 + $0x28] sm:$0xff] %vm1065_vm4, %v798_v50  ;;  %v814_v27 = vsub.f32 %v3984_v44, %v798_v50 }
 0x206   : > { %v776_v56 = vpop.xlane.xlu1 %775  ;;  %869 = vperm.xlu1 %3384, %v3982_v41   ;;  %1377 = vst.msk [vmem:[#allocation2 + $0x30] sm:$0xff] %vm1065_vm4, %v4002_v54 }
 0x207   : > { %v800_v5 = vmax.f32 %v3999_v53, %v776_v56  ;;  %v778_v12 = vpop.xlane.xlu0 %777  ;;  %v835_v47 = vmul.f32 1.442695, %v814_v27 }
 0x208   : > { %v4014_v15 = vmax.f32 %v4005_v55, %v778_v12 }
 0x209   : > { %1378 = vst.msk [vmem:[#allocation2 + $0x38] sm:$0xff] %vm1065_vm4, %v800_v5  ;;  %v816_v48 = vsub.f32 %v3999_v53, %v800_v5  ;;  %3389 = vpow2.f32 %v835_v47 }
 0x20a   : > { %v780_v18 = vpop.xlane.xlu1 %779  ;;  %884 = vperm.xlu1 %3384, %v798_v50   ;;  %1379 = vst.msk [vmem:[#allocation2 + $0x40] sm:$0xff] %vm1065_vm4, %v4014_v15  ;;  %v810_v50 = vsub.f32 %v3957_v28, %v3968_v35  ;;  %v811_v28 = vsub.f32 %v3970_v36, %v3982_v41  ;;  %v4068_v35 = vpop.eup %3385 }
 0x20b   : > { %v802_v19 = vmax.f32 %v754_v14, %v780_v18  ;;  %v782_v20 = vpop.xlane.xlu0 %781  ;;  %v839_v53 = vmul.f32 1.442695, %v816_v48  ;;  %v815_v18 = vsub.f32 %v3991_v46, %v4002_v54 }
 0x20c   : > { %v4024_v22 = vmax.f32 %v4017_v16, %v782_v20  ;;  %v827_v57 = vmul.f32 1.442695, %v810_v50  ;;  %v829_v12 = vmul.f32 1.442695, %v811_v28  ;;  %v817_v20 = vsub.f32 %v4005_v55, %v4014_v15 }
 0x20d   : > { %1380 = vst.msk [vmem:[#allocation2 + $0x48] sm:$0xff] %vm1065_vm4, %v802_v19  ;;  %904 = vperm.xlu0 %3383, %v802_v19   ;;  %v818_v56 = vsub.f32 %v754_v14, %v802_v19  ;;  %3391 = vpow2.f32 %v839_v53  ;;  %v4074_v14 = vpop.eup %3387 }
 0x20e   : > { %v784_v26 = vpop.xlane.xlu1 %783  ;;  %879 = vperm.xlu1 %3384, %v3987_v45   ;;  %1381 = vst.msk [vmem:[#allocation2 + $0x50] sm:$0xff] %vm1065_vm4, %v4024_v22  ;;  %3393 = vpow2.f32 %v827_v57  ;;  %v837_v45 = vmul.f32 1.442695, %v815_v18  ;;  %v841_v46 = vmul.f32 1.442695, %v817_v20 }
 0x20f   : > { %v804_v29 = vmax.f32 %v756_v21, %v784_v26  ;;  %v786_v30 = vpop.xlane.xlu0 %785  ;;  %v843_v58 = vmul.f32 1.442695, %v818_v56 }
 0x210   : > { %v4035_v33 = vmax.f32 %v4027_v23, %v786_v30 }
 0x211   : > { %1382 = vst.msk [vmem:[#allocation2 + $0x58] sm:$0xff] %vm1065_vm4, %v804_v29  ;;  %914 = vperm.xlu0 %3383, %v804_v29   ;;  %3395 = vpow2.f32 %v843_v58 }
 0x212   : > { %v788_v32 = vpop.xlane.xlu1 %787  ;;  %894 = vperm.xlu1 %3384, %v800_v5   ;;  %1383 = vst.msk [vmem:[#allocation2 + $0x60] sm:$0xff] %vm1065_vm4, %v4035_v33  ;;  %v820_v5 = vsub.f32 %v756_v21, %v804_v29  ;;  %3397 = vpow2.f32 %v829_v12 }
 0x213   : > { %v806_v39 = vmax.f32 %v758_v31, %v788_v32  ;;  %v790_v40 = vpop.xlane.xlu0 %789  ;;  %v4080_v19 = vpop.eup %3389 }
 0x214   : > { %v4046_v43 = vmax.f32 %v4038_v34, %v790_v40  ;;  %v847_v36 = vmul.f32 1.442695, %v820_v5 }
 0x215   : > { %1384 = vst.msk [vmem:[#allocation2 + $0x68] sm:$0xff] %vm1065_vm4, %v806_v39  ;;  %924 = vperm.xlu0 %3383, %v806_v39   ;;  %v822_v41 = vsub.f32 %v758_v31, %v806_v39 }
 0x216   : > { %889 = vperm.xlu1 %3384, %v4002_v54   ;;  %v792_v44 = vpop.xlane.xlu1 %791  ;;  %v823_v49 = vsub.f32 %v4038_v34, %v4046_v43  ;;  %1385 = vst.msk [vmem:[#allocation2 + $0x70] sm:$0xff] %vm1065_vm4, %v4046_v43  ;;  %3399 = vpow2.f32 %v847_v36  ;;  %v819_v54 = vsub.f32 %v4017_v16, %v4024_v22 }
 0x217   : > { %v4058_v51 = vmax.f32 %v4043_v42, %v792_v44  ;;  %v851_v37 = vmul.f32 1.442695, %v822_v41  ;;  %3401 = vpow2.f32 %v833_v17  ;;  %v4086_v21 = vpop.eup %3391 }
 0x218   : > { %v4088_v25 = vpop.eup %3393  ;;  %v845_v55 = vmul.f32 1.442695, %v819_v54 }
 0x219   : > { %v824_v52 = vsub.f32 %v4043_v42, %v4058_v51  ;;  %1386 = vst.msk [vmem:[#allocation2 + $0x78] sm:$0xff] %vm1065_vm4, %v4058_v51  ;;  %934 = vperm.xlu0 %3383, %v4058_v51   ;;  %3403 = vpow2.f32 %v851_v37 }
 0x21a   : > { %899 = vperm.xlu1 %3384, %v4014_v15   ;;  %3405 = vpow2.f32 %v837_v45  ;;  %v821_v15 = vsub.f32 %v4027_v23, %v4035_v33 }
 0x21b   : > { %v4094_v24 = vpop.eup %3395  ;;  %3407 = vpow2.f32 %v841_v46 }
 0x21c   : > { %v4096_v26 = vpop.eup %3397  ;;  %3409 = vpow2.f32 %v845_v55  ;;  %v849_v16 = vmul.f32 1.442695, %v821_v15 }
 0x21d   : > { %1100 = vperm.xlu0 %3383, %v4068_v35  }
 0x21e   : > { %909 = vperm.xlu1 %3384, %v4024_v22   ;;  %3411 = vpow2.f32 %v849_v16 }
 0x220   : > { %v4102_v29 = vpop.eup %3399 }
 0x221   : > { %1115 = vperm.xlu0 %3383, %v4074_v14   ;;  %v4104_v30 = vpop.eup %3401 }
 0x222   : > { %919 = vperm.xlu1 %3384, %v4035_v33  }
 0x223   : > { %v4108_v22 = vpop.eup %3403 }
 0x224   : > { %v4110_v31 = vpop.eup %3405 }
 0x225   : > { %1125 = vperm.xlu0 %3383, %v4080_v19   ;;  %v4114_v23 = vpop.eup %3407 }
 0x226   : > { %929 = vperm.xlu1 %3384, %v4046_v43   ;;  %v4117_v33 = vpop.eup %3409 }
 0x228   : > { %v4120_v38 = vpop.eup %3411 }
 0x229   : > { %1135 = vperm.xlu0 %3383, %v4086_v21  }
 0x22a   : > { %1105 = vperm.xlu1 %3384, %v4088_v25  }
 0x22d   : > { %1145 = vperm.xlu0 %3383, %v4094_v24  }
 0x22e   : > { %1110 = vperm.xlu1 %3384, %v4096_v26  }
 0x231   : > { %1155 = vperm.xlu0 %3383, %v4102_v29  }
 0x232   : > { %1120 = vperm.xlu1 %3384, %v4104_v30  }
 0x235   : > { %1165 = vperm.xlu0 %3383, %v4108_v22  }
 0x236   : > { %1130 = vperm.xlu1 %3384, %v4110_v31  }
 0x23a   : > { %1140 = vperm.xlu1 %3384, %v4114_v23  }
 0x23e   : > { %1150 = vperm.xlu1 %3384, %v4117_v33  }
 0x242   : > { %1160 = vperm.xlu1 %3384, %v4120_v38  }
 0x279   : > { %v860_v27 = vpop.permute.xlu0 %859 }
 0x27a   : > { %v937_v32 = vsub.f32 %v3896_v60, %v860_v27 }
 0x27c   : > { %v953_v39 = vmul.f32 1.442695, %v937_v32 }
 0x27d   : > { %v865_v40 = vpop.permute.xlu1 %864 }
 0x27e   : > { %3413 = vpow2.f32 %v953_v39  ;;  %v938_v47 = vsub.f32 %v3894_v59, %v865_v40 }
 0x280   : > { %v955_v48 = vmul.f32 1.442695, %v938_v47 }
 0x281   : > { %v875_v44 = vpop.permute.xlu1 %874 }
 0x282   : > { %3415 = vpow2.f32 %v955_v48  ;;  %v940_v50 = vsub.f32 %v3899_v61, %v875_v44 }
 0x284   : > { %v959_v53 = vmul.f32 1.442695, %v940_v50 }
 0x285   : > { %v870_v56 = vpop.permute.xlu1 %869 }
 0x286   : > { %3417 = vpow2.f32 %v959_v53  ;;  %v939_v57 = vsub.f32 %v3902_v62, %v870_v56 }
 0x288   : > { %v3414_v28 = vpop.eup %3413  ;;  %v957_v58 = vmul.f32 1.442695, %v939_v57 }
 0x289   : > { %v885_v5 = vpop.permute.xlu1 %884  ;;  %1017 = vadd.xlane.f32.xlu1 %v3414_v28  ;;  %3025 = vmatprep.mubr.f32.mxu1 %v3414_v28 }
 0x28a   : > { %3419 = vpow2.f32 %v957_v58  ;;  %v942_v60 = vsub.f32 %v3905_v63, %v885_v5 }
 0x28c   : > { %v3416_v12 = vpop.eup %3415  ;;  %v963_v59 = vmul.f32 1.442695, %v942_v60  ;;  %v905_v13 = vpop.permute.xlu0 %904 }
 0x28d   : > { %v880_v36 = vpop.permute.xlu1 %879  ;;  %1019 = vadd.xlane.f32.xlu0 %v3416_v12  ;;  %3026 = vmatmul.mubr.f32.vlgmr.msra.gmra.mrb[0].mxu1 %v3416_v12  ;;  %v946_v45 = vsub.f32 %v3917_v3, %v905_v13 }
 0x28e   : > { %3421 = vpow2.f32 %v963_v59  ;;  %v941_v61 = vsub.f32 %v3908_v0, %v880_v36 }
 0x28f   : > { %v971_v0 = vmul.f32 1.442695, %v946_v45 }
 0x290   : > { %v3418_v41 = vpop.eup %3417  ;;  %v961_v17 = vmul.f32 1.442695, %v941_v61  ;;  %v915_v62 = vpop.permute.xlu0 %914 }
 0x291   : > { %v895_v18 = vpop.permute.xlu1 %894  ;;  %1023 = vadd.xlane.f32.xlu1 %v3418_v41  ;;  %v948_v15 = vsub.f32 %v3923_v6, %v915_v62 }
 0x292   : > { %3423 = vpow2.f32 %v961_v17  ;;  %v944_v37 = vsub.f32 %v3911_v1, %v895_v18  ;;  %v855_v17 = vmul.f32 1.442695, %v824_v52 }
 0x293   : > { %v975_v3 = vmul.f32 1.442695, %v948_v15 }
 0x294   : > { %v3420_v63 = vpop.eup %3419  ;;  %v967_v20 = vmul.f32 1.442695, %v944_v37  ;;  %v925_v54 = vpop.permute.xlu0 %924 }
 0x295   : > { %v890_v46 = vpop.permute.xlu1 %889  ;;  %1021 = vadd.xlane.f32.xlu0 %v3420_v63  ;;  %3028 = vmatprep.mubr.f32.mxu1 %v3420_v63  ;;  %v950_v39 = vsub.f32 %v3929_v8, %v925_v54 }
 0x296   : > { %3425 = vpow2.f32 %v967_v20  ;;  %v943_v55 = vsub.f32 %v3914_v2, %v890_v46  ;;  %3029 = vmatmul.mubr.f32.gmra.mrb[2].mxu1 %v3418_v41  ;;  %v853_v41 = vmul.f32 1.442695, %v823_v49 }
 0x297   : > { %v979_v6 = vmul.f32 1.442695, %v950_v39 }
 0x298   : > { %v3422_v16 = vpop.eup %3421  ;;  %v965_v27 = vmul.f32 1.442695, %v943_v55  ;;  %v935_v47 = vpop.permute.xlu0 %934 }
 0x299   : > { %v900_v32 = vpop.permute.xlu1 %899  ;;  %1027 = vadd.xlane.f32.xlu1 %v3422_v16  ;;  %v952_v50 = vsub.f32 %v3935_v10, %v935_v47 }
 0x29a   : > { %3427 = vpow2.f32 %v965_v27  ;;  %v945_v1 = vsub.f32 %v3920_v4, %v900_v32  ;;  %v986_v32 = vld [vmem:[#allocation3 + $0x8] sm:$0xff] }
 0x29b   : > { %3429 = vpow2.f32 %v971_v0  ;;  %v983_v57 = vmul.f32 1.442695, %v952_v50  ;;  %v985_v0 = vld [vmem:[#allocation3] sm:$0xff] }
 0x29c   : > { %v3424_v40 = vpop.eup %3423  ;;  %v969_v48 = vmul.f32 1.442695, %v945_v1  ;;  %v4153_v34 = vpop.permute.xlu0 %1100  ;;  %v1001_v15 = vmul.f32 %v4068_v35, %v985_v0  ;;  %v995_v0 = vld [vmem:[#allocation3 + $0x50] sm:$0xff] }
 0x29d   : > { %v910_v44 = vpop.permute.xlu1 %909  ;;  %1025 = vadd.xlane.f32.xlu0 %v3424_v40  ;;  %3031 = vmatprep.mubr.f32.mxu1 %v3424_v40  ;;  %v988_v40 = vld [vmem:[#allocation3 + $0x18] sm:$0xff] }
 0x29e   : > { %3431 = vpow2.f32 %v969_v48  ;;  %v947_v2 = vsub.f32 %v3926_v7, %v910_v44  ;;  %3032 = vmatmul.mubr.f32.gmra.mrb[4].mxu1 %v3422_v16  ;;  %v1004_v48 = vmul.f32 %v4074_v14, %v988_v40 }
 0x29f   : > { %3433 = vpow2.f32 %v975_v3  ;;  %v1002_v3 = vmul.f32 %v4088_v25, %v986_v32  ;;  %v1011_v32 = vmul.f32 %v4117_v33, %v995_v0  ;;  %v999_v33 = vld [vmem:[#allocation3 + $0x70] sm:$0xff] }
 0x2a0   : > { %v3426_v53 = vpop.eup %3425  ;;  %v973_v4 = vmul.f32 1.442695, %v947_v2  ;;  %v4157_v49 = vpop.permute.xlu0 %1115  ;;  %v987_v2 = vld [vmem:[#allocation3 + $0x10] sm:$0xff] }
 0x2a1   : > { %v920_v56 = vpop.permute.xlu1 %919  ;;  %1031 = vadd.xlane.f32.xlu1 %v3426_v53  ;;  %v1003_v35 = vmul.f32 %v4096_v26, %v987_v2 }
 0x2a2   : > { %3435 = vpow2.f32 %v973_v4  ;;  %v949_v8 = vsub.f32 %v3932_v9, %v920_v56 }
 0x2a3   : > { %3437 = vpow2.f32 %v979_v6 }
 0x2a4   : > { %v3428_v28 = vpop.eup %3427  ;;  %v977_v58 = vmul.f32 1.442695, %v949_v8  ;;  %v4161_v42 = vpop.permute.xlu0 %1125  ;;  %v989_v8 = vld [vmem:[#allocation3 + $0x20] sm:$0xff] }
 0x2a5   : > { %v3430_v5 = vpop.eup %3429  ;;  %1029 = vadd.xlane.f32.xlu0 %v3428_v28  ;;  %v930_v60 = vpop.permute.xlu1 %929  ;;  %3034 = vmatprep.mubr.f32.mxu1 %v3428_v28  ;;  %v1005_v14 = vmul.f32 %v4104_v30, %v989_v8 }
 0x2a6   : > { %3439 = vpow2.f32 %v977_v58  ;;  %v951_v7 = vsub.f32 %v3938_v11, %v930_v60  ;;  %1035 = vadd.xlane.f32.xlu1 %v3430_v5  ;;  %3035 = vmatmul.mubr.f32.gmra.mrb[6].mxu1 %v3426_v53  ;;  %v990_v53 = vld [vmem:[#allocation3 + $0x28] sm:$0xff]  ;;  %v992_v58 = vld [vmem:[#allocation3 + $0x38] sm:$0xff] }
 0x2a7   : > { %3441 = vpow2.f32 %v983_v57  ;;  %v1006_v25 = vmul.f32 %v4080_v19, %v990_v53  ;;  %v1008_v26 = vmul.f32 %v4086_v21, %v992_v58  ;;  %v1084_v58 = vld [vmem:[#allocation4 + $0x10] sm:$0xff] }
 0x2a8   : > { %v3432_v10 = vpop.eup %3431  ;;  %v981_v12 = vmul.f32 1.442695, %v951_v7  ;;  %v4165_v52 = vpop.permute.xlu0 %1135  ;;  %v991_v7 = vld [vmem:[#allocation3 + $0x30] sm:$0xff] }
 0x2a9   : > { %v3434_v59 = vpop.eup %3433  ;;  %1033 = vadd.xlane.f32.xlu0 %v3432_v10  ;;  %3037 = vmatprep.mubr.f32.mxu1 %v3432_v10  ;;  %v4151_v37 = vpop.permute.xlu1 %1105  ;;  %v1007_v19 = vmul.f32 %v4110_v31, %v991_v7 }
 0x2aa   : > { %3443 = vpow2.f32 %v981_v12  ;;  %1039 = vadd.xlane.f32.xlu1 %v3434_v59  ;;  %3038 = vmatmul.mubr.f32.gmra.mrb[8].mxu1 %v3430_v5  ;;  %v994_v12 = vld [vmem:[#allocation3 + $0x48] sm:$0xff] }
 0x2ab   : > { %3445 = vpow2.f32 %v853_v41 }
 0x2ac   : > { %v3436_v9 = vpop.eup %3435  ;;  %3447 = vpow2.f32 %v855_v17  ;;  %v4169_v20 = vpop.permute.xlu0 %1145 }
 0x2ad   : > { %v3438_v13 = vpop.eup %3437  ;;  %1037 = vadd.xlane.f32.xlu0 %v3436_v9  ;;  %3040 = vmatprep.mubr.f32.mxu1 %v3436_v9  ;;  %v4155_v43 = vpop.permute.xlu1 %1110 }
 0x2ae   : > { %1043 = vadd.xlane.f32.xlu1 %v3438_v13  ;;  %3041 = vmatmul.mubr.f32.gmra.mrb[10].mxu1 %v3434_v59  ;;  %v1010_v59 = vmul.f32 %v4094_v24, %v994_v12  ;;  %v1086_v12 = vld [vmem:[#allocation4 + $0x20] sm:$0xff] }
 0x2b0   : > { %v3440_v36 = vpop.eup %3439  ;;  %v4173_v54 = vpop.permute.xlu0 %1155 }
 0x2b1   : > { %v3442_v61 = vpop.eup %3441  ;;  %1041 = vadd.xlane.f32.xlu0 %v3440_v36  ;;  %3043 = vmatprep.mubr.f32.mxu1 %v3440_v36  ;;  %v4159_v45 = vpop.permute.xlu1 %1120 }
 0x2b2   : > { %1047 = vadd.xlane.f32.xlu1 %v3442_v61  ;;  %3044 = vmatmul.mubr.f32.gmra.mrb[12].mxu1 %v3438_v13  ;;  %v993_v13 = vld [vmem:[#allocation3 + $0x40] sm:$0xff] }
 0x2b3   : > { %v1009_v21 = vmul.f32 %v4114_v23, %v993_v13  ;;  %v997_v23 = vld [vmem:[#allocation3 + $0x60] sm:$0xff] }
 0x2b4   : > { %v3444_v11 = vpop.eup %3443  ;;  %v4178_v16 = vpop.permute.xlu0 %1165 }
 0x2b5   : > { %1045 = vadd.xlane.f32.xlu0 %v3444_v11  ;;  %3046 = vmatprep.mubr.f32.mxu1 %v3444_v11  ;;  %v4145_v62 = vpop.eup %3445  ;;  %v4163_v51 = vpop.permute.xlu1 %1130 }
 0x2b6   : > { %3047 = vmatmul.mubr.f32.gmra.mrb[14].mxu1 %v3442_v61  ;;  %v4148_v18 = vpop.eup %3447  ;;  %v996_v61 = vld [vmem:[#allocation3 + $0x58] sm:$0xff] }
 0x2b7   : > { %v1012_v41 = vmul.f32 %v4102_v29, %v996_v61 }
 0x2b9   : > { %v4167_v63 = vpop.permute.xlu1 %1140 }
 0x2bd   : > { %v4171_v46 = vpop.permute.xlu1 %1150 }
 0x2c1   : > { %v4175_v55 = vpop.permute.xlu1 %1160 }
 0x2c3   : > { %1170 = vperm.xlu1 %3384, %v4145_v62  }
 0x2cb   : > { %1175 = vperm.xlu0 %3383, %v4148_v18  }
 0x316   : > { %v1018_v27 = vpop.xlane.xlu1 %1017 }
 0x317   : > { %v1049_v1 = vadd.f32 %v1018_v27, %v1001_v15  ;;  %v998_v27 = vld [vmem:[#allocation3 + $0x68] sm:$0xff] }
 0x319   : > { %1066 = vst.msk [vmem:[#allocation3] sm:$0xff] %vm1065_vm4, %v1049_v1  ;;  %v1014_v1 = vmul.f32 %v4108_v22, %v998_v27  ;;  %v1015_v22 = vmul.f32 %v4145_v62, %v999_v33  ;;  %v1085_v62 = vld [vmem:[#allocation4 + $0x18] sm:$0xff] }
 0x31a   : > { %v1020_v39 = vpop.xlane.xlu0 %1019 }
 0x31b   : > { %v1050_v47 = vadd.f32 %v1020_v39, %v1002_v3 }
 0x31d   : > { %1067 = vst.msk [vmem:[#allocation3 + $0x8] sm:$0xff] %vm1065_vm4, %v1050_v47  ;;  %v1000_v47 = vld [vmem:[#allocation3 + $0x78] sm:$0xff] }
 0x31e   : > { %v1024_v44 = vpop.xlane.xlu1 %1023 }
 0x31f   : > { %v1052_v6 = vadd.f32 %v1024_v44, %v1004_v48  ;;  %v1013_v48 = vmul.f32 %v4120_v38, %v997_v23  ;;  %v1016_v44 = vmul.f32 %v4148_v18, %v1000_v47  ;;  %v1083_v38 = vld [vmem:[#allocation4 + $0x8] sm:$0xff] }
 0x320   : > { %v1095_v23 = vld [vmem:[#allocation4 + $0x68] sm:$0xff] }
 0x321   : > { %1069 = vst.msk [vmem:[#allocation3 + $0x18] sm:$0xff] %vm1065_vm4, %v1052_v6 }
 0x322   : > { %v1022_v50 = vpop.xlane.xlu0 %1021 }
 0x323   : > { %v1051_v4 = vadd.f32 %v1022_v50, %v1003_v35 }
 0x325   : > { %1068 = vst.msk [vmem:[#allocation3 + $0x10] sm:$0xff] %vm1065_vm4, %v1051_v4 }
 0x326   : > { %v1028_v56 = vpop.xlane.xlu1 %1027 }
 0x327   : > { %v1054_v57 = vadd.f32 %v1028_v56, %v1006_v25  ;;  %v1082_v25 = vld [vmem:[#allocation4] sm:$0xff]  ;;  %v1179_v56 = vmul.f32 %v4151_v37, %v1083_v38 }
 0x328   : > { %v1178_v18 = vmul.f32 %v4153_v34, %v1082_v25  ;;  %v1087_v34 = vld [vmem:[#allocation4 + $0x28] sm:$0xff] }
 0x329   : > { %1071 = vst.msk [vmem:[#allocation3 + $0x28] sm:$0xff] %vm1065_vm4, %v1054_v57 }
 0x32a   : > { %v1026_v28 = vpop.xlane.xlu0 %1025 }
 0x32b   : > { %v1053_v5 = vadd.f32 %v1026_v28, %v1005_v14 }
 0x32d   : > { %1070 = vst.msk [vmem:[#allocation3 + $0x20] sm:$0xff] %vm1065_vm4, %v1053_v5  ;;  %v1181_v5 = vmul.f32 %v4157_v49, %v1085_v62 }
 0x32e   : > { %v1032_v60 = vpop.xlane.xlu1 %1031 }
 0x32f   : > { %v1056_v10 = vadd.f32 %v1032_v60, %v1008_v26  ;;  %v1180_v26 = vmul.f32 %v4155_v43, %v1084_v58  ;;  %v1089_v43 = vld [vmem:[#allocation4 + $0x38] sm:$0xff] }
 0x330   : > { %v1185_v61 = vmul.f32 %v4165_v52, %v1089_v43 }
 0x331   : > { %1073 = vst.msk [vmem:[#allocation3 + $0x38] sm:$0xff] %vm1065_vm4, %v1056_v10 }
 0x332   : > { %v1030_v9 = vpop.xlane.xlu0 %1029 }
 0x333   : > { %v1036_v30 = vpop.xlane.xlu1 %1035  ;;  %v1055_v36 = vadd.f32 %v1030_v9, %v1007_v19  ;;  %v1183_v19 = vmul.f32 %v4161_v42, %v1087_v34 }
 0x334   : > { %v1058_v11 = vadd.f32 %v1036_v30, %v1010_v59  ;;  %v1182_v59 = vmul.f32 %v4159_v45, %v1086_v12 }
 0x335   : > { %1072 = vst.msk [vmem:[#allocation3 + $0x30] sm:$0xff] %vm1065_vm4, %v1055_v36  ;;  %v1088_v36 = vld [vmem:[#allocation4 + $0x30] sm:$0xff] }
 0x336   : > { %1075 = vst.msk [vmem:[#allocation3 + $0x48] sm:$0xff] %vm1065_vm4, %v1058_v11  ;;  %v1034_v17 = vpop.xlane.xlu0 %1033  ;;  %v1091_v11 = vld [vmem:[#allocation4 + $0x48] sm:$0xff] }
 0x337   : > { %v1040_v15 = vpop.xlane.xlu1 %1039  ;;  %v1057_v31 = vadd.f32 %v1034_v17, %v1009_v21  ;;  %v1184_v21 = vmul.f32 %v4163_v51, %v1088_v36  ;;  %v1090_v17 = vld [vmem:[#allocation4 + $0x40] sm:$0xff] }
 0x338   : > { %v1060_v24 = vadd.f32 %v1040_v15, %v1012_v41  ;;  %v1187_v15 = vmul.f32 %v4169_v20, %v1091_v11  ;;  %v1186_v27 = vmul.f32 %v4167_v63, %v1090_v17 }
 0x339   : > { %1074 = vst.msk [vmem:[#allocation3 + $0x40] sm:$0xff] %vm1065_vm4, %v1057_v31  ;;  %v1093_v31 = vld [vmem:[#allocation4 + $0x58] sm:$0xff] }
 0x33a   : > { %1077 = vst.msk [vmem:[#allocation3 + $0x58] sm:$0xff] %vm1065_vm4, %v1060_v24  ;;  %v1038_v3 = vpop.xlane.xlu0 %1037  ;;  %v1189_v51 = vmul.f32 %v4173_v54, %v1093_v31 }
 0x33b   : > { %v1044_v39 = vpop.xlane.xlu1 %1043  ;;  %v1059_v40 = vadd.f32 %v1038_v3, %v1011_v32  ;;  %v1092_v32 = vld [vmem:[#allocation4 + $0x50] sm:$0xff] }
 0x33c   : > { %v1062_v29 = vadd.f32 %v1044_v39, %v1014_v1  ;;  %v1188_v39 = vmul.f32 %v4171_v46, %v1092_v32 }
 0x33d   : > { %1076 = vst.msk [vmem:[#allocation3 + $0x50] sm:$0xff] %vm1065_vm4, %v1059_v40  ;;  %v1094_v40 = vld [vmem:[#allocation4 + $0x60] sm:$0xff] }
 0x33e   : > { %1079 = vst.msk [vmem:[#allocation3 + $0x68] sm:$0xff] %vm1065_vm4, %v1062_v29  ;;  %v1042_v2 = vpop.xlane.xlu0 %1041 }
 0x33f   : > { %v1048_v6 = vpop.xlane.xlu1 %1047  ;;  %v1061_v35 = vadd.f32 %v1042_v2, %v1013_v48  ;;  %v1191_v48 = vmul.f32 %v4178_v16, %v1095_v23  ;;  %v1097_v2 = vld [vmem:[#allocation4 + $0x78] sm:$0xff] }
 0x340   : > { %v1064_v50 = vadd.f32 %v1048_v6, %v1016_v44  ;;  %v1190_v44 = vmul.f32 %v4175_v55, %v1094_v40  ;;  %v1096_v6 = vld [vmem:[#allocation4 + $0x70] sm:$0xff] }
 0x341   : > { %1078 = vst.msk [vmem:[#allocation3 + $0x60] sm:$0xff] %vm1065_vm4, %v1061_v35 }
 0x342   : > { %1081 = vst.msk [vmem:[#allocation3 + $0x78] sm:$0xff] %vm1065_vm4, %v1064_v50  ;;  %v1046_v53 = vpop.xlane.xlu0 %1045 }
 0x343   : > { %v1063_v4 = vadd.f32 %v1046_v53, %v1015_v22  ;;  %v1171_v46 = vpop.permute.xlu1 %1170 }
 0x345   : > { %1080 = vst.msk [vmem:[#allocation3 + $0x70] sm:$0xff] %vm1065_vm4, %v1063_v4  ;;  %v1192_v4 = vmul.f32 %v1171_v46, %v1096_v6 }
 0x34a   : > { %v1176_v54 = vpop.permute.xlu0 %1175 }
 0x34b   : > { %v1193_v53 = vmul.f32 %v1176_v54, %v1097_v2 }
 0x360   : > { %v3027_v8 = vpop.f32.mrb[0].mxu1 }
 0x361   : > { %v1340_v57 = vadd.f32 %v3027_v8, %v1179_v56  ;;  %v1260_v14 = vpop.f32.mrb[1].mxu1 }
 0x362   : > { %v1339_v28 = vadd.f32 %v1260_v14, %v1178_v18 }
 0x363   : > { %1356 = vst.msk [vmem:[#allocation4 + $0x8] sm:$0xff] %vm503_vm2, %v1340_v57 }
 0x364   : > { %1355 = vst.msk [vmem:[#allocation4] sm:$0xff] %vm503_vm2, %v1339_v28 }
 0x369   : > { %v3030_v60 = vpop.f32.mrb[2].mxu1 }
 0x36a   : > { %v1342_v7 = vadd.f32 %v3030_v60, %v1181_v5  ;;  %v1270_v10 = vpop.f32.mrb[3].mxu1 }
 0x36b   : > { %v1341_v37 = vadd.f32 %v1270_v10, %v1180_v26 }
 0x36c   : > { %1358 = vst.msk [vmem:[#allocation4 + $0x18] sm:$0xff] %vm503_vm2, %v1342_v7 }
 0x36d   : > { %1357 = vst.msk [vmem:[#allocation4 + $0x10] sm:$0xff] %vm503_vm2, %v1341_v37 }
 0x371   : > { %v3033_v9 = vpop.f32.mrb[4].mxu1 }
 0x372   : > { %v1344_v13 = vadd.f32 %v3033_v9, %v1183_v19  ;;  %v1280_v30 = vpop.f32.mrb[5].mxu1 }
 0x373   : > { %v1343_v49 = vadd.f32 %v1280_v30, %v1182_v59 }
 0x374   : > { %1360 = vst.msk [vmem:[#allocation4 + $0x28] sm:$0xff] %vm503_vm2, %v1344_v13 }
 0x375   : > { %1359 = vst.msk [vmem:[#allocation4 + $0x20] sm:$0xff] %vm503_vm2, %v1343_v49 }
 0x379   : > { %v3036_v41 = vpop.f32.mrb[6].mxu1 }
 0x37a   : > { %v1346_v42 = vadd.f32 %v3036_v41, %v1185_v61  ;;  %v1290_v0 = vpop.f32.mrb[7].mxu1 }
 0x37b   : > { %v1345_v45 = vadd.f32 %v1290_v0, %v1184_v21 }
 0x37c   : > { %1362 = vst.msk [vmem:[#allocation4 + $0x38] sm:$0xff] %vm503_vm2, %v1346_v42 }
 0x37d   : > { %1361 = vst.msk [vmem:[#allocation4 + $0x30] sm:$0xff] %vm503_vm2, %v1345_v45  ;;  %v3039_v24 = vpop.f32.mrb[8].mxu1 }
 0x37e   : > { %v1348_v52 = vadd.f32 %v3039_v24, %v1187_v15  ;;  %v1300_v1 = vpop.f32.mrb[9].mxu1 }
 0x37f   : > { %v1347_v3 = vadd.f32 %v1300_v1, %v1186_v27 }
 0x380   : > { %1364 = vst.msk [vmem:[#allocation4 + $0x48] sm:$0xff] %vm503_vm2, %v1348_v52 }
 0x381   : > { %1363 = vst.msk [vmem:[#allocation4 + $0x40] sm:$0xff] %vm503_vm2, %v1347_v3  ;;  %v3042_v20 = vpop.f32.mrb[10].mxu1 }
 0x382   : > { %v1350_v47 = vadd.f32 %v3042_v20, %v1189_v51  ;;  %v1310_v63 = vpop.f32.mrb[11].mxu1 }
 0x383   : > { %v1349_v29 = vadd.f32 %v1310_v63, %v1188_v39 }
 0x384   : > { %1366 = vst.msk [vmem:[#allocation4 + $0x58] sm:$0xff] %vm503_vm2, %v1350_v47 }
 0x385   : > { %1365 = vst.msk [vmem:[#allocation4 + $0x50] sm:$0xff] %vm503_vm2, %v1349_v29  ;;  %v3045_v33 = vpop.f32.mrb[12].mxu1 }
 0x386   : > { %v1352_v35 = vadd.f32 %v3045_v33, %v1191_v48  ;;  %v1320_v50 = vpop.f32.mrb[13].mxu1 }
 0x387   : > { %v1351_v22 = vadd.f32 %v1320_v50, %v1190_v44 }
 0x388   : > { %1368 = vst.msk [vmem:[#allocation4 + $0x68] sm:$0xff] %vm503_vm2, %v1352_v35 }
 0x389   : > { %1367 = vst.msk [vmem:[#allocation4 + $0x60] sm:$0xff] %vm503_vm2, %v1351_v22  ;;  %v3048_v16 = vpop.f32.mrb[14].mxu1 }
 0x38a   : > { %v1354_v38 = vadd.f32 %v3048_v16, %v1193_v53  ;;  %v1330_v25 = vpop.f32.mrb[15].mxu1 }
 0x38b   : > { %v1353_v55 = vadd.f32 %v1330_v25, %v1192_v4 }
 0x38c   : > { %1370 = vst.msk [vmem:[#allocation4 + $0x78] sm:$0xff] %vm503_vm2, %v1354_v38 }
 0x38d   : > { %1369 = vst.msk [vmem:[#allocation4 + $0x70] sm:$0xff] %vm503_vm2, %v1353_v55 }
 0x38e PF: > { %p2774_p10 = scmp.ne.s32.totalorder %s3727_s20, %s3724_s18 }
 0x38f   : > { %v1407_v56 = vld [vmem:[%s3741_s10] sm:$0xff] (!%p2774_p10)  ;;  %v1408_v18 = vld [vmem:[%s3741_s10 + $0x8] sm:$0xff] (!%p2774_p10)  ;;  %vm1455_vm5 = vcmask (!%p2774_p10), 64512   ;;  %v1409_v8 = vld [vmem:[%s3741_s10 + $0x10] sm:$0xff] (!%p2774_p10)  ;;  %v1697_v22 = vlaneseq (!%p2774_p10) }
 0x390   : > { %1390 = sbr.rel (%p2774_p10) target bundleno = 1817 (0x719), region = 44  ;;  %v3241_v57 = vpack.c.bf16 (!%p2774_p10), %v1408_v18, %v1407_v56  ;;  %vm4248_vm6 = vmpackc.low (!%p2774_p10), %vm1455_vm5, %vm1455_vm5  ;;  %v1410_v28 = vld [vmem:[%s3741_s10 + $0x18] sm:$0xff] (!%p2774_p10)  ;;  %v1391_v58 = vld [vmem:[%s3736_s28] sm:$0xff] (!%p2774_p10) }
 0x391   : > { %v3247_v62 = vpack.c.bf16 (!%p2774_p10), %v1410_v28, %v1409_v8  ;;  %v1411_v5 = vld [vmem:[%s3741_s10 + $0x20] sm:$0xff] (!%p2774_p10)  ;;  %v1412_v26 = vld [vmem:[%s3741_s10 + $0x28] sm:$0xff] (!%p2774_p10)  ;;  %v1439_v60 = vmul.f32 (!%p2774_p10), 0.35355338, %v1391_v58  ;;  %v1413_v10 = vld [vmem:[%s3741_s10 + $0x30] sm:$0xff] (!%p2774_p10)  ;;  %v4329_v53 = vshrl.u32 (!%p2774_p10), %v1697_v22, 7 }
 0x392   : > { %3243 = vmatprep.subr.msk.bf16.mxu0 (!%p2774_p10), %vm4248_vm6, %v3241_v57  ;;  %v3253_v7 = vpack.c.bf16 (!%p2774_p10), %v1412_v26, %v1411_v5  ;;  %v1414_v37 = vld [vmem:[%s3741_s10 + $0x38] sm:$0xff] (!%p2774_p10)  ;;  %v1415_v12 = vld [vmem:[%s3741_s10 + $0x40] sm:$0xff] (!%p2774_p10)  ;;  %v1416_v19 = vld [vmem:[%s3741_s10 + $0x48] sm:$0xff] (!%p2774_p10)  ;;  %v4331_v4 = vand.u32 (!%p2774_p10), 127, %v1697_v22 }
 0x393   : > { %3246 = vmatpush3.bf16.xpose.msk.msra.mxu0 (!%p2774_p10), %vm4248_vm6, %v3241_v57  ;;  %3081 = vmatprep.mubr.msk.f32.mxu0 (!%p2774_p10), %vm1455_vm5, %v1439_v60  ;;  %v3259_v34 = vpack.c.bf16 (!%p2774_p10), %v1414_v37, %v1413_v10  ;;  %v3265_v59 = vpack.c.bf16 (!%p2774_p10), %v1416_v19, %v1415_v12  ;;  %v1417_v9 = vld [vmem:[%s3741_s10 + $0x50] sm:$0xff] (!%p2774_p10)  ;;  %v1418_v13 = vld [vmem:[%s3741_s10 + $0x58] sm:$0xff] (!%p2774_p10)  ;;  %v1419_v49 = vld [vmem:[%s3741_s10 + $0x60] sm:$0xff] (!%p2774_p10)  ;;  %v1701_v16 = vadd.s32 (!%p2774_p10), 24, %v4329_v53  ;;  %v1699_v38 = vadd.s32 (!%p2774_p10), 8, %v4329_v53 }
 0x394   : > { %3249 = vmatprep.subr.msk.bf16.mxu0 (!%p2774_p10), %vm4248_vm6, %v3247_v62  ;;  %v3271_v30 = vpack.c.bf16 (!%p2774_p10), %v1418_v13, %v1417_v9  ;;  %v1420_v43 = vld [vmem:[%s3741_s10 + $0x68] sm:$0xff] (!%p2774_p10)  ;;  %v1421_v61 = vld [vmem:[%s3741_s10 + $0x70] sm:$0xff] (!%p2774_p10)  ;;  %v1422_v11 = vld [vmem:[%s3741_s10 + $0x78] sm:$0xff] (!%p2774_p10)  ;;  %vm1716_vm7 = vcmp.le.s32.totalorder (!%p2774_p10), %v4331_v4, %v4329_v53  ;;  %v1700_v55 = vadd.s32 (!%p2774_p10), 16, %v4329_v53  ;;  %v1702_v8 = vadd.s32 (!%p2774_p10), 32, %v4329_v53 }
 0x395   : > { %v3277_v36 = vpack.c.bf16 (!%p2774_p10), %v1420_v43, %v1419_v49  ;;  %v3283_v21 = vpack.c.bf16 (!%p2774_p10), %v1422_v11, %v1421_v61  ;;  %v1392_v41 = vld [vmem:[%s3736_s28 + $0x8] sm:$0xff] (!%p2774_p10)  ;;  %v1393_v17 = vld [vmem:[%s3736_s28 + $0x10] sm:$0xff] (!%p2774_p10)  ;;  %v1394_v45 = vld [vmem:[%s3736_s28 + $0x18] sm:$0xff] (!%p2774_p10)  ;;  %vm1719_vm8 = vcmp.le.s32.totalorder (!%p2774_p10), %v4331_v4, %v1701_v16  ;;  %vm1717_vm9 = vcmp.le.s32.totalorder (!%p2774_p10), %v4331_v4, %v1699_v38 }
 0x396   : > { %v1440_v42 = vmul.f32 (!%p2774_p10), 0.35355338, %v1392_v41  ;;  %v1441_v0 = vmul.f32 (!%p2774_p10), 0.35355338, %v1393_v17  ;;  %v1395_v15 = vld [vmem:[%s3736_s28 + $0x20] sm:$0xff] (!%p2774_p10)  ;;  %v1396_v24 = vld [vmem:[%s3736_s28 + $0x28] sm:$0xff] (!%p2774_p10)  ;;  %vm1718_vm10 = vcmp.le.s32.totalorder (!%p2774_p10), %v4331_v4, %v1700_v55  ;;  %vm1720_vm11 = vcmp.le.s32.totalorder (!%p2774_p10), %v4331_v4, %v1702_v8 }
 0x397   : > { %v1442_v31 = vmul.f32 0.35355338, %v1394_v45  ;;  %v1443_v27 = vmul.f32 0.35355338, %v1395_v15  ;;  %v1397_v32 = vld [vmem:[%s3736_s28 + $0x30] sm:$0xff]  ;;  %v1398_v3 = vld [vmem:[%s3736_s28 + $0x38] sm:$0xff] }
 0x398   : > { %v1444_v52 = vmul.f32 0.35355338, %v1396_v24  ;;  %v1445_v1 = vmul.f32 0.35355338, %v1397_v32  ;;  %v1399_v51 = vld [vmem:[%s3736_s28 + $0x40] sm:$0xff]  ;;  %v1400_v20 = vld [vmem:[%s3736_s28 + $0x48] sm:$0xff] }
 0x399   : > { %v1446_v23 = vmul.f32 0.35355338, %v1398_v3  ;;  %v1447_v39 = vmul.f32 0.35355338, %v1399_v51  ;;  %v1401_v40 = vld [vmem:[%s3736_s28 + $0x50] sm:$0xff]  ;;  %v1402_v29 = vld [vmem:[%s3736_s28 + $0x58] sm:$0xff] }
 0x39a   : > { %v1448_v47 = vmul.f32 0.35355338, %v1400_v20  ;;  %v1449_v63 = vmul.f32 0.35355338, %v1401_v40  ;;  %v1403_v48 = vld [vmem:[%s3736_s28 + $0x60] sm:$0xff]  ;;  %v1404_v54 = vld [vmem:[%s3736_s28 + $0x68] sm:$0xff] }
 0x39b   : > { %3252 = vmatpush3.bf16.xpose.msk.msra.mxu0 %vm4248_vm6, %v3247_v62  ;;  %v1450_v44 = vmul.f32 0.35355338, %v1402_v29  ;;  %v1451_v2 = vmul.f32 0.35355338, %v1403_v48  ;;  %v1405_v33 = vld [vmem:[%s3736_s28 + $0x70] sm:$0xff]  ;;  %v1406_v35 = vld [vmem:[%s3736_s28 + $0x78] sm:$0xff] }
 0x39c   : > { %3255 = vmatprep.subr.msk.bf16.mxu0 %vm4248_vm6, %v3253_v7  ;;  %v1452_v6 = vmul.f32 0.35355338, %v1404_v54  ;;  %v1453_v46 = vmul.f32 0.35355338, %v1405_v33  ;;  %v1454_v50 = vmul.f32 0.35355338, %v1406_v35 }
 0x39d   : > { %v1703_v14 = vadd.s32 40, %v4329_v53  ;;  %v1704_v26 = vadd.s32 48, %v4329_v53  ;;  %v1706_v12 = vadd.s32 64, %v4329_v53  ;;  %v1708_v49 = vadd.s32 80, %v4329_v53  ;;  %v1423_v40 = vld [vmem:[%s3748_s9] sm:$0xff]  ;;  %v1426_v48 = vld [vmem:[%s3748_s9 + $0x18] sm:$0xff] }
 0x39e   : > { %v1710_v17 = vadd.s32 96, %v4329_v53  ;;  %v1713_v32 = vadd.s32 120, %v4329_v53  ;;  %v1428_v54 = vld [vmem:[%s3748_s9 + $0x28] sm:$0xff] }
 0x39f   : > { %vm1721_vm12 = vcmp.le.s32.totalorder %v4331_v4, %v1703_v14  ;;  %vm1722_vm13 = vcmp.le.s32.totalorder %v4331_v4, %v1704_v26  ;;  %vm1724_vm15 = vcmp.le.s32.totalorder %v4331_v4, %v1706_v12  ;;  %vm1726_vm1 = vcmp.le.s32.totalorder %v4331_v4, %v1708_v49  ;;  %v4428_v16 = vld [vmem:[#allocation2 + $0x8] sm:$0xff]  ;;  %v4445_v26 = vld [vmem:[#allocation2 + $0x20] sm:$0xff] }
 0x3a0   : > { %vm1728_vm3 = vcmp.le.s32.totalorder %v4331_v4, %v1710_v17  ;;  %v1432_v55 = vld [vmem:[%s3748_s9 + $0x48] sm:$0xff] }
 0x3a3   : > { %3258 = vmatpush3.bf16.xpose.msk.msra.mxu0 %vm4248_vm6, %v3253_v7  ;;  %v1705_v7 = vadd.s32 56, %v4329_v53 }
 0x3a4   : > { %3261 = vmatprep.subr.msk.bf16.mxu0 %vm4248_vm6, %v3259_v34 }
 0x3a5   : > { %vm1723_vm14 = vcmp.le.s32.totalorder %v4331_v4, %v1705_v7  ;;  %v1433_v7 = vld [vmem:[%s3748_s9 + $0x50] sm:$0xff] }
 0x3ab   : > { %3264 = vmatpush3.bf16.xpose.msk.msra.mxu0 %vm4248_vm6, %v3259_v34 }
 0x3ac   : > { %3267 = vmatprep.subr.msk.bf16.mxu0 %vm4248_vm6, %v3265_v59 }
 0x3b3   : > { %3270 = vmatpush3.bf16.xpose.msk.msra.mxu0 %vm4248_vm6, %v3265_v59  ;;  %v1707_v59 = vadd.s32 72, %v4329_v53 }
 0x3b4   : > { %3273 = vmatprep.subr.msk.bf16.mxu0 %vm4248_vm6, %v3271_v30 }
 0x3b5   : > { %vm1725_vm0 = vcmp.le.s32.totalorder %v4331_v4, %v1707_v59 }
 0x3bb   : > { %3276 = vmatpush3.bf16.xpose.msk.msra.mxu0 %vm4248_vm6, %v3271_v30 }
 0x3bc   : > { %3279 = vmatprep.subr.msk.bf16.mxu0 %vm4248_vm6, %v3277_v36 }
 0x3c3   : > { %3282 = vmatpush3.bf16.xpose.msk.msra.mxu0 %vm4248_vm6, %v3277_v36  ;;  %v1709_v36 = vadd.s32 88, %v4329_v53 }
 0x3c4   : > { %3285 = vmatprep.subr.msk.bf16.mxu0 %vm4248_vm6, %v3283_v21 }
 0x3c5   : > { %vm1727_vm2 = vcmp.le.s32.totalorder %v4331_v4, %v1709_v36 }
 0x3cb   : > { %3288 = vmatpush3.bf16.xpose.msk.msra.mxu0 %vm4248_vm6, %v3283_v21  ;;  %v3634_v21 = vmov 0  }
 0x3cc   : > { %3449 = vset.pattern.permute.xlu0 %v3634_v21  ;;  %3450 = vset.pattern.permute.xlu1 %v3634_v21  ;;  %v1436_v21 = vld [vmem:[%s3748_s9 + $0x68] sm:$0xff] }
 0x3d2   : > { %3082 = vmatmul.mubr.msk.f32.vlgmr.msra.gmra.mrb[0].mxu0 %vm1455_vm5, %v1440_v42 }
 0x3d3   : > { %3084 = vmatprep.mubr.msk.f32.mxu0 %vm1455_vm5, %v1441_v0  ;;  %v1711_v0 = vadd.s32 104, %v4329_v53 }
 0x3d5   : > { %vm1729_vm4 = vcmp.le.s32.totalorder %v4331_v4, %v1711_v0 }
 0x3d6   : > { %3085 = vmatmul.mubr.msk.f32.gmra.mrb[2].mxu0 %vm1455_vm5, %v1442_v31 }
 0x3d7   : > { %3087 = vmatprep.mubr.msk.f32.mxu0 %vm1455_vm5, %v1443_v27  ;;  %v1712_v27 = vadd.s32 112, %v4329_v53 }
 0x3d9   : > { %vm1730_vm6 = vcmp.le.s32.totalorder %v4331_v4, %v1712_v27 }
 0x3da   : > { %3088 = vmatmul.mubr.msk.f32.gmra.mrb[4].mxu0 %vm1455_vm5, %v1444_v52 }
 0x3db   : > { %3090 = vmatprep.mubr.msk.f32.mxu0 %vm1455_vm5, %v1445_v1 }
 0x3de   : > { %3091 = vmatmul.mubr.msk.f32.gmra.mrb[6].mxu0 %vm1455_vm5, %v1446_v23 }
 0x3df   : > { %3093 = vmatprep.mubr.msk.f32.mxu0 %vm1455_vm5, %v1447_v39 }
 0x3e2   : > { %3094 = vmatmul.mubr.msk.f32.gmra.mrb[8].mxu0 %vm1455_vm5, %v1448_v47  ;;  %v1424_v47 = vld [vmem:[%s3748_s9 + $0x8] sm:$0xff] }
 0x3e3   : > { %3096 = vmatprep.mubr.msk.f32.mxu0 %vm1455_vm5, %v1449_v63  ;;  %v1425_v63 = vld [vmem:[%s3748_s9 + $0x10] sm:$0xff]  ;;  %v3289_v29 = vpack.c.bf16 %v1424_v47, %v1423_v40  ;;  %v1438_v40 = vld [vmem:[%s3748_s9 + $0x78] sm:$0xff] }
 0x3e5   : > { %3290 = vmatprep.subr.bf16.mxu1 %v3289_v29 }
 0x3e6   : > { %3097 = vmatmul.mubr.msk.f32.gmra.mrb[10].mxu0 %vm1455_vm5, %v1450_v44  ;;  %v3293_v44 = vpack.c.bf16 %v1426_v48, %v1425_v63  ;;  %3292 = vmatpush3.bf16.msra.mxu1 %v3289_v29  ;;  %v4493_v48 = vld [vmem:[#allocation2 + $0x48] sm:$0xff] }
 0x3e7   : > { %3099 = vmatprep.mubr.msk.f32.mxu0 %vm1455_vm5, %v1451_v2  ;;  %v1427_v2 = vld [vmem:[%s3748_s9 + $0x20] sm:$0xff] }
 0x3e8   : > { %3294 = vmatprep.subr.bf16.mxu1 %v3293_v44  ;;  %v3297_v33 = vpack.c.bf16 %v1428_v54, %v1427_v2  ;;  %v4502_v54 = vld [vmem:[#allocation2 + $0x50] sm:$0xff] }
 0x3ea   : > { %3100 = vmatmul.mubr.msk.f32.gmra.mrb[12].mxu0 %vm1455_vm5, %v1452_v6  ;;  %v1429_v6 = vld [vmem:[%s3748_s9 + $0x30] sm:$0xff]  ;;  %3296 = vmatpush3.bf16.msra.mxu1 %v3293_v44 }
 0x3eb   : > { %3102 = vmatprep.mubr.msk.f32.mxu0 %vm1455_vm5, %v1453_v46  ;;  %v1430_v46 = vld [vmem:[%s3748_s9 + $0x38] sm:$0xff]  ;;  %3298 = vmatprep.subr.bf16.mxu1 %v3297_v33 }
 0x3ec   : > { %v3301_v35 = vpack.c.bf16 %v1430_v46, %v1429_v6 }
 0x3ee   : > { %3103 = vmatmul.mubr.msk.f32.gmra.mrb[14].mxu0 %vm1455_vm5, %v1454_v50  ;;  %3300 = vmatpush3.bf16.msra.mxu1 %v3297_v33  ;;  %v4421_v50 = vld [vmem:[#allocation2] sm:$0xff] }
 0x3ef   : > { %3302 = vmatprep.subr.bf16.mxu1 %v3301_v35 }
 0x3f2   : > { %3304 = vmatpush3.bf16.msra.mxu1 %v3301_v35 }
 0x4a5   : > { %v3083_v25 = vpop.f32.mrb[0].mxu0 }
 0x4a6   : > { %v1618_v56 = vpop.f32.mrb[1].mxu0  ;;  %v4349_v58 = vsel %vm1717_vm9, %v3083_v25, -inf  ;;  %v1431_v25 = vld [vmem:[%s3748_s9 + $0x40] sm:$0xff] }
 0x4a7   : > { %v4338_v18 = vsel %vm1716_vm7, %v1618_v56, -inf  ;;  %vm1731_vm7 = vcmp.le.s32.totalorder %v4331_v4, %v1713_v32  ;;  %v4426_v4 = vld [vmem:[#allocation2 + $0x18] sm:$0xff]  ;;  %v4481_v32 = vld [vmem:[#allocation2 + $0x40] sm:$0xff] }
 0x4a8   : > { %1764 = vmax.xlane.f32.xlu0 %v4338_v18 }
 0x4a9   : > { %v3086_v57 = vpop.f32.mrb[2].mxu0 }
 0x4aa   : > { %v4346_v28 = vsel %vm1719_vm8, %v3086_v57, -inf  ;;  %v1628_v62 = vpop.f32.mrb[3].mxu0  ;;  %vm2068_vm8 = vcmask 7168   ;;  %v3305_v57 = vpack.c.bf16 %v1432_v55, %v1431_v25 }
 0x4ab   : > { %1770 = vmax.xlane.f32.xlu1 %v4346_v28  ;;  %v4352_v5 = vsel %vm1718_vm10, %v1628_v62, -inf  ;;  %v4441_v62 = vld [vmem:[#allocation2 + $0x10] sm:$0xff] }
 0x4ac   : > { %1766 = vmax.xlane.f32.xlu0 %v4349_v58  ;;  %3306 = vmatprep.subr.bf16.mxu1 %v3305_v57 }
 0x4ad   : > { %v3089_v60 = vpop.f32.mrb[4].mxu0  ;;  %3308 = vmatpush3.bf16.msra.mxu1 %v3305_v57 }
 0x4ae   : > { %v1638_v10 = vpop.f32.mrb[5].mxu0  ;;  %v4361_v34 = vsel %vm1721_vm12, %v3089_v60, -inf }
 0x4af   : > { %1768 = vmax.xlane.f32.xlu1 %v4352_v5  ;;  %v4359_v37 = vsel %vm1720_vm11, %v1638_v10, -inf  ;;  %v1434_v10 = vld [vmem:[%s3748_s9 + $0x58] sm:$0xff] }
 0x4b0   : > { %1772 = vmax.xlane.f32.xlu0 %v4359_v37  ;;  %v3309_v59 = vpack.c.bf16 %v1434_v10, %v1433_v7 }
 0x4b1   : > { %v3092_v19 = vpop.f32.mrb[6].mxu0 }
 0x4b2   : > { %v1648_v9 = vpop.f32.mrb[7].mxu0  ;;  %v4371_v30 = vsel %vm1723_vm14, %v3092_v19, -inf  ;;  %3310 = vmatprep.subr.bf16.mxu1 %v3309_v59 }
 0x4b3   : > { %1774 = vmax.xlane.f32.xlu1 %v4361_v34  ;;  %v4369_v13 = vsel %vm1722_vm13, %v1648_v9, -inf  ;;  %v4455_v9 = vld [vmem:[#allocation2 + $0x28] sm:$0xff]  ;;  %3312 = vmatpush3.bf16.msra.mxu1 %v3309_v59 }
 0x4b4   : > { %1776 = vmax.xlane.f32.xlu0 %v4369_v13 }
 0x4b5   : > { %v3095_v43 = vpop.f32.mrb[8].mxu0 }
 0x4b6   : > { %v1658_v61 = vpop.f32.mrb[9].mxu0  ;;  %v4381_v41 = vsel %vm1725_vm0, %v3095_v43, -inf  ;;  %v4462_v43 = vld [vmem:[#allocation2 + $0x30] sm:$0xff] }
 0x4b7   : > { %1778 = vmax.xlane.f32.xlu1 %v4371_v30  ;;  %v4379_v11 = vsel %vm1724_vm15, %v1658_v61, -inf  ;;  %v1435_v61 = vld [vmem:[%s3748_s9 + $0x60] sm:$0xff] }
 0x4b8   : > { %1780 = vmax.xlane.f32.xlu0 %v4379_v11  ;;  %v3313_v0 = vpack.c.bf16 %v1436_v21, %v1435_v61 }
 0x4b9   : > { %v3098_v42 = vpop.f32.mrb[10].mxu0 }
 0x4ba   : > { %v1668_v45 = vpop.f32.mrb[11].mxu0  ;;  %v4391_v31 = vsel %vm1727_vm2, %v3098_v42, -inf  ;;  %3314 = vmatprep.subr.bf16.mxu1 %v3313_v0 }
 0x4bb   : > { %1782 = vmax.xlane.f32.xlu1 %v4381_v41  ;;  %v4389_v15 = vsel %vm1726_vm1, %v1668_v45, -inf  ;;  %v4472_v45 = vld [vmem:[#allocation2 + $0x38] sm:$0xff]  ;;  %3316 = vmatpush3.bf16.msra.mxu1 %v3313_v0 }
 0x4bc   : > { %1784 = vmax.xlane.f32.xlu0 %v4389_v15 }
 0x4bd   : > { %v3101_v24 = vpop.f32.mrb[12].mxu0 }
 0x4be   : > { %v1678_v52 = vpop.f32.mrb[13].mxu0  ;;  %v4401_v3 = vsel %vm1729_vm4, %v3101_v24, -inf }
 0x4bf   : > { %1786 = vmax.xlane.f32.xlu1 %v4391_v31  ;;  %v4399_v1 = vsel %vm1728_vm3, %v1678_v52, -inf }
 0x4c0   : > { %1788 = vmax.xlane.f32.xlu0 %v4399_v1 }
 0x4c1   : > { %v3104_v51 = vpop.f32.mrb[14].mxu0 }
 0x4c2   : > { %v1688_v23 = vpop.f32.mrb[15].mxu0  ;;  %v4409_v20 = vsel %vm1731_vm7, %v3104_v51, -inf }
 0x4c3   : > { %1790 = vmax.xlane.f32.xlu1 %v4401_v3  ;;  %v4407_v39 = vsel %vm1730_vm6, %v1688_v23, -inf  ;;  %v1437_v23 = vld [vmem:[%s3748_s9 + $0x70] sm:$0xff] }
 0x4c4   : > { %1792 = vmax.xlane.f32.xlu0 %v4407_v39  ;;  %v3317_v29 = vpack.c.bf16 %v1438_v40, %v1437_v23 }
 0x4c6   : > { %3318 = vmatprep.subr.bf16.mxu1 %v3317_v29 }
 0x4c7   : > { %1794 = vmax.xlane.f32.xlu1 %v4409_v20  ;;  %3320 = vmatpush3.bf16.msra.mxu1 %v3317_v29 }
 0x535   : > { %v1765_v22 = vpop.xlane.xlu0 %1764 }
 0x536   : > { %v4424_v53 = vmax.f32 %v4421_v50, %v1765_v22 }
 0x538   : > { %2374 = vst.msk [vmem:[#allocation2] sm:$0xff] %vm2068_vm8, %v4424_v53  ;;  %v1771_v38 = vpop.xlane.xlu1 %1770  ;;  %1862 = vperm.xlu0 %3449, %v4424_v53   ;;  %v1812_v33 = vsub.f32 %v4421_v50, %v4424_v53  ;;  %v4524_v53 = vld [vmem:[#allocation2 + $0x60] sm:$0xff] }
 0x539   : > { %v4436_v56 = vmax.f32 %v4426_v4, %v1771_v38  ;;  %v1767_v8 = vpop.xlane.xlu0 %1766  ;;  %v4514_v38 = vld [vmem:[#allocation2 + $0x58] sm:$0xff] }
 0x53a   : > { %v4439_v14 = vmax.f32 %v4428_v16, %v1767_v8  ;;  %v1828_v55 = vmul.f32 1.442695, %v1812_v33 }
 0x53b   : > { %2377 = vst.msk [vmem:[#allocation2 + $0x18] sm:$0xff] %vm2068_vm8, %v4436_v56  ;;  %v1815_v8 = vsub.f32 %v4426_v4, %v4436_v56 }
 0x53c   : > { %2375 = vst.msk [vmem:[#allocation2 + $0x8] sm:$0xff] %vm2068_vm8, %v4439_v14  ;;  %v1769_v60 = vpop.xlane.xlu1 %1768  ;;  %1867 = vperm.xlu1 %3450, %v4439_v14   ;;  %3451 = vpow2.f32 %v1828_v55  ;;  %v1813_v33 = vsub.f32 %v4428_v16, %v4439_v14 }
 0x53d   : > { %v4453_v12 = vmax.f32 %v4441_v62, %v1769_v60  ;;  %v1773_v19 = vpop.xlane.xlu0 %1772 }
 0x53e   : > { %v4458_v49 = vmax.f32 %v4445_v26, %v1773_v19  ;;  %v4536_v19 = vld [vmem:[#allocation2 + $0x68] sm:$0xff]  ;;  %v1830_v55 = vmul.f32 1.442695, %v1813_v33 }
 0x53f   : > { %2376 = vst.msk [vmem:[#allocation2 + $0x10] sm:$0xff] %vm2068_vm8, %v4453_v12 }
 0x540   : > { %v1775_v36 = vpop.xlane.xlu1 %1774  ;;  %1877 = vperm.xlu1 %3450, %v4436_v56   ;;  %2378 = vst.msk [vmem:[#allocation2 + $0x20] sm:$0xff] %vm2068_vm8, %v4458_v49  ;;  %v4546_v56 = vld [vmem:[#allocation2 + $0x70] sm:$0xff]  ;;  %v1816_v14 = vsub.f32 %v4445_v26, %v4458_v49 }
 0x541   : > { %v4470_v17 = vmax.f32 %v4455_v9, %v1775_v36  ;;  %v1777_v42 = vpop.xlane.xlu0 %1776  ;;  %v1834_v36 = vmul.f32 1.442695, %v1815_v8  ;;  %v1814_v8 = vsub.f32 %v4441_v62, %v4453_v12 }
 0x542   : > { %v4475_v27 = vmax.f32 %v4462_v43, %v1777_v42 }
 0x543   : > { %v1817_v24 = vsub.f32 %v4455_v9, %v4470_v17  ;;  %2379 = vst.msk [vmem:[#allocation2 + $0x28] sm:$0xff] %vm2068_vm8, %v4470_v17  ;;  %3453 = vpow2.f32 %v1834_v36  ;;  %v1832_v16 = vmul.f32 1.442695, %v1814_v8  ;;  %v1836_v36 = vmul.f32 1.442695, %v1816_v14 }
 0x544   : > { %v1779_v52 = vpop.xlane.xlu1 %1778  ;;  %1872 = vperm.xlu1 %3450, %v4453_v12   ;;  %v1818_v51 = vsub.f32 %v4462_v43, %v4475_v27  ;;  %2380 = vst.msk [vmem:[#allocation2 + $0x30] sm:$0xff] %vm2068_vm8, %v4475_v27  ;;  %3455 = vpow2.f32 %v1830_v55 }
 0x545   : > { %v4491_v47 = vmax.f32 %v4472_v45, %v1779_v52  ;;  %v1781_v63 = vpop.xlane.xlu0 %1780  ;;  %v4556_v52 = vld [vmem:[#allocation2 + $0x78] sm:$0xff]  ;;  %3457 = vpow2.f32 %v1832_v16 }
 0x546   : > { %v4496_v44 = vmax.f32 %v4481_v32, %v1781_v63  ;;  %3459 = vpow2.f32 %v1836_v36 }
 0x547   : > { %v1819_v2 = vsub.f32 %v4472_v45, %v4491_v47  ;;  %2381 = vst.msk [vmem:[#allocation2 + $0x38] sm:$0xff] %vm2068_vm8, %v4491_v47 }
 0x548   : > { %v1783_v6 = vpop.xlane.xlu1 %1782  ;;  %1887 = vperm.xlu1 %3450, %v4470_v17   ;;  %v1820_v46 = vsub.f32 %v4481_v32, %v4496_v44  ;;  %2382 = vst.msk [vmem:[#allocation2 + $0x40] sm:$0xff] %vm2068_vm8, %v4496_v44 }
 0x549   : > { %v4512_v35 = vmax.f32 %v4493_v48, %v1783_v6  ;;  %v1785_v22 = vpop.xlane.xlu0 %1784  ;;  %v1842_v43 = vmul.f32 1.442695, %v1819_v2 }
 0x54a   : > { %v4517_v25 = vmax.f32 %v4502_v54, %v1785_v22 }
 0x54b   : > { %v1821_v50 = vsub.f32 %v4493_v48, %v4512_v35  ;;  %2383 = vst.msk [vmem:[#allocation2 + $0x48] sm:$0xff] %vm2068_vm8, %v4512_v35  ;;  %1907 = vperm.xlu0 %3449, %v4512_v35  }
 0x54c   : > { %v1787_v57 = vpop.xlane.xlu1 %1786  ;;  %1882 = vperm.xlu1 %3450, %v4458_v49   ;;  %v1822_v60 = vsub.f32 %v4502_v54, %v4517_v25  ;;  %2384 = vst.msk [vmem:[#allocation2 + $0x50] sm:$0xff] %vm2068_vm8, %v4517_v25 }
 0x54d   : > { %v4534_v7 = vmax.f32 %v4514_v38, %v1787_v57  ;;  %v1789_v10 = vpop.xlane.xlu0 %1788  ;;  %v4584_v57 = vpop.eup %3451  ;;  %v1846_v9 = vmul.f32 1.442695, %v1821_v50 }
 0x54e   : > { %v4539_v59 = vmax.f32 %v4524_v53, %v1789_v10  ;;  %v4590_v10 = vpop.eup %3453 }
 0x54f   : > { %2385 = vst.msk [vmem:[#allocation2 + $0x58] sm:$0xff] %vm2068_vm8, %v4534_v7  ;;  %1917 = vperm.xlu0 %3449, %v4534_v7   ;;  %v4595_v62 = vpop.eup %3455 }
 0x550   : > { %v1791_v61 = vpop.xlane.xlu1 %1790  ;;  %1897 = vperm.xlu1 %3450, %v4491_v47   ;;  %v1824_v21 = vsub.f32 %v4524_v53, %v4539_v59  ;;  %2386 = vst.msk [vmem:[#allocation2 + $0x60] sm:$0xff] %vm2068_vm8, %v4539_v59  ;;  %v4598_v12 = vpop.eup %3457 }
 0x551   : > { %v4554_v42 = vmax.f32 %v4536_v19, %v1791_v61  ;;  %v1793_v0 = vpop.xlane.xlu0 %1792  ;;  %v4601_v26 = vpop.eup %3459 }
 0x552   : > { %v4559_v23 = vmax.f32 %v4546_v56, %v1793_v0 }
 0x553   : > { %2387 = vst.msk [vmem:[#allocation2 + $0x68] sm:$0xff] %vm2068_vm8, %v4554_v42  ;;  %1927 = vperm.xlu0 %3449, %v4554_v42   ;;  %v4808_v2 = vsub.f32 %v4536_v19, %v4554_v42 }
 0x554   : > { %1892 = vperm.xlu1 %3450, %v4475_v27   ;;  %v1795_v63 = vpop.xlane.xlu1 %1794  ;;  %2388 = vst.msk [vmem:[#allocation2 + $0x70] sm:$0xff] %vm2068_vm8, %v4559_v23  ;;  %v1852_v27 = vmul.f32 1.442695, %v1824_v21  ;;  %v4806_v17 = vsub.f32 %v4546_v56, %v4559_v23 }
 0x555   : > { %v4574_v6 = vmax.f32 %v4556_v52, %v1795_v63  ;;  %v1854_v54 = vmul.f32 1.442695, %v4808_v2 }
 0x556   : > { %v1856_v45 = vmul.f32 1.442695, %v4806_v17 }
 0x557   : > { %2389 = vst.msk [vmem:[#allocation2 + $0x78] sm:$0xff] %vm2068_vm8, %v4574_v6  ;;  %1937 = vperm.xlu0 %3449, %v4574_v6  }
 0x558   : > { %1902 = vperm.xlu1 %3450, %v4496_v44  }
 0x55b   : > { %2103 = vperm.xlu0 %3449, %v4584_v57  }
 0x55c   : > { %1912 = vperm.xlu1 %3450, %v4517_v25  }
 0x55f   : > { %2118 = vperm.xlu0 %3449, %v4590_v10  }
 0x560   : > { %1922 = vperm.xlu1 %3450, %v4539_v59  }
 0x564   : > { %1932 = vperm.xlu1 %3450, %v4559_v23  }
 0x568   : > { %2108 = vperm.xlu1 %3450, %v4595_v62  }
 0x56c   : > { %2113 = vperm.xlu1 %3450, %v4598_v12  }
 0x570   : > { %2123 = vperm.xlu1 %3450, %v4601_v26  }
 0x5b7   : > { %v1863_v49 = vpop.permute.xlu0 %1862 }
 0x5b8   : > { %v1940_v61 = vsub.f32 %v4338_v18, %v1863_v49 }
 0x5ba   : > { %v1956_v0 = vmul.f32 1.442695, %v1940_v61 }
 0x5bb   : > { %v1868_v63 = vpop.permute.xlu1 %1867 }
 0x5bc   : > { %3461 = vpow2.f32 %v1956_v0  ;;  %v1941_v33 = vsub.f32 %v4349_v58, %v1868_v63 }
 0x5be   : > { %v1958_v55 = vmul.f32 1.442695, %v1941_v33 }
 0x5bf   : > { %v1878_v8 = vpop.permute.xlu1 %1877 }
 0x5c0   : > { %3463 = vpow2.f32 %v1958_v55  ;;  %v1943_v16 = vsub.f32 %v4346_v28, %v1878_v8 }
 0x5c2   : > { %v1962_v14 = vmul.f32 1.442695, %v1943_v16 }
 0x5c3   : > { %v1873_v36 = vpop.permute.xlu1 %1872 }
 0x5c4   : > { %3465 = vpow2.f32 %v1962_v14  ;;  %v1942_v22 = vsub.f32 %v4352_v5, %v1873_v36 }
 0x5c6   : > { %v3462_v40 = vpop.eup %3461  ;;  %v1960_v4 = vmul.f32 1.442695, %v1942_v22 }
 0x5c7   : > { %v1888_v29 = vpop.permute.xlu1 %1887  ;;  %2020 = vadd.xlane.f32.xlu1 %v3462_v40  ;;  %3137 = vmatprep.mubr.f32.mxu1 %v3462_v40 }
 0x5c8   : > { %3467 = vpow2.f32 %v1960_v4  ;;  %v1945_v18 = vsub.f32 %v4361_v34, %v1888_v29 }
 0x5ca   : > { %v3464_v49 = vpop.eup %3463  ;;  %v1966_v58 = vmul.f32 1.442695, %v1945_v18  ;;  %v1908_v61 = vpop.permute.xlu0 %1907 }
 0x5cb   : > { %v1883_v0 = vpop.permute.xlu1 %1882  ;;  %2022 = vadd.xlane.f32.xlu0 %v3464_v49  ;;  %3138 = vmatmul.mubr.f32.vlgmr.msra.gmra.mrb[0].mxu1 %v3464_v49  ;;  %v1949_v4 = vsub.f32 %v4381_v41, %v1908_v61 }
 0x5cc   : > { %3469 = vpow2.f32 %v1966_v58  ;;  %v1944_v28 = vsub.f32 %v4359_v37, %v1883_v0 }
 0x5cd   : > { %v1974_v37 = vmul.f32 1.442695, %v1949_v4 }
 0x5ce   : > { %v3466_v63 = vpop.eup %3465  ;;  %v1964_v33 = vmul.f32 1.442695, %v1944_v28  ;;  %v1918_v5 = vpop.permute.xlu0 %1917 }
 0x5cf   : > { %v1898_v55 = vpop.permute.xlu1 %1897  ;;  %2026 = vadd.xlane.f32.xlu1 %v3466_v63  ;;  %v1951_v14 = vsub.f32 %v4391_v31, %v1918_v5 }
 0x5d0   : > { %3471 = vpow2.f32 %v1964_v33  ;;  %v1947_v40 = vsub.f32 %v4371_v30, %v1898_v55 }
 0x5d1   : > { %v1978_v41 = vmul.f32 1.442695, %v1951_v14 }
 0x5d2   : > { %v3468_v34 = vpop.eup %3467  ;;  %v1970_v29 = vmul.f32 1.442695, %v1947_v40  ;;  %v1928_v8 = vpop.permute.xlu0 %1927 }
 0x5d3   : > { %v1893_v22 = vpop.permute.xlu1 %1892  ;;  %2024 = vadd.xlane.f32.xlu0 %v3468_v34  ;;  %3140 = vmatprep.mubr.f32.mxu1 %v3468_v34  ;;  %v1953_v58 = vsub.f32 %v4401_v3, %v1928_v8 }
 0x5d4   : > { %3473 = vpow2.f32 %v1970_v29  ;;  %v1946_v16 = vsub.f32 %v4369_v13, %v1893_v22  ;;  %3141 = vmatmul.mubr.f32.gmra.mrb[2].mxu1 %v3466_v63 }
 0x5d5   : > { %v1982_v31 = vmul.f32 1.442695, %v1953_v58 }
 0x5d6   : > { %v3470_v36 = vpop.eup %3469  ;;  %v1968_v18 = vmul.f32 1.442695, %v1946_v16  ;;  %v1938_v0 = vpop.permute.xlu0 %1937 }
 0x5d7   : > { %v1903_v49 = vpop.permute.xlu1 %1902  ;;  %2030 = vadd.xlane.f32.xlu1 %v3470_v36  ;;  %v1955_v63 = vsub.f32 %v4409_v20, %v1938_v0 }
 0x5d8   : > { %3475 = vpow2.f32 %v1968_v18  ;;  %v1948_v30 = vsub.f32 %v4379_v11, %v1903_v49  ;;  %v1840_v18 = vmul.f32 1.442695, %v1818_v51  ;;  %v1844_v49 = vmul.f32 1.442695, %v1820_v46 }
 0x5d9   : > { %3477 = vpow2.f32 %v1974_v37  ;;  %v1986_v40 = vmul.f32 1.442695, %v1955_v63  ;;  %v4807_v51 = vsub.f32 %v4514_v38, %v4534_v7  ;;  %v4809_v38 = vsub.f32 %v4556_v52, %v4574_v6  ;;  %v1988_v52 = vld [vmem:[#allocation3] sm:$0xff] }
 0x5da   : > { %v3472_v61 = vpop.eup %3471  ;;  %v1972_v28 = vmul.f32 1.442695, %v1948_v30  ;;  %v1838_v30 = vmul.f32 1.442695, %v1817_v24  ;;  %v4684_v21 = vpop.permute.xlu0 %2103  ;;  %v2004_v23 = vmul.f32 %v4584_v57, %v1988_v52 }
 0x5db   : > { %v1913_v33 = vpop.permute.xlu1 %1912  ;;  %2028 = vadd.xlane.f32.xlu0 %v3472_v61  ;;  %3143 = vmatprep.mubr.f32.mxu1 %v3472_v61  ;;  %v1850_v47 = vmul.f32 1.442695, %v4807_v51  ;;  %v1858_v25 = vmul.f32 1.442695, %v4809_v38  ;;  %v1989_v61 = vld [vmem:[#allocation3 + $0x8] sm:$0xff] }
 0x5dc   : > { %3479 = vpow2.f32 %v1972_v28  ;;  %v1950_v13 = vsub.f32 %v4389_v15, %v1913_v33  ;;  %3144 = vmatmul.mubr.f32.gmra.mrb[4].mxu1 %v3470_v36  ;;  %v2005_v28 = vmul.f32 %v4595_v62, %v1989_v61  ;;  %v2000_v61 = vld [vmem:[#allocation3 + $0x60] sm:$0xff] }
 0x5dd   : > { %3481 = vpow2.f32 %v1978_v41  ;;  %v1848_v41 = vmul.f32 1.442695, %v1822_v60 }
 0x5de   : > { %v3474_v5 = vpop.eup %3473  ;;  %v1976_v11 = vmul.f32 1.442695, %v1950_v13  ;;  %v4689_v6 = vpop.permute.xlu0 %2118  ;;  %v1991_v13 = vld [vmem:[#allocation3 + $0x18] sm:$0xff] }
 0x5df   : > { %v1923_v55 = vpop.permute.xlu1 %1922  ;;  %2034 = vadd.xlane.f32.xlu1 %v3474_v5  ;;  %v2007_v63 = vmul.f32 %v4590_v10, %v1991_v13 }
 0x5e0   : > { %3483 = vpow2.f32 %v1976_v11  ;;  %v1952_v3 = vsub.f32 %v4399_v1, %v1923_v55  ;;  %v1990_v11 = vld [vmem:[#allocation3 + $0x10] sm:$0xff] }
 0x5e1   : > { %3485 = vpow2.f32 %v1982_v31 }
 0x5e2   : > { %v3476_v4 = vpop.eup %3475  ;;  %v1980_v34 = vmul.f32 1.442695, %v1952_v3  ;;  %v2006_v3 = vmul.f32 %v4598_v12, %v1990_v11 }
 0x5e3   : > { %v3478_v29 = vpop.eup %3477  ;;  %2032 = vadd.xlane.f32.xlu0 %v3476_v4  ;;  %v1933_v22 = vpop.permute.xlu1 %1932  ;;  %3146 = vmatprep.mubr.f32.mxu1 %v3476_v4  ;;  %v1993_v4 = vld [vmem:[#allocation3 + $0x28] sm:$0xff] }
 0x5e4   : > { %3487 = vpow2.f32 %v1980_v34  ;;  %v1954_v15 = vsub.f32 %v4407_v39, %v1933_v22  ;;  %2038 = vadd.xlane.f32.xlu1 %v3478_v29  ;;  %3147 = vmatmul.mubr.f32.gmra.mrb[6].mxu1 %v3474_v5 }
 0x5e5   : > { %3489 = vpow2.f32 %v1986_v40 }
 0x5e6   : > { %v3480_v20 = vpop.eup %3479  ;;  %v1984_v8 = vmul.f32 1.442695, %v1954_v15  ;;  %v1992_v15 = vld [vmem:[#allocation3 + $0x20] sm:$0xff] }
 0x5e7   : > { %v3482_v16 = vpop.eup %3481  ;;  %2036 = vadd.xlane.f32.xlu0 %v3480_v20  ;;  %3149 = vmatprep.mubr.f32.mxu1 %v3480_v20  ;;  %v4680_v59 = vpop.permute.xlu1 %2108 }
 0x5e8   : > { %3491 = vpow2.f32 %v1984_v8  ;;  %2042 = vadd.xlane.f32.xlu1 %v3482_v16  ;;  %3150 = vmatmul.mubr.f32.gmra.mrb[8].mxu1 %v3478_v29  ;;  %v2008_v8 = vmul.f32 %v4601_v26, %v1992_v15 }
 0x5e9   : > { %3493 = vpow2.f32 %v1840_v18 }
 0x5ea   : > { %v3484_v1 = vpop.eup %3483  ;;  %3495 = vpow2.f32 %v1844_v49  ;;  %v1997_v49 = vld [vmem:[#allocation3 + $0x48] sm:$0xff] }
 0x5eb   : > { %v3486_v37 = vpop.eup %3485  ;;  %2040 = vadd.xlane.f32.xlu0 %v3484_v1  ;;  %3152 = vmatprep.mubr.f32.mxu1 %v3484_v1  ;;  %3497 = vpow2.f32 %v1838_v30  ;;  %v4682_v56 = vpop.permute.xlu1 %2113  ;;  %v1995_v1 = vld [vmem:[#allocation3 + $0x38] sm:$0xff] }
 0x5ec   : > { %2046 = vadd.xlane.f32.xlu1 %v3486_v37  ;;  %3153 = vmatmul.mubr.f32.gmra.mrb[10].mxu1 %v3482_v16  ;;  %3499 = vpow2.f32 %v1848_v41 }
 0x5ed   : > { %3501 = vpow2.f32 %v1842_v43 }
 0x5ee   : > { %v3488_v14 = vpop.eup %3487  ;;  %3503 = vpow2.f32 %v1852_v27  ;;  %v1996_v27 = vld [vmem:[#allocation3 + $0x40] sm:$0xff] }
 0x5ef   : > { %v3490_v36 = vpop.eup %3489  ;;  %2044 = vadd.xlane.f32.xlu0 %v3488_v14  ;;  %3155 = vmatprep.mubr.f32.mxu1 %v3488_v14  ;;  %3505 = vpow2.f32 %v1846_v9  ;;  %v4686_v42 = vpop.permute.xlu1 %2123 }
 0x5f0   : > { %2050 = vadd.xlane.f32.xlu1 %v3490_v36  ;;  %3156 = vmatmul.mubr.f32.gmra.mrb[12].mxu1 %v3486_v37  ;;  %3507 = vpow2.f32 %v1856_v45  ;;  %v1999_v45 = vld [vmem:[#allocation3 + $0x58] sm:$0xff] }
 0x5f1   : > { %3509 = vpow2.f32 %v1850_v47 }
 0x5f2   : > { %v3492_v39 = vpop.eup %3491  ;;  %3511 = vpow2.f32 %v1854_v54 }
 0x5f3   : > { %2048 = vadd.xlane.f32.xlu0 %v3492_v39  ;;  %3158 = vmatprep.mubr.f32.mxu1 %v3492_v39  ;;  %v4638_v32 = vpop.eup %3493  ;;  %3513 = vpow2.f32 %v1858_v25  ;;  %v1994_v39 = vld [vmem:[#allocation3 + $0x30] sm:$0xff]  ;;  %v2001_v25 = vld [vmem:[#allocation3 + $0x68] sm:$0xff] }
 0x5f4   : > { %3159 = vmatmul.mubr.f32.gmra.mrb[14].mxu1 %v3490_v36  ;;  %v4647_v24 = vpop.eup %3495  ;;  %v2010_v41 = vmul.f32 %v4638_v32, %v1994_v39 }
 0x5f5   : > { %v3498_v44 = vpop.eup %3497 }
 0x5f6   : > { %v4653_v48 = vpop.eup %3499  ;;  %v2009_v29 = vmul.f32 %v3498_v44, %v1993_v4 }
 0x5f7   : > { %v3502_v46 = vpop.eup %3501 }
 0x5f8   : > { %v4659_v35 = vpop.eup %3503  ;;  %v2011_v14 = vmul.f32 %v3502_v46, %v1995_v1 }
 0x5f9   : > { %v4665_v50 = vpop.eup %3505 }
 0x5fa   : > { %v4667_v53 = vpop.eup %3507  ;;  %v2013_v26 = vmul.f32 %v4665_v50, %v1997_v49 }
 0x5fb   : > { %v4671_v60 = vpop.eup %3509 }
 0x5fc   : > { %v4674_v7 = vpop.eup %3511  ;;  %v2015_v2 = vmul.f32 %v4671_v60, %v1999_v45 }
 0x5fd   : > { %v4677_v19 = vpop.eup %3513 }
 0x601   : > { %2133 = vperm.xlu1 %3450, %v4638_v32   ;;  %v1998_v32 = vld [vmem:[#allocation3 + $0x50] sm:$0xff] }
 0x605   : > { %2143 = vperm.xlu1 %3450, %v4647_v24  }
 0x609   : > { %2153 = vperm.xlu1 %3450, %v4653_v48   ;;  %2128 = vperm.xlu0 %3449, %v3498_v44   ;;  %v2012_v44 = vmul.f32 %v4647_v24, %v1996_v27  ;;  %v2017_v24 = vmul.f32 %v4674_v7, %v2001_v25  ;;  %v2089_v27 = vld [vmem:[#allocation4 + $0x20] sm:$0xff]  ;;  %v2094_v25 = vld [vmem:[#allocation4 + $0x48] sm:$0xff] }
 0x60a   : > { %v2185_v45 = vmul.f32 %v4686_v42, %v2089_v27 }
 0x60d   : > { %2163 = vperm.xlu1 %3450, %v4659_v35   ;;  %2138 = vperm.xlu0 %3449, %v3502_v46  }
 0x611   : > { %2173 = vperm.xlu1 %3450, %v4667_v53   ;;  %2148 = vperm.xlu0 %3449, %v4665_v50  }
 0x615   : > { %2158 = vperm.xlu0 %3449, %v4671_v60  }
 0x619   : > { %2168 = vperm.xlu0 %3449, %v4674_v7   ;;  %v2002_v7 = vld [vmem:[#allocation3 + $0x70] sm:$0xff] }
 0x61a   : > { %v2018_v4 = vmul.f32 %v4667_v53, %v2002_v7 }
 0x61d   : > { %2178 = vperm.xlu0 %3449, %v4677_v19  }
 0x654   : > { %v2021_v58 = vpop.xlane.xlu1 %2020 }
 0x655   : > { %v2052_v0 = vadd.f32 %v2021_v58, %v2004_v23  ;;  %v2014_v23 = vmul.f32 %v4653_v48, %v1998_v32  ;;  %v2091_v32 = vld [vmem:[#allocation4 + $0x30] sm:$0xff] }
 0x657   : > { %2069 = vst.msk [vmem:[#allocation3] sm:$0xff] %vm2068_vm8, %v2052_v0 }
 0x658   : > { %v2023_v33 = vpop.xlane.xlu0 %2022 }
 0x659   : > { %v2053_v31 = vadd.f32 %v2023_v33, %v2005_v28  ;;  %v2003_v28 = vld [vmem:[#allocation3 + $0x78] sm:$0xff] }
 0x65a   : > { %v2019_v48 = vmul.f32 %v4677_v19, %v2003_v28  ;;  %v2096_v28 = vld [vmem:[#allocation4 + $0x58] sm:$0xff] }
 0x65b   : > { %2070 = vst.msk [vmem:[#allocation3 + $0x8] sm:$0xff] %vm2068_vm8, %v2053_v31 }
 0x65c   : > { %v2027_v5 = vpop.xlane.xlu1 %2026 }
 0x65d   : > { %v2055_v55 = vadd.f32 %v2027_v5, %v2007_v63  ;;  %v2016_v63 = vmul.f32 %v4659_v35, %v2000_v61 }
 0x65e   : > { %v2406_v57 = vld [vmem:[#allocation3] sm:$0xff] }
 0x65f   : > { %2072 = vst.msk [vmem:[#allocation3 + $0x18] sm:$0xff] %vm2068_vm8, %v2055_v55  ;;  %2424 = vperm.xlu1 %3450, %v2406_v57  }
 0x660   : > { %v2025_v40 = vpop.xlane.xlu0 %2024 }
 0x661   : > { %v2054_v34 = vadd.f32 %v2025_v40, %v2006_v3 }
 0x662   : > { %v2407_v62 = vld [vmem:[#allocation3 + $0x8] sm:$0xff] }
 0x663   : > { %2071 = vst.msk [vmem:[#allocation3 + $0x10] sm:$0xff] %vm2068_vm8, %v2054_v34  ;;  %2429 = vperm.xlu0 %3449, %v2407_v62  }
 0x664   : > { %v2031_v22 = vpop.xlane.xlu1 %2030 }
 0x665   : > { %v2057_v10 = vadd.f32 %v2031_v22, %v2009_v29 }
 0x666   : > { %v2409_v20 = vld [vmem:[#allocation3 + $0x18] sm:$0xff] }
 0x667   : > { %2074 = vst.msk [vmem:[#allocation3 + $0x28] sm:$0xff] %vm2068_vm8, %v2057_v10  ;;  %2439 = vperm.xlu0 %3449, %v2409_v20   ;;  %v2086_v10 = vld [vmem:[#allocation4 + $0x8] sm:$0xff]  ;;  %v2085_v20 = vld [vmem:[#allocation4] sm:$0xff] }
 0x668   : > { %v2029_v16 = vpop.xlane.xlu0 %2028  ;;  %v2182_v53 = vmul.f32 %v4680_v59, %v2086_v10  ;;  %v2099_v10 = vld [vmem:[#allocation4 + $0x70] sm:$0xff] }
 0x669   : > { %v2056_v12 = vadd.f32 %v2029_v16, %v2008_v8  ;;  %v2181_v8 = vmul.f32 %v4684_v21, %v2085_v20  ;;  %v2090_v21 = vld [vmem:[#allocation4 + $0x28] sm:$0xff] }
 0x66a   : > { %v2408_v37 = vld [vmem:[#allocation3 + $0x10] sm:$0xff] }
 0x66b   : > { %2073 = vst.msk [vmem:[#allocation3 + $0x20] sm:$0xff] %vm2068_vm8, %v2056_v12  ;;  %2434 = vperm.xlu1 %3450, %v2408_v37  }
 0x66c   : > { %v2035_v36 = vpop.xlane.xlu1 %2034 }
 0x66d   : > { %v2059_v18 = vadd.f32 %v2035_v36, %v2011_v14  ;;  %v2088_v14 = vld [vmem:[#allocation4 + $0x18] sm:$0xff]  ;;  %v2087_v36 = vld [vmem:[#allocation4 + $0x10] sm:$0xff] }
 0x66e   : > { %v2411_v30 = vld [vmem:[#allocation3 + $0x28] sm:$0xff]  ;;  %v2183_v49 = vmul.f32 %v4682_v56, %v2087_v36 }
 0x66f   : > { %2076 = vst.msk [vmem:[#allocation3 + $0x38] sm:$0xff] %vm2068_vm8, %v2059_v18  ;;  %2449 = vperm.xlu0 %3449, %v2411_v30   ;;  %v2184_v18 = vmul.f32 %v4689_v6, %v2088_v14 }
 0x670   : > { %v2033_v43 = vpop.xlane.xlu0 %2032 }
 0x671   : > { %v2039_v9 = vpop.xlane.xlu1 %2038  ;;  %v2058_v17 = vadd.f32 %v2033_v43, %v2010_v41 }
 0x672   : > { %v2061_v51 = vadd.f32 %v2039_v9, %v2013_v26  ;;  %v2410_v47 = vld [vmem:[#allocation3 + $0x20] sm:$0xff] }
 0x673   : > { %2075 = vst.msk [vmem:[#allocation3 + $0x30] sm:$0xff] %vm2068_vm8, %v2058_v17  ;;  %2444 = vperm.xlu1 %3450, %v2410_v47  }
 0x674   : > { %2078 = vst.msk [vmem:[#allocation3 + $0x48] sm:$0xff] %vm2068_vm8, %v2061_v51  ;;  %v2037_v54 = vpop.xlane.xlu0 %2036 }
 0x675   : > { %v2043_v46 = vpop.xlane.xlu1 %2042  ;;  %v2060_v38 = vadd.f32 %v2037_v54, %v2012_v44  ;;  %v2092_v54 = vld [vmem:[#allocation4 + $0x38] sm:$0xff] }
 0x676   : > { %v2063_v50 = vadd.f32 %v2043_v46, %v2015_v2  ;;  %v2413_v52 = vld [vmem:[#allocation3 + $0x38] sm:$0xff] }
 0x677   : > { %2077 = vst.msk [vmem:[#allocation3 + $0x40] sm:$0xff] %vm2068_vm8, %v2060_v38  ;;  %2459 = vperm.xlu0 %3449, %v2413_v52  }
 0x678   : > { %2080 = vst.msk [vmem:[#allocation3 + $0x58] sm:$0xff] %vm2068_vm8, %v2063_v50  ;;  %v2041_v58 = vpop.xlane.xlu0 %2040 }
 0x679   : > { %v2047_v0 = vpop.xlane.xlu1 %2046  ;;  %v2062_v60 = vadd.f32 %v2041_v58, %v2014_v23  ;;  %v2093_v23 = vld [vmem:[#allocation4 + $0x40] sm:$0xff] }
 0x67a   : > { %v2065_v33 = vadd.f32 %v2047_v0, %v2017_v24  ;;  %v2412_v13 = vld [vmem:[#allocation3 + $0x30] sm:$0xff] }
 0x67b   : > { %2079 = vst.msk [vmem:[#allocation3 + $0x50] sm:$0xff] %vm2068_vm8, %v2062_v60  ;;  %v2415_v31 = vld [vmem:[#allocation3 + $0x48] sm:$0xff]  ;;  %2454 = vperm.xlu1 %3450, %v2412_v13   ;;  %v2095_v13 = vld [vmem:[#allocation4 + $0x50] sm:$0xff] }
 0x67c   : > { %2082 = vst.msk [vmem:[#allocation3 + $0x68] sm:$0xff] %vm2068_vm8, %v2065_v33  ;;  %2469 = vperm.xlu0 %3449, %v2415_v31   ;;  %v2045_v5 = vpop.xlane.xlu0 %2044 }
 0x67d   : > { %v2051_v11 = vpop.xlane.xlu1 %2050  ;;  %v2064_v55 = vadd.f32 %v2045_v5, %v2016_v63 }
 0x67e   : > { %v2067_v57 = vadd.f32 %v2051_v11, %v2019_v48  ;;  %v2414_v3 = vld [vmem:[#allocation3 + $0x40] sm:$0xff] }
 0x67f   : > { %2081 = vst.msk [vmem:[#allocation3 + $0x60] sm:$0xff] %vm2068_vm8, %v2064_v55  ;;  %v2417_v40 = vld [vmem:[#allocation3 + $0x58] sm:$0xff]  ;;  %2464 = vperm.xlu1 %3450, %v2414_v3  }
 0x680   : > { %2084 = vst.msk [vmem:[#allocation3 + $0x78] sm:$0xff] %vm2068_vm8, %v2067_v57  ;;  %2479 = vperm.xlu0 %3449, %v2417_v40   ;;  %v2049_v35 = vpop.xlane.xlu0 %2048  ;;  %v2098_v57 = vld [vmem:[#allocation4 + $0x68] sm:$0xff]  ;;  %v2097_v40 = vld [vmem:[#allocation4 + $0x60] sm:$0xff] }
 0x681   : > { %v2066_v34 = vadd.f32 %v2049_v35, %v2018_v4  ;;  %v2134_v9 = vpop.permute.xlu1 %2133 }
 0x682   : > { %v2416_v62 = vld [vmem:[#allocation3 + $0x50] sm:$0xff]  ;;  %v2187_v38 = vmul.f32 %v2134_v9, %v2091_v32 }
 0x683   : > { %2083 = vst.msk [vmem:[#allocation3 + $0x70] sm:$0xff] %vm2068_vm8, %v2066_v34  ;;  %v2419_v19 = vld [vmem:[#allocation3 + $0x68] sm:$0xff]  ;;  %2474 = vperm.xlu1 %3450, %v2416_v62  }
 0x684   : > { %2489 = vperm.xlu0 %3449, %v2419_v19  }
 0x685   : > { %v2144_v2 = vpop.permute.xlu1 %2143 }
 0x686   : > { %v2418_v29 = vld [vmem:[#allocation3 + $0x60] sm:$0xff]  ;;  %v2189_v60 = vmul.f32 %v2144_v2, %v2093_v23 }
 0x687   : > { %v2421_v22 = vld [vmem:[#allocation3 + $0x78] sm:$0xff]  ;;  %2484 = vperm.xlu1 %3450, %v2418_v29  }
 0x688   : > { %2499 = vperm.xlu0 %3449, %v2421_v22   ;;  %v2129_v39 = vpop.permute.xlu0 %2128  ;;  %v2100_v29 = vld [vmem:[#allocation4 + $0x78] sm:$0xff] }
 0x689   : > { %v2186_v17 = vmul.f32 %v2129_v39, %v2090_v21  ;;  %v2154_v24 = vpop.permute.xlu1 %2153 }
 0x68a   : > { %v2420_v15 = vld [vmem:[#allocation3 + $0x70] sm:$0xff]  ;;  %v2191_v55 = vmul.f32 %v2154_v24, %v2095_v13 }
 0x68b   : > { %2494 = vperm.xlu1 %3450, %v2420_v15  }
 0x68c   : > { %v2139_v43 = vpop.permute.xlu0 %2138 }
 0x68d   : > { %v2188_v46 = vmul.f32 %v2139_v43, %v2092_v54  ;;  %v2164_v7 = vpop.permute.xlu1 %2163 }
 0x68e   : > { %v2193_v19 = vmul.f32 %v2164_v7, %v2097_v40 }
 0x690   : > { %v2149_v44 = vpop.permute.xlu0 %2148 }
 0x691   : > { %v2190_v0 = vmul.f32 %v2149_v44, %v2094_v25  ;;  %v2174_v20 = vpop.permute.xlu1 %2173 }
 0x694   : > { %v2159_v50 = vpop.permute.xlu0 %2158 }
 0x695   : > { %v2192_v11 = vmul.f32 %v2159_v50, %v2096_v28 }
 0x698   : > { %v2169_v48 = vpop.permute.xlu0 %2168 }
 0x699   : > { %v2194_v62 = vmul.f32 %v2169_v48, %v2098_v57 }
 0x69c   : > { %v2179_v22 = vpop.permute.xlu0 %2178 }
 0x69e   : > { %v3139_v16 = vpop.f32.mrb[0].mxu1 }
 0x69f   : > { %v2343_v1 = vadd.f32 %v3139_v16, %v2182_v53  ;;  %v2263_v12 = vpop.f32.mrb[1].mxu1 }
 0x6a0   : > { %v2342_v37 = vadd.f32 %v2263_v12, %v2181_v8  ;;  %v2195_v12 = vmul.f32 %v2174_v20, %v2099_v10 }
 0x6a1   : > { %2359 = vst.msk [vmem:[#allocation4 + $0x8] sm:$0xff] %vm1455_vm5, %v2343_v1  ;;  %v2196_v1 = vmul.f32 %v2179_v22, %v2100_v29 }
 0x6a2   : > { %2358 = vst.msk [vmem:[#allocation4] sm:$0xff] %vm1455_vm5, %v2342_v37 }
 0x6a7   : > { %v3142_v30 = vpop.f32.mrb[2].mxu1 }
 0x6a8   : > { %v2345_v41 = vadd.f32 %v3142_v30, %v2184_v18  ;;  %v2273_v59 = vpop.f32.mrb[3].mxu1  ;;  %v2391_v27 = vld [vmem:[#allocation4 + $0x8] sm:$0xff] }
 0x6a9   : > { %v2344_v26 = vadd.f32 %v2273_v59, %v2183_v49  ;;  %v2390_v59 = vld [vmem:[#allocation4] sm:$0xff] }
 0x6aa   : > { %2361 = vst.msk [vmem:[#allocation4 + $0x18] sm:$0xff] %vm1455_vm5, %v2345_v41 }
 0x6ab   : > { %2360 = vst.msk [vmem:[#allocation4 + $0x10] sm:$0xff] %vm1455_vm5, %v2344_v26 }
 0x6af   : > { %v3145_v51 = vpop.f32.mrb[4].mxu1 }
 0x6b0   : > { %v2347_v47 = vadd.f32 %v3145_v51, %v2186_v17  ;;  %v2283_v6 = vpop.f32.mrb[5].mxu1 }
 0x6b1   : > { %v2346_v56 = vadd.f32 %v2283_v6, %v2185_v45  ;;  %v2393_v51 = vld [vmem:[#allocation4 + $0x18] sm:$0xff] }
 0x6b2   : > { %2363 = vst.msk [vmem:[#allocation4 + $0x28] sm:$0xff] %vm1455_vm5, %v2347_v47 }
 0x6b3   : > { %2362 = vst.msk [vmem:[#allocation4 + $0x20] sm:$0xff] %vm1455_vm5, %v2346_v56  ;;  %v2392_v56 = vld [vmem:[#allocation4 + $0x10] sm:$0xff] }
 0x6b7   : > { %v3148_v52 = vpop.f32.mrb[6].mxu1 }
 0x6b8   : > { %v2349_v42 = vadd.f32 %v3148_v52, %v2188_v46  ;;  %v2293_v58 = vpop.f32.mrb[7].mxu1 }
 0x6b9   : > { %v2348_v61 = vadd.f32 %v2293_v58, %v2187_v38  ;;  %v2395_v46 = vld [vmem:[#allocation4 + $0x28] sm:$0xff] }
 0x6ba   : > { %2365 = vst.msk [vmem:[#allocation4 + $0x38] sm:$0xff] %vm1455_vm5, %v2349_v42  ;;  %v2394_v23 = vld [vmem:[#allocation4 + $0x20] sm:$0xff] }
 0x6bb   : > { %2364 = vst.msk [vmem:[#allocation4 + $0x30] sm:$0xff] %vm1455_vm5, %v2348_v61  ;;  %v3151_v33 = vpop.f32.mrb[8].mxu1 }
 0x6bc   : > { %v2351_v31 = vadd.f32 %v3151_v33, %v2190_v0  ;;  %v2303_v63 = vpop.f32.mrb[9].mxu1 }
 0x6bd   : > { %v2350_v5 = vadd.f32 %v2303_v63, %v2189_v60 }
 0x6be   : > { %2367 = vst.msk [vmem:[#allocation4 + $0x48] sm:$0xff] %vm1455_vm5, %v2351_v31 }
 0x6bf   : > { %2366 = vst.msk [vmem:[#allocation4 + $0x40] sm:$0xff] %vm1455_vm5, %v2350_v5  ;;  %v3154_v3 = vpop.f32.mrb[10].mxu1 }
 0x6c0   : > { %v2353_v4 = vadd.f32 %v3154_v3, %v2192_v11  ;;  %v2313_v35 = vpop.f32.mrb[11].mxu1 }
 0x6c1   : > { %v2352_v34 = vadd.f32 %v2313_v35, %v2191_v55  ;;  %v2397_v0 = vld [vmem:[#allocation4 + $0x38] sm:$0xff] }
 0x6c2   : > { %2369 = vst.msk [vmem:[#allocation4 + $0x58] sm:$0xff] %vm1455_vm5, %v2353_v4  ;;  %v2396_v31 = vld [vmem:[#allocation4 + $0x30] sm:$0xff] }
 0x6c3   : > { %2368 = vst.msk [vmem:[#allocation4 + $0x50] sm:$0xff] %vm1455_vm5, %v2352_v34  ;;  %v3157_v15 = vpop.f32.mrb[12].mxu1 }
 0x6c4   : > { %v2355_v53 = vadd.f32 %v3157_v15, %v2194_v62  ;;  %v2323_v8 = vpop.f32.mrb[13].mxu1 }
 0x6c5   : > { %v2354_v16 = vadd.f32 %v2323_v8, %v2193_v19  ;;  %v2399_v5 = vld [vmem:[#allocation4 + $0x48] sm:$0xff] }
 0x6c6   : > { %2371 = vst.msk [vmem:[#allocation4 + $0x68] sm:$0xff] %vm1455_vm5, %v2355_v53  ;;  %v2398_v3 = vld [vmem:[#allocation4 + $0x40] sm:$0xff] }
 0x6c7   : > { %2370 = vst.msk [vmem:[#allocation4 + $0x60] sm:$0xff] %vm1455_vm5, %v2354_v16  ;;  %v3160_v37 = vpop.f32.mrb[14].mxu1 }
 0x6c8   : > { %v2357_v14 = vadd.f32 %v3160_v37, %v2196_v1  ;;  %v2333_v36 = vpop.f32.mrb[15].mxu1 }
 0x6c9   : > { %v2356_v39 = vadd.f32 %v2333_v36, %v2195_v12  ;;  %v2401_v35 = vld [vmem:[#allocation4 + $0x58] sm:$0xff] }
 0x6ca   : > { %2373 = vst.msk [vmem:[#allocation4 + $0x78] sm:$0xff] %vm1455_vm5, %v2357_v14  ;;  %v2400_v29 = vld [vmem:[#allocation4 + $0x50] sm:$0xff] }
 0x6cb   : > { %2372 = vst.msk [vmem:[#allocation4 + $0x70] sm:$0xff] %vm1455_vm5, %v2356_v39 }
 0x6cd   : > { %v2403_v10 = vld [vmem:[#allocation4 + $0x68] sm:$0xff] }
 0x6ce   : > { %v2402_v8 = vld [vmem:[#allocation4 + $0x60] sm:$0xff] }
 0x6d1   : > { %v2405_v12 = vld [vmem:[#allocation4 + $0x78] sm:$0xff] }
 0x6d2   : > { %v2404_v36 = vld [vmem:[#allocation4 + $0x70] sm:$0xff] }
 0x6de   : > { %v2425_v18 = vpop.permute.xlu1 %2424 }
 0x6df   : > { %3515 = vrcp.f32 %v2425_v18 }
 0x6e2   : > { %v2430_v49 = vpop.permute.xlu0 %2429 }
 0x6e3   : > { %3517 = vrcp.f32 %v2430_v49 }
 0x6e6   : > { %v2440_v30 = vpop.permute.xlu0 %2439 }
 0x6e7   : > { %3519 = vrcp.f32 %v2440_v30 }
 0x6e9   : > { %v3516_v41 = vpop.eup %3515 }
 0x6ea   : > { %v2503_v26 = vmul.f32 %v3516_v41, %v2390_v59  ;;  %v2435_v21 = vpop.permute.xlu1 %2434 }
 0x6eb   : > { %3521 = vrcp.f32 %v2435_v21 }
 0x6ec   : > { %2534 = vst.msk [vmem:[%s3755_s11] sm:$0xff] %vm1455_vm5, %v2503_v26 }
 0x6ed   : > { %v3518_v43 = vpop.eup %3517 }
 0x6ee   : > { %v2505_v9 = vmul.f32 %v3518_v43, %v2391_v27  ;;  %v2450_v17 = vpop.permute.xlu0 %2449 }
 0x6ef   : > { %3523 = vrcp.f32 %v2450_v17 }
 0x6f0   : > { %2535 = vst.msk [vmem:[%s3755_s11 + $0x8] sm:$0xff] %vm1455_vm5, %v2505_v9 }
 0x6f1   : > { %v3520_v45 = vpop.eup %3519 }
 0x6f2   : > { %v2509_v47 = vmul.f32 %v3520_v45, %v2393_v51  ;;  %v2445_v6 = vpop.permute.xlu1 %2444 }
 0x6f3   : > { %3525 = vrcp.f32 %v2445_v6 }
 0x6f4   : > { %2537 = vst.msk [vmem:[%s3755_s11 + $0x18] sm:$0xff] %vm1455_vm5, %v2509_v47 }
 0x6f5   : > { %v3522_v44 = vpop.eup %3521 }
 0x6f6   : > { %v2507_v2 = vmul.f32 %v3522_v44, %v2392_v56  ;;  %v2460_v54 = vpop.permute.xlu0 %2459 }
 0x6f7   : > { %3527 = vrcp.f32 %v2460_v54 }
 0x6f8   : > { %2536 = vst.msk [vmem:[%s3755_s11 + $0x10] sm:$0xff] %vm1455_vm5, %v2507_v2 }
 0x6f9   : > { %v3524_v32 = vpop.eup %3523 }
 0x6fa   : > { %v2513_v38 = vmul.f32 %v3524_v32, %v2395_v46  ;;  %v2455_v25 = vpop.permute.xlu1 %2454 }
 0x6fb   : > { %3529 = vrcp.f32 %v2455_v25  ;;  %v2470_v50 = vpop.permute.xlu0 %2469 }
 0x6fc   : > { %2539 = vst.msk [vmem:[%s3755_s11 + $0x28] sm:$0xff] %vm1455_vm5, %v2513_v38  ;;  %3531 = vrcp.f32 %v2470_v50 }
 0x6fd   : > { %v3526_v52 = vpop.eup %3525 }
 0x6fe   : > { %v2511_v24 = vmul.f32 %v3526_v52, %v2394_v23  ;;  %v2465_v42 = vpop.permute.xlu1 %2464 }
 0x6ff   : > { %3533 = vrcp.f32 %v2465_v42  ;;  %v2480_v58 = vpop.permute.xlu0 %2479 }
 0x700   : > { %2538 = vst.msk [vmem:[%s3755_s11 + $0x20] sm:$0xff] %vm1455_vm5, %v2511_v24  ;;  %3535 = vrcp.f32 %v2480_v58 }
 0x701   : > { %v3528_v61 = vpop.eup %3527 }
 0x702   : > { %v2517_v60 = vmul.f32 %v3528_v61, %v2397_v0  ;;  %v2475_v28 = vpop.permute.xlu1 %2474 }
 0x703   : > { %3537 = vrcp.f32 %v2475_v28  ;;  %v2490_v33 = vpop.permute.xlu0 %2489 }
 0x704   : > { %2541 = vst.msk [vmem:[%s3755_s11 + $0x38] sm:$0xff] %vm1455_vm5, %v2517_v60  ;;  %3539 = vrcp.f32 %v2490_v33 }
 0x705   : > { %v3530_v13 = vpop.eup %3529 }
 0x706   : > { %v3532_v63 = vpop.eup %3531  ;;  %v2515_v48 = vmul.f32 %v3530_v13, %v2396_v31  ;;  %v2485_v7 = vpop.permute.xlu1 %2484 }
 0x707   : > { %v2521_v11 = vmul.f32 %v3532_v63, %v2399_v5  ;;  %3541 = vrcp.f32 %v2485_v7  ;;  %v2500_v55 = vpop.permute.xlu0 %2499 }
 0x708   : > { %2540 = vst.msk [vmem:[%s3755_s11 + $0x30] sm:$0xff] %vm1455_vm5, %v2515_v48  ;;  %3543 = vrcp.f32 %v2500_v55 }
 0x709   : > { %v3534_v57 = vpop.eup %3533  ;;  %2543 = vst.msk [vmem:[%s3755_s11 + $0x48] sm:$0xff] %vm1455_vm5, %v2521_v11 }
 0x70a   : > { %v3536_v40 = vpop.eup %3535  ;;  %v2519_v4 = vmul.f32 %v3534_v57, %v2398_v3  ;;  %v2495_v34 = vpop.permute.xlu1 %2494 }
 0x70b   : > { %v2525_v62 = vmul.f32 %v3536_v40, %v2401_v35  ;;  %3545 = vrcp.f32 %v2495_v34 }
 0x70c   : > { %2542 = vst.msk [vmem:[%s3755_s11 + $0x40] sm:$0xff] %vm1455_vm5, %v2519_v4 }
 0x70d   : > { %v3538_v19 = vpop.eup %3537  ;;  %2545 = vst.msk [vmem:[%s3755_s11 + $0x58] sm:$0xff] %vm1455_vm5, %v2525_v62 }
 0x70e   : > { %v3540_v22 = vpop.eup %3539  ;;  %v2523_v15 = vmul.f32 %v3538_v19, %v2400_v29 }
 0x70f   : > { %v2529_v20 = vmul.f32 %v3540_v22, %v2403_v10 }
 0x710   : > { %2544 = vst.msk [vmem:[%s3755_s11 + $0x50] sm:$0xff] %vm1455_vm5, %v2523_v15 }
 0x711   : > { %v3542_v53 = vpop.eup %3541  ;;  %2547 = vst.msk [vmem:[%s3755_s11 + $0x68] sm:$0xff] %vm1455_vm5, %v2529_v20 }
 0x712   : > { %v3544_v16 = vpop.eup %3543  ;;  %v2527_v1 = vmul.f32 %v3542_v53, %v2402_v8 }
 0x713   : > { %v2533_v37 = vmul.f32 %v3544_v16, %v2405_v12 }
 0x714   : > { %2546 = vst.msk [vmem:[%s3755_s11 + $0x60] sm:$0xff] %vm1455_vm5, %v2527_v1 }
 0x715   : > { %v3546_v14 = vpop.eup %3545  ;;  %2549 = vst.msk [vmem:[%s3755_s11 + $0x78] sm:$0xff] %vm1455_vm5, %v2533_v37 }
 0x716   : > { %v2531_v39 = vmul.f32 %v3546_v14, %v2404_v36 }
 0x718   : > { %2548 = vst.msk [vmem:[%s3755_s11 + $0x70] sm:$0xff] %vm1455_vm5, %v2531_v39 }
 0x719 PF: > { %s25_s7 = sadd.s32 1, %s3627_s7   ;;  %s4810_s9 = sld [smem:[#allocation9_spill]] }
 0x71a   : > { %p22_p11 = scmp.ge.s32.totalorder %s25_s7, 26   ;;  %s4811_s10 = sld [smem:[#allocation10_spill]] }
 0x71b   : > { %s4812_s1 = smov %s3615_s29  ;;  %s4813_s27 = smov %s3619_s30 }
 0x71c   : > { %s4814_s28 = smov %s3623_s6  ;;  %s4815_s29 = smov %s4819_s8 }
 0x71d   :  { %24 = sbr.rel (!%p22_p11) target bundleno = 29 (0x1d), region = 80 }
 0x71f   : > { %s4816_s30 = smov %s4810_s9 }
 0x720   : > { %s4817_s6 = smov %s4811_s10 }

</bundles_post_ra>
